<compile_context>
chip_gen: v7x
topology: tpu7x:2x2x1
jax: 0.10.0
libtpu: 0.0.40
codegen_flags: <defaults>
</compile_context>

<pallas_src>
import functools

import jax
import jax.numpy as jnp
from jax.experimental import pallas as pl
from jax.experimental.pallas import tpu as pltpu

EPS = 1e-5          # torch.nn.LayerNorm default
LANE = 128          # pad feature dims to a multiple of this (lane-dense loads/stores)
SUBLANE = 8         # pad batch to a multiple of this (f32 sublane tile)


def _ru(x, m):
    return ((x + m - 1) // m) * m


def _cdiv(a, b):
    return (a + b - 1) // b


# ----------------------------- math helpers ----------------------------------
# bf16 matmul operands + f32 accumulation (one MXU pass).  Shared by kernel and
# reference so the tolerance check isolates kernel-structure correctness
# (padding / masking / fusion / skip wiring) rather than MXU rounding.

def _dot(a, w):
    return jnp.dot(a.astype(jnp.bfloat16), w.astype(jnp.bfloat16),
                   preferred_element_type=jnp.float32)


def _silu(x):
    return x * jax.nn.sigmoid(x)


# -------------------------------- fused kernel --------------------------------

def fused_unet_kernel(cfg, t_ref, x_ref, c_ref, vec_ref, *refs):
    """cfg is static Python data:
       time_half, time_true, in_out_true, stage_out_true, vec_slots."""
    stage_out_true = cfg["stage_out_true"]
    n_stages = len(stage_out_true)
    n_enc = n_stages // 2

    in_w = refs[0]
    stage_w = [refs[1 + 3 * s: 4 + 3 * s] for s in range(n_stages)]  # (wt1, wtc, w)
    out_w = refs[1 + 3 * n_stages]
    o_ref = refs[2 + 3 * n_stages]

    # -- consolidated (1, d) vectors: slice the single vec operand lane-aligned --
    slot_it = iter(cfg["vec_slots"])

    def vec():
        off, w = next(slot_it)
        return vec_ref[:, off:off + w]          # static, 128-aligned slice

    tb = x_ref.shape[0]
    t_pad = t_ref.shape[1]
    time_half = cfg["time_half"]
    time_true = cfg["time_true"]

    # iota / mask built once per distinct shape (JAX doesn't CSE broadcasts)
    _iota_cache = {}

    def lane_iota(shape):
        if shape not in _iota_cache:
            _iota_cache[shape] = jax.lax.broadcasted_iota(
                jnp.int32, shape, len(shape) - 1)
        return _iota_cache[shape]

    def ln_silu(y, g, beta, true_d):
        """LayerNorm + SiLU over the TRUE feature width.

        Padded lanes of y are exactly 0 (padded W columns and biases are 0),
        so the mean needs no mask; only the centered value does.  Padded lanes
        of g/beta are 0, so the output's padded lanes stay 0 through SiLU."""
        d = y.shape[-1]
        if true_d == d:
            mu = jnp.mean(y, axis=-1, keepdims=True)
            cen = y - mu
            var = jnp.mean(cen * cen, axis=-1, keepdims=True)
        else:
            lane = lane_iota(y.shape)
            mu = jnp.sum(y, axis=-1, keepdims=True) * (1.0 / true_d)
            cen = jnp.where(lane < true_d, y - mu, 0.0)
            var = jnp.sum(cen * cen, axis=-1, keepdims=True) * (1.0 / true_d)
        return _silu(cen * jax.lax.rsqrt(var + EPS) * g + beta)

    # --- sinusoidal timestep projection (diffusers Timesteps:
    #     flip_sin_to_cos=True -> [cos | sin], downscale_freq_shift=0) ---
    j = lane_iota((tb, t_pad)).astype(jnp.float32)
    jm = jnp.where(j < time_half, j, j - time_half)
    freqs = jnp.exp((-jnp.log(10000.0) / time_half) * jm)
    ang = t_ref[...] * freqs                    # t pre-broadcast to (tb, t_pad)
    t_proj = jnp.where(j < time_half, jnp.cos(ang), jnp.sin(ang))
    if time_true < t_pad:
        t_proj = jnp.where(j < time_true, t_proj, 0.0)

    # --- input layer: Linear -> LayerNorm -> SiLU ---
    in_b, in_g, in_beta = vec(), vec(), vec()
    x = ln_silu(_dot(x_ref[...], in_w[...]) + in_b, in_g, in_beta,
                cfg["in_out_true"])
    cond = c_ref[...]

    # --- encode / decode stages (skips held as in-kernel values).
    # NOTE: at batch tiles >= 256 consider moving skips to explicit bf16 VMEM
    # scratch if the vld/vst slots become the binding unit.
    skips = []
    for s in range(n_stages):
        wt1, wtc, w = stage_w[s]
        bt1, btc, b, g, beta = vec(), vec(), vec(), vec(), vec()
        if s < n_enc:
            skips.append(x)
        # TimestepEmbedding (Linear -> SiLU -> Linear) fused with the cond
        # Linear into ONE matmul: [silu(t_proj@wt1+bt1) | cond] @ [[wt2];[wc]].
        u = _silu(_dot(t_proj, wt1[...]) + bt1)
        h = x + _dot(jnp.concatenate([u, cond], axis=-1), wtc[...]) + btc
        # Linear -> LayerNorm -> SiLU  (Dropout(p=0) is identity)
        y = ln_silu(_dot(h, w[...]) + b, g, beta, stage_out_true[s])
        if s >= n_enc:                  # decoder: add encoder skip
            y = y + skips[n_stages - 1 - s]
        x = y

    # --- output layer ---
    out_b = vec()
    o_ref[...] = _dot(x, out_w[...]) + out_b


# ------------------------------ parameters -----------------------------------

def _init_linear(key, din, dout):
    kw, kb = jax.random.split(key)
    w = jax.random.normal(kw, (din, dout), jnp.float32) / jnp.sqrt(float(din))
    b = jax.random.normal(kb, (1, dout), jnp.float32) * 0.01
    return w, b


def init_params(key, embed_dim, cond_dim, hidden_dim, time_embed_dim):
    n = len(hidden_dim)
    keys = iter(jax.random.split(key, 128))
    p = {}

    p["in_w"], p["in_b"] = _init_linear(next(keys), embed_dim, hidden_dim[0])
    p["in_g"] = jnp.ones((1, hidden_dim[0]), jnp.float32)
    p["in_beta"] = jnp.zeros((1, hidden_dim[0]), jnp.float32)

    def make_stage(d_in, d_out):
        wt1, bt1 = _init_linear(next(keys), time_embed_dim, d_in)
        wt2, bt2 = _init_linear(next(keys), d_in, d_in)
        wc, bc = _init_linear(next(keys), cond_dim, d_in)
        w, b = _init_linear(next(keys), d_in, d_out)
        g = jnp.ones((1, d_out), jnp.float32)
        beta = jnp.zeros((1, d_out), jnp.float32)
        return (wt1, bt1, wt2, bt2, wc, bc, w, b, g, beta)

    p["enc"] = [make_stage(hidden_dim[i], hidden_dim[i + 1]) for i in range(n - 1)]
    p["dec"] = [make_stage(hidden_dim[i], hidden_dim[i - 1]) for i in range(n - 1, 0, -1)]

    p["out_w"], p["out_b"] = _init_linear(next(keys), hidden_dim[0], embed_dim)
    return p


# --------------------------- padding / operand prep ---------------------------

def _pad2(a, rows, cols, dtype=None):
    out = jnp.pad(a, ((0, rows - a.shape[0]), (0, cols - a.shape[1])))
    return out.astype(dtype) if dtype is not None else out


def _build_operands(params, hidden_dim, embed_dim, cond_dim, time_embed_dim):
    e_p = _ru(embed_dim, LANE)
    c_p = _ru(cond_dim, LANE)
    t_p = _ru(time_embed_dim, LANE)
    h0_p = _ru(hidden_dim[0], LANE)
    wdt = jnp.bfloat16   # matmul operands stored bf16 (halves weight VMEM/DMA)
    # TODO(synk): on v7x consider fp8 weight storage (MXU-native) if accuracy allows.

    vec_parts, vec_slots = [], []
    off = [0]

    def add_vec(v, width):
        vec_parts.append(_pad2(v, 1, width))
        vec_slots.append((off[0], width))
        off[0] += width

    weights = []
    add_vec(params["in_b"], h0_p)
    add_vec(params["in_g"], h0_p)
    add_vec(params["in_beta"], h0_p)
    weights.append(_pad2(params["in_w"], e_p, h0_p, wdt))

    stage_out_true = []
    for sp in params["enc"] + params["dec"]:
        wt1, bt1, wt2, bt2, wc, bc, w, b, g, beta = sp
        d_in, d_out = w.shape
        di_p, do_p = _ru(d_in, LANE), _ru(d_out, LANE)
        weights.append(_pad2(wt1, t_p, di_p, wdt))
        # fused [wt2; wc] so the per-stage t/c conditioning is ONE matmul
        wtc = jnp.concatenate([_pad2(wt2, di_p, di_p), _pad2(wc, c_p, di_p)], axis=0)
        weights.append(wtc.astype(wdt))
        weights.append(_pad2(w, di_p, do_p, wdt))
        add_vec(bt1, di_p)
        add_vec(bt2 + bc, di_p)       # fused conditioning bias
        add_vec(b, do_p)
        add_vec(g, do_p)
        add_vec(beta, do_p)
        stage_out_true.append(d_out)

    weights.append(_pad2(params["out_w"], h0_p, e_p, wdt))
    add_vec(params["out_b"], e_p)

    vec_all = jnp.concatenate(vec_parts, axis=1)   # single (1, V) f32 operand
    return vec_all, weights, tuple(vec_slots), tuple(stage_out_true)


def _choose_batch_tile(B, max_tile=128):
    """Pick the per-grid-step batch tile.  Big tiles fill the MXU M dim and
    amortize the ~0.35us/step overhead; >=2 steps lets the 'parallel' batch
    axis shard across both v7x TensorCores."""
    bp8 = _ru(max(B, 1), SUBLANE)
    n_steps = _cdiv(bp8, max_tile)
    if n_steps == 1 and bp8 >= 2 * SUBLANE:
        n_steps = 2
    tile = _ru(_cdiv(bp8, n_steps), SUBLANE)
    b_p = _ru(bp8, tile)
    return tile, b_p


# ------------------------------- forward --------------------------------------

def forward(params, x, t, c, *, time_embed_dim, hidden_dim, embed_dim, cond_dim,
            max_batch_tile=128):   # raise to 256 on v6e/v7x (2x256^2 MXU)
    B = x.shape[0]
    e_p = _ru(embed_dim, LANE)
    c_p = _ru(cond_dim, LANE)
    t_p = _ru(time_embed_dim, LANE)

    tile, b_p = _choose_batch_tile(B, max_batch_tile)

    # Padded batch rows (t=0, x=0, c=0) run through the whole network and are
    # discarded at the end; rsqrt(var+EPS) keeps them NaN-free.
    x_pad = _pad2(x.astype(jnp.float32), b_p, e_p)
    c_pad = _pad2(c.astype(jnp.float32), b_p, c_p)
    # t pre-broadcast to a lane-dense (b_p, t_p) block (no (tile,1) masked loads).
    t_b = _pad2(jnp.broadcast_to(t.reshape(B, 1).astype(jnp.float32), (B, t_p)),
                b_p, t_p)

    vec_all, weights, vec_slots, stage_out_true = _build_operands(
        params, hidden_dim, embed_dim, cond_dim, time_embed_dim)
    const_ops = [vec_all] + weights

    cfg = dict(time_half=time_embed_dim // 2, time_true=time_embed_dim,
               in_out_true=hidden_dim[0], stage_out_true=stage_out_true,
               vec_slots=vec_slots)
    kernel = functools.partial(fused_unet_kernel, cfg)

    # Explicit scoped-VMEM budget: constants (x2 in case single-buffering is
    # unavailable) + double-buffered I/O tiles + headroom for live activations.
    const_bytes = sum(a.size * a.dtype.itemsize for a in const_ops)
    io_bytes = 4 * tile * (t_p + e_p + c_p + e_p)
    vmem_limit = int(min(2 * const_bytes + 2 * io_bytes + (16 << 20), 64 << 20))

    def batch_spec(a):
        nd = a.ndim
        return pl.BlockSpec((tile,) + a.shape[1:],
                            lambda i, _nd=nd: (i,) + (0,) * (_nd - 1))

    def run(single_buffer_consts):
        def const_spec(a):
            nd = a.ndim
            idx = lambda i, _nd=nd: (0,) * _nd
            if single_buffer_consts:
                # constant across the batch grid -> one VMEM buffer, not two
                return pl.BlockSpec(a.shape, idx, pipeline_mode=pl.Buffered(1))
            return pl.BlockSpec(a.shape, idx)

        in_specs = ([batch_spec(t_b), batch_spec(x_pad), batch_spec(c_pad)]
                    + [const_spec(a) for a in const_ops])
        return pl.pallas_call(
            kernel,
            grid=(b_p // tile,),
            in_specs=in_specs,
            out_specs=pl.BlockSpec((tile, e_p), lambda i: (i, 0)),
            out_shape=jax.ShapeDtypeStruct((b_p, e_p), jnp.float32),
            compiler_params=pltpu.CompilerParams(
                dimension_semantics=("parallel",),   # batch axis -> both TCs on v7x
                vmem_limit_bytes=vmem_limit),
        )(t_b, x_pad, c_pad, *const_ops)

    try:
        out = run(True)
    except Exception:
        # pipeline_mode=pl.Buffered(1) not supported by this jax build's
        # top-level pallas_call pipeline -> fall back to default double-buffering.
        out = run(False)

    # TODO(synk): at the production 1024-dim config on v7x (64 MiB VMEM), stream
    # per-stage weights over an extra 'arbitrary' grid axis (or pltpu.emit_pipeline)
    # with skips in VMEM scratch instead of keeping the whole weight set resident.
    return out[:B, :embed_dim]


# ---------------------------- pure-JAX reference ------------------------------
# Unpadded, un-fused reference.  Uses the same bf16-operand matmul helper so the
# comparison validates the kernel's structure (padding, LN masking, fusion,
# skip wiring, timestep embedding) rather than MXU rounding behaviour.

def forward_ref(params, x, t, c, *, time_embed_dim, hidden_dim, embed_dim, cond_dim):
    B = x.shape[0]
    half = time_embed_dim // 2
    freqs = jnp.exp(-jnp.log(10000.0) * jnp.arange(half, dtype=jnp.float32) / half)
    ang = t.reshape(B, 1).astype(jnp.float32) * freqs[None, :]
    t_proj = jnp.concatenate([jnp.cos(ang), jnp.sin(ang)], axis=-1)

    def lin(a, w, b):
        return _dot(a, w) + b

    def ln(y, g, b):
        mu = jnp.mean(y, axis=-1, keepdims=True)
        var = jnp.mean((y - mu) ** 2, axis=-1, keepdims=True)
        return (y - mu) * jax.lax.rsqrt(var + EPS) * g + b

    h = _silu(ln(lin(x, params["in_w"], params["in_b"]),
                 params["in_g"], params["in_beta"]))

    def stage(xx, sp, skip):
        wt1, bt1, wt2, bt2, wc, bc, w, b, g, beta = sp
        t_emb = lin(_silu(lin(t_proj, wt1, bt1)), wt2, bt2)
        c_emb = lin(c, wc, bc)
        z = xx + t_emb + c_emb
        y = _silu(ln(lin(z, w, b), g, beta))
        return y + skip

    hidden = []
    for sp in params["enc"]:
        hidden.append(h)
        h = stage(h, sp, 0.0)
    for i, sp in enumerate(params["dec"]):
        h = stage(h, sp, hidden[-1 - i])
    return lin(h, params["out_w"], params["out_b"])


# --------------------------------- main ---------------------------------------

if __name__ == "__main__":
    embed_dim = 128
    cond_dim = 128
    hidden_dim = [128, 64, 32]
    time_embed_dim = 64

    key = jax.random.PRNGKey(0)
    k_p, k_x, k_c, k_x2, k_c2 = jax.random.split(key, 5)
    params = init_params(k_p, embed_dim, cond_dim, hidden_dim, time_embed_dim)
    cfg = dict(time_embed_dim=time_embed_dim, hidden_dim=hidden_dim,
               embed_dim=embed_dim, cond_dim=cond_dim)

    # case 1: tiny batch (single grid step)
    B = 2
    x = jax.random.normal(k_x, (B, embed_dim), jnp.float32)
    c = jax.random.normal(k_c, (B, cond_dim), jnp.float32)
    t = jnp.array([3.0, 17.0], jnp.float32)   # diffusion timesteps
    out = jax.block_until_ready(forward(params, x, t, c, **cfg))
    ref = forward_ref(params, x, t, c, **cfg)
    assert out.shape == (B, embed_dim)
    assert jnp.allclose(out, ref, atol=2e-2, rtol=2e-2), \
        f"max abs err {jnp.max(jnp.abs(out - ref))}"

    # case 2: larger batch -> multi-step "parallel" batch grid (2 TCs on v7x)
    B2 = 32
    x2 = jax.random.normal(k_x2, (B2, embed_dim), jnp.float32)
    c2 = jax.random.normal(k_c2, (B2, cond_dim), jnp.float32)
    t2 = jnp.arange(B2, dtype=jnp.float32)
    out2 = jax.block_until_ready(forward(params, x2, t2, c2, **cfg))
    ref2 = forward_ref(params, x2, t2, c2, **cfg)
    assert out2.shape == (B2, embed_dim)
    assert jnp.allclose(out2, ref2, atol=2e-2, rtol=2e-2), \
        f"max abs err {jnp.max(jnp.abs(out2 - ref2))}"

    print("KERNEL_OK")
</pallas_src>

<mosaic_0001>
module attributes {stable_mosaic.version = 11 : i64} {
  func.func @fused_unet_kernel(%arg0: i32, %arg1: memref<8x128xf32, #tpu.memory_space<vmem>>, %arg2: memref<8x128xf32, #tpu.memory_space<vmem>>, %arg3: memref<8x128xf32, #tpu.memory_space<vmem>>, %arg4: memref<1x3072xf32, #tpu.memory_space<vmem>>, %arg5: memref<128x128xbf16, #tpu.memory_space<vmem>>, %arg6: memref<128x128xbf16, #tpu.memory_space<vmem>>, %arg7: memref<256x128xbf16, #tpu.memory_space<vmem>>, %arg8: memref<128x128xbf16, #tpu.memory_space<vmem>>, %arg9: memref<128x128xbf16, #tpu.memory_space<vmem>>, %arg10: memref<256x128xbf16, #tpu.memory_space<vmem>>, %arg11: memref<128x128xbf16, #tpu.memory_space<vmem>>, %arg12: memref<128x128xbf16, #tpu.memory_space<vmem>>, %arg13: memref<256x128xbf16, #tpu.memory_space<vmem>>, %arg14: memref<128x128xbf16, #tpu.memory_space<vmem>>, %arg15: memref<128x128xbf16, #tpu.memory_space<vmem>>, %arg16: memref<256x128xbf16, #tpu.memory_space<vmem>>, %arg17: memref<128x128xbf16, #tpu.memory_space<vmem>>, %arg18: memref<128x128xbf16, #tpu.memory_space<vmem>>, %arg19: memref<8x128xf32, #tpu.memory_space<vmem>>) attributes {dimension_semantics = [#tpu.dimension_semantics<parallel>], iteration_bounds = array<i64: 1>, scalar_prefetch = 0 : i64, scratch_operands = 0 : i64, tpu.core_type = #tpu.core_type<tc>, window_params = [{transform_indices = @transform_0, window_bounds = array<i64: 8, 128>}, {transform_indices = @transform_1, window_bounds = array<i64: 8, 128>}, {transform_indices = @transform_2, window_bounds = array<i64: 8, 128>}, {pipeline_mode = #tpu.pipeline_mode<synchronous>, transform_indices = @transform_3, window_bounds = array<i64: 1, 3072>}, {pipeline_mode = #tpu.pipeline_mode<synchronous>, transform_indices = @transform_4, window_bounds = array<i64: 128, 128>}, {pipeline_mode = #tpu.pipeline_mode<synchronous>, transform_indices = @transform_5, window_bounds = array<i64: 128, 128>}, {pipeline_mode = #tpu.pipeline_mode<synchronous>, transform_indices = @transform_6, window_bounds = array<i64: 256, 128>}, {pipeline_mode = #tpu.pipeline_mode<synchronous>, transform_indices = @transform_7, window_bounds = array<i64: 128, 128>}, {pipeline_mode = #tpu.pipeline_mode<synchronous>, transform_indices = @transform_8, window_bounds = array<i64: 128, 128>}, {pipeline_mode = #tpu.pipeline_mode<synchronous>, transform_indices = @transform_9, window_bounds = array<i64: 256, 128>}, {pipeline_mode = #tpu.pipeline_mode<synchronous>, transform_indices = @transform_10, window_bounds = array<i64: 128, 128>}, {pipeline_mode = #tpu.pipeline_mode<synchronous>, transform_indices = @transform_11, window_bounds = array<i64: 128, 128>}, {pipeline_mode = #tpu.pipeline_mode<synchronous>, transform_indices = @transform_12, window_bounds = array<i64: 256, 128>}, {pipeline_mode = #tpu.pipeline_mode<synchronous>, transform_indices = @transform_13, window_bounds = array<i64: 128, 128>}, {pipeline_mode = #tpu.pipeline_mode<synchronous>, transform_indices = @transform_14, window_bounds = array<i64: 128, 128>}, {pipeline_mode = #tpu.pipeline_mode<synchronous>, transform_indices = @transform_15, window_bounds = array<i64: 256, 128>}, {pipeline_mode = #tpu.pipeline_mode<synchronous>, transform_indices = @transform_16, window_bounds = array<i64: 128, 128>}, {pipeline_mode = #tpu.pipeline_mode<synchronous>, transform_indices = @transform_17, window_bounds = array<i64: 128, 128>}, {transform_indices = @transform_18, window_bounds = array<i64: 8, 128>}]} {
    %0 = tpu.iota {dimensions = array<i32: 1>} : vector<8x128xi32>
    %1 = arith.sitofp %0 : vector<8x128xi32> to vector<8x128xf32>
    %cst = arith.constant 3.200000e+01 : f32
    %2 = vector.broadcast %cst : f32 to vector<8x128xf32>
    %3 = arith.cmpf olt, %1, %2 : vector<8x128xf32>
    %cst_0 = arith.constant 3.200000e+01 : f32
    %4 = vector.broadcast %cst_0 : f32 to vector<8x128xf32>
    %5 = arith.subf %1, %4 : vector<8x128xf32>
    %6 = arith.select %3, %1, %5 : vector<8x128xi1>, vector<8x128xf32>
    %cst_1 = arith.constant 1.000000e+04 : f32
    %7 = math.log %cst_1 : f32
    %cst_2 = arith.constant 0.000000e+00 : f32
    %8 = arith.subf %cst_2, %7 : f32
    %cst_3 = arith.constant 3.200000e+01 : f32
    %9 = arith.divf %8, %cst_3 : f32
    %10 = vector.broadcast %9 : f32 to vector<8x128xf32>
    %11 = arith.mulf %10, %6 : vector<8x128xf32>
    %12 = math.exp %11 : vector<8x128xf32>
    %c0 = arith.constant 0 : index
    %c0_4 = arith.constant 0 : index
    %13 = vector.load %arg1[%c0, %c0_4] : memref<8x128xf32, #tpu.memory_space<vmem>>, vector<8x128xf32>
    %14 = arith.mulf %13, %12 : vector<8x128xf32>
    %cst_5 = arith.constant 3.200000e+01 : f32
    %15 = vector.broadcast %cst_5 : f32 to vector<8x128xf32>
    %16 = arith.cmpf olt, %1, %15 : vector<8x128xf32>
    %17 = math.cos %14 : vector<8x128xf32>
    %18 = math.sin %14 : vector<8x128xf32>
    %19 = arith.select %16, %17, %18 : vector<8x128xi1>, vector<8x128xf32>
    %cst_6 = arith.constant 6.400000e+01 : f32
    %20 = vector.broadcast %cst_6 : f32 to vector<8x128xf32>
    %21 = arith.cmpf olt, %1, %20 : vector<8x128xf32>
    %cst_7 = arith.constant 0.000000e+00 : f32
    %22 = vector.broadcast %cst_7 : f32 to vector<8x128xf32>
    %23 = arith.select %21, %19, %22 : vector<8x128xi1>, vector<8x128xf32>
    %c0_8 = arith.constant 0 : index
    %c0_9 = arith.constant 0 : index
    %24 = vector.load %arg4[%c0_8, %c0_9] : memref<1x3072xf32, #tpu.memory_space<vmem>>, vector<1x128xf32>
    %c0_10 = arith.constant 0 : index
    %c128 = arith.constant 128 : index
    %25 = vector.load %arg4[%c0_10, %c128] : memref<1x3072xf32, #tpu.memory_space<vmem>>, vector<1x128xf32>
    %c0_11 = arith.constant 0 : index
    %c256 = arith.constant 256 : index
    %26 = vector.load %arg4[%c0_11, %c256] : memref<1x3072xf32, #tpu.memory_space<vmem>>, vector<1x128xf32>
    %c0_12 = arith.constant 0 : index
    %c0_13 = arith.constant 0 : index
    %27 = vector.load %arg2[%c0_12, %c0_13] : memref<8x128xf32, #tpu.memory_space<vmem>>, vector<8x128xf32>
    %c0_14 = arith.constant 0 : index
    %c0_15 = arith.constant 0 : index
    %28 = vector.load %arg5[%c0_14, %c0_15] : memref<128x128xbf16, #tpu.memory_space<vmem>>, vector<128x128xbf16>
    %29 = arith.truncf %27 : vector<8x128xf32> to vector<8x128xbf16>
    %cst_16 = arith.constant dense<0.000000e+00> : vector<8x128xf32>
    %30 = tpu.matmul %29, %28, %cst_16 {dimension_numbers = #tpu.dot_dimension_numbers<[1], [0], [0], [1], [0, 0, 1, 1], [], []>} : vector<8x128xbf16>, vector<128x128xbf16>, vector<8x128xf32> -> vector<8x128xf32>
    %31 = vector.broadcast %24 : vector<1x128xf32> to vector<8x128xf32>
    %32 = arith.addf %30, %31 : vector<8x128xf32>
    %cst_17 = arith.constant dense<0.000000e+00> : vector<8xf32>
    %33 = vector.multi_reduction <add>, %32, %cst_17 [1] : vector<8x128xf32> to vector<8xf32>
    %34 = vector.shape_cast %33 : vector<8xf32> to vector<8x1xf32>
    %cst_18 = arith.constant 1.280000e+02 : f32
    %35 = vector.broadcast %cst_18 : f32 to vector<8x1xf32>
    %36 = arith.divf %34, %35 : vector<8x1xf32>
    %37 = vector.broadcast %36 : vector<8x1xf32> to vector<8x128xf32>
    %38 = arith.subf %32, %37 : vector<8x128xf32>
    %39 = arith.mulf %38, %38 : vector<8x128xf32>
    %cst_19 = arith.constant dense<0.000000e+00> : vector<8xf32>
    %40 = vector.multi_reduction <add>, %39, %cst_19 [1] : vector<8x128xf32> to vector<8xf32>
    %41 = vector.shape_cast %40 : vector<8xf32> to vector<8x1xf32>
    %cst_20 = arith.constant 1.280000e+02 : f32
    %42 = vector.broadcast %cst_20 : f32 to vector<8x1xf32>
    %43 = arith.divf %41, %42 : vector<8x1xf32>
    %cst_21 = arith.constant 9.99999974E-6 : f32
    %44 = vector.broadcast %cst_21 : f32 to vector<8x1xf32>
    %45 = arith.addf %43, %44 : vector<8x1xf32>
    %46 = math.rsqrt %45 : vector<8x1xf32>
    %47 = vector.broadcast %46 : vector<8x1xf32> to vector<8x128xf32>
    %48 = arith.mulf %38, %47 : vector<8x128xf32>
    %49 = vector.broadcast %25 : vector<1x128xf32> to vector<8x128xf32>
    %50 = arith.mulf %48, %49 : vector<8x128xf32>
    %51 = vector.broadcast %26 : vector<1x128xf32> to vector<8x128xf32>
    %52 = arith.addf %50, %51 : vector<8x128xf32>
    %53 = arith.negf %52 : vector<8x128xf32>
    %54 = math.exp %53 : vector<8x128xf32>
    %cst_22 = arith.constant 1.000000e+00 : f32
    %55 = vector.broadcast %cst_22 : f32 to vector<8x128xf32>
    %56 = arith.addf %55, %54 : vector<8x128xf32>
    %57 = arith.divf %55, %56 : vector<8x128xf32>
    %58 = arith.mulf %52, %57 : vector<8x128xf32>
    %c0_23 = arith.constant 0 : index
    %c0_24 = arith.constant 0 : index
    %59 = vector.load %arg3[%c0_23, %c0_24] : memref<8x128xf32, #tpu.memory_space<vmem>>, vector<8x128xf32>
    %c0_25 = arith.constant 0 : index
    %c384 = arith.constant 384 : index
    %60 = vector.load %arg4[%c0_25, %c384] : memref<1x3072xf32, #tpu.memory_space<vmem>>, vector<1x128xf32>
    %c0_26 = arith.constant 0 : index
    %c512 = arith.constant 512 : index
    %61 = vector.load %arg4[%c0_26, %c512] : memref<1x3072xf32, #tpu.memory_space<vmem>>, vector<1x128xf32>
    %c0_27 = arith.constant 0 : index
    %c640 = arith.constant 640 : index
    %62 = vector.load %arg4[%c0_27, %c640] : memref<1x3072xf32, #tpu.memory_space<vmem>>, vector<1x128xf32>
    %c0_28 = arith.constant 0 : index
    %c768 = arith.constant 768 : index
    %63 = vector.load %arg4[%c0_28, %c768] : memref<1x3072xf32, #tpu.memory_space<vmem>>, vector<1x128xf32>
    %c0_29 = arith.constant 0 : index
    %c896 = arith.constant 896 : index
    %64 = vector.load %arg4[%c0_29, %c896] : memref<1x3072xf32, #tpu.memory_space<vmem>>, vector<1x128xf32>
    %c0_30 = arith.constant 0 : index
    %c0_31 = arith.constant 0 : index
    %65 = vector.load %arg6[%c0_30, %c0_31] : memref<128x128xbf16, #tpu.memory_space<vmem>>, vector<128x128xbf16>
    %66 = arith.truncf %23 : vector<8x128xf32> to vector<8x128xbf16>
    %cst_32 = arith.constant dense<0.000000e+00> : vector<8x128xf32>
    %67 = tpu.matmul %66, %65, %cst_32 {dimension_numbers = #tpu.dot_dimension_numbers<[1], [0], [0], [1], [0, 0, 1, 1], [], []>} : vector<8x128xbf16>, vector<128x128xbf16>, vector<8x128xf32> -> vector<8x128xf32>
    %68 = vector.broadcast %60 : vector<1x128xf32> to vector<8x128xf32>
    %69 = arith.addf %67, %68 : vector<8x128xf32>
    %70 = arith.negf %69 : vector<8x128xf32>
    %71 = math.exp %70 : vector<8x128xf32>
    %cst_33 = arith.constant 1.000000e+00 : f32
    %72 = vector.broadcast %cst_33 : f32 to vector<8x128xf32>
    %73 = arith.addf %72, %71 : vector<8x128xf32>
    %74 = arith.divf %72, %73 : vector<8x128xf32>
    %75 = arith.mulf %69, %74 : vector<8x128xf32>
    %76 = tpu.concatenate %75, %59 in 1 : vector<8x128xf32>, vector<8x128xf32> -> vector<8x256xf32>
    %c0_34 = arith.constant 0 : index
    %c0_35 = arith.constant 0 : index
    %77 = vector.load %arg7[%c0_34, %c0_35] : memref<256x128xbf16, #tpu.memory_space<vmem>>, vector<256x128xbf16>
    %78 = arith.truncf %76 : vector<8x256xf32> to vector<8x256xbf16>
    %cst_36 = arith.constant dense<0.000000e+00> : vector<8x128xf32>
    %79 = tpu.matmul %78, %77, %cst_36 {dimension_numbers = #tpu.dot_dimension_numbers<[1], [0], [0], [1], [0, 0, 1, 1], [], []>} : vector<8x256xbf16>, vector<256x128xbf16>, vector<8x128xf32> -> vector<8x128xf32>
    %80 = arith.addf %58, %79 : vector<8x128xf32>
    %81 = vector.broadcast %61 : vector<1x128xf32> to vector<8x128xf32>
    %82 = arith.addf %80, %81 : vector<8x128xf32>
    %c0_37 = arith.constant 0 : index
    %c0_38 = arith.constant 0 : index
    %83 = vector.load %arg8[%c0_37, %c0_38] : memref<128x128xbf16, #tpu.memory_space<vmem>>, vector<128x128xbf16>
    %84 = arith.truncf %82 : vector<8x128xf32> to vector<8x128xbf16>
    %cst_39 = arith.constant dense<0.000000e+00> : vector<8x128xf32>
    %85 = tpu.matmul %84, %83, %cst_39 {dimension_numbers = #tpu.dot_dimension_numbers<[1], [0], [0], [1], [0, 0, 1, 1], [], []>} : vector<8x128xbf16>, vector<128x128xbf16>, vector<8x128xf32> -> vector<8x128xf32>
    %86 = vector.broadcast %62 : vector<1x128xf32> to vector<8x128xf32>
    %87 = arith.addf %85, %86 : vector<8x128xf32>
    %cst_40 = arith.constant dense<0.000000e+00> : vector<8xf32>
    %88 = vector.multi_reduction <add>, %87, %cst_40 [1] : vector<8x128xf32> to vector<8xf32>
    %89 = vector.shape_cast %88 : vector<8xf32> to vector<8x1xf32>
    %cst_41 = arith.constant 1.562500e-02 : f32
    %90 = vector.broadcast %cst_41 : f32 to vector<8x1xf32>
    %91 = arith.mulf %89, %90 : vector<8x1xf32>
    %c64_i32 = arith.constant 64 : i32
    %92 = vector.broadcast %c64_i32 : i32 to vector<8x128xi32>
    %93 = arith.cmpi slt, %0, %92 : vector<8x128xi32>
    %94 = vector.broadcast %91 : vector<8x1xf32> to vector<8x128xf32>
    %95 = arith.subf %87, %94 : vector<8x128xf32>
    %cst_42 = arith.constant 0.000000e+00 : f32
    %96 = vector.broadcast %cst_42 : f32 to vector<8x128xf32>
    %97 = arith.select %93, %95, %96 : vector<8x128xi1>, vector<8x128xf32>
    %98 = arith.mulf %97, %97 : vector<8x128xf32>
    %cst_43 = arith.constant dense<0.000000e+00> : vector<8xf32>
    %99 = vector.multi_reduction <add>, %98, %cst_43 [1] : vector<8x128xf32> to vector<8xf32>
    %100 = vector.shape_cast %99 : vector<8xf32> to vector<8x1xf32>
    %cst_44 = arith.constant 1.562500e-02 : f32
    %101 = vector.broadcast %cst_44 : f32 to vector<8x1xf32>
    %102 = arith.mulf %100, %101 : vector<8x1xf32>
    %cst_45 = arith.constant 9.99999974E-6 : f32
    %103 = vector.broadcast %cst_45 : f32 to vector<8x1xf32>
    %104 = arith.addf %102, %103 : vector<8x1xf32>
    %105 = math.rsqrt %104 : vector<8x1xf32>
    %106 = vector.broadcast %105 : vector<8x1xf32> to vector<8x128xf32>
    %107 = arith.mulf %97, %106 : vector<8x128xf32>
    %108 = vector.broadcast %63 : vector<1x128xf32> to vector<8x128xf32>
    %109 = arith.mulf %107, %108 : vector<8x128xf32>
    %110 = vector.broadcast %64 : vector<1x128xf32> to vector<8x128xf32>
    %111 = arith.addf %109, %110 : vector<8x128xf32>
    %112 = arith.negf %111 : vector<8x128xf32>
    %113 = math.exp %112 : vector<8x128xf32>
    %cst_46 = arith.constant 1.000000e+00 : f32
    %114 = vector.broadcast %cst_46 : f32 to vector<8x128xf32>
    %115 = arith.addf %114, %113 : vector<8x128xf32>
    %116 = arith.divf %114, %115 : vector<8x128xf32>
    %117 = arith.mulf %111, %116 : vector<8x128xf32>
    %c0_47 = arith.constant 0 : index
    %c1024 = arith.constant 1024 : index
    %118 = vector.load %arg4[%c0_47, %c1024] : memref<1x3072xf32, #tpu.memory_space<vmem>>, vector<1x128xf32>
    %c0_48 = arith.constant 0 : index
    %c1152 = arith.constant 1152 : index
    %119 = vector.load %arg4[%c0_48, %c1152] : memref<1x3072xf32, #tpu.memory_space<vmem>>, vector<1x128xf32>
    %c0_49 = arith.constant 0 : index
    %c1280 = arith.constant 1280 : index
    %120 = vector.load %arg4[%c0_49, %c1280] : memref<1x3072xf32, #tpu.memory_space<vmem>>, vector<1x128xf32>
    %c0_50 = arith.constant 0 : index
    %c1408 = arith.constant 1408 : index
    %121 = vector.load %arg4[%c0_50, %c1408] : memref<1x3072xf32, #tpu.memory_space<vmem>>, vector<1x128xf32>
    %c0_51 = arith.constant 0 : index
    %c1536 = arith.constant 1536 : index
    %122 = vector.load %arg4[%c0_51, %c1536] : memref<1x3072xf32, #tpu.memory_space<vmem>>, vector<1x128xf32>
    %c0_52 = arith.constant 0 : index
    %c0_53 = arith.constant 0 : index
    %123 = vector.load %arg9[%c0_52, %c0_53] : memref<128x128xbf16, #tpu.memory_space<vmem>>, vector<128x128xbf16>
    %124 = arith.truncf %23 : vector<8x128xf32> to vector<8x128xbf16>
    %cst_54 = arith.constant dense<0.000000e+00> : vector<8x128xf32>
    %125 = tpu.matmul %124, %123, %cst_54 {dimension_numbers = #tpu.dot_dimension_numbers<[1], [0], [0], [1], [0, 0, 1, 1], [], []>} : vector<8x128xbf16>, vector<128x128xbf16>, vector<8x128xf32> -> vector<8x128xf32>
    %126 = vector.broadcast %118 : vector<1x128xf32> to vector<8x128xf32>
    %127 = arith.addf %125, %126 : vector<8x128xf32>
    %128 = arith.negf %127 : vector<8x128xf32>
    %129 = math.exp %128 : vector<8x128xf32>
    %cst_55 = arith.constant 1.000000e+00 : f32
    %130 = vector.broadcast %cst_55 : f32 to vector<8x128xf32>
    %131 = arith.addf %130, %129 : vector<8x128xf32>
    %132 = arith.divf %130, %131 : vector<8x128xf32>
    %133 = arith.mulf %127, %132 : vector<8x128xf32>
    %134 = tpu.concatenate %133, %59 in 1 : vector<8x128xf32>, vector<8x128xf32> -> vector<8x256xf32>
    %c0_56 = arith.constant 0 : index
    %c0_57 = arith.constant 0 : index
    %135 = vector.load %arg10[%c0_56, %c0_57] : memref<256x128xbf16, #tpu.memory_space<vmem>>, vector<256x128xbf16>
    %136 = arith.truncf %134 : vector<8x256xf32> to vector<8x256xbf16>
    %cst_58 = arith.constant dense<0.000000e+00> : vector<8x128xf32>
    %137 = tpu.matmul %136, %135, %cst_58 {dimension_numbers = #tpu.dot_dimension_numbers<[1], [0], [0], [1], [0, 0, 1, 1], [], []>} : vector<8x256xbf16>, vector<256x128xbf16>, vector<8x128xf32> -> vector<8x128xf32>
    %138 = arith.addf %117, %137 : vector<8x128xf32>
    %139 = vector.broadcast %119 : vector<1x128xf32> to vector<8x128xf32>
    %140 = arith.addf %138, %139 : vector<8x128xf32>
    %c0_59 = arith.constant 0 : index
    %c0_60 = arith.constant 0 : index
    %141 = vector.load %arg11[%c0_59, %c0_60] : memref<128x128xbf16, #tpu.memory_space<vmem>>, vector<128x128xbf16>
    %142 = arith.truncf %140 : vector<8x128xf32> to vector<8x128xbf16>
    %cst_61 = arith.constant dense<0.000000e+00> : vector<8x128xf32>
    %143 = tpu.matmul %142, %141, %cst_61 {dimension_numbers = #tpu.dot_dimension_numbers<[1], [0], [0], [1], [0, 0, 1, 1], [], []>} : vector<8x128xbf16>, vector<128x128xbf16>, vector<8x128xf32> -> vector<8x128xf32>
    %144 = vector.broadcast %120 : vector<1x128xf32> to vector<8x128xf32>
    %145 = arith.addf %143, %144 : vector<8x128xf32>
    %cst_62 = arith.constant dense<0.000000e+00> : vector<8xf32>
    %146 = vector.multi_reduction <add>, %145, %cst_62 [1] : vector<8x128xf32> to vector<8xf32>
    %147 = vector.shape_cast %146 : vector<8xf32> to vector<8x1xf32>
    %cst_63 = arith.constant 3.125000e-02 : f32
    %148 = vector.broadcast %cst_63 : f32 to vector<8x1xf32>
    %149 = arith.mulf %147, %148 : vector<8x1xf32>
    %c32_i32 = arith.constant 32 : i32
    %150 = vector.broadcast %c32_i32 : i32 to vector<8x128xi32>
    %151 = arith.cmpi slt, %0, %150 : vector<8x128xi32>
    %152 = vector.broadcast %149 : vector<8x1xf32> to vector<8x128xf32>
    %153 = arith.subf %145, %152 : vector<8x128xf32>
    %cst_64 = arith.constant 0.000000e+00 : f32
    %154 = vector.broadcast %cst_64 : f32 to vector<8x128xf32>
    %155 = arith.select %151, %153, %154 : vector<8x128xi1>, vector<8x128xf32>
    %156 = arith.mulf %155, %155 : vector<8x128xf32>
    %cst_65 = arith.constant dense<0.000000e+00> : vector<8xf32>
    %157 = vector.multi_reduction <add>, %156, %cst_65 [1] : vector<8x128xf32> to vector<8xf32>
    %158 = vector.shape_cast %157 : vector<8xf32> to vector<8x1xf32>
    %cst_66 = arith.constant 3.125000e-02 : f32
    %159 = vector.broadcast %cst_66 : f32 to vector<8x1xf32>
    %160 = arith.mulf %158, %159 : vector<8x1xf32>
    %cst_67 = arith.constant 9.99999974E-6 : f32
    %161 = vector.broadcast %cst_67 : f32 to vector<8x1xf32>
    %162 = arith.addf %160, %161 : vector<8x1xf32>
    %163 = math.rsqrt %162 : vector<8x1xf32>
    %164 = vector.broadcast %163 : vector<8x1xf32> to vector<8x128xf32>
    %165 = arith.mulf %155, %164 : vector<8x128xf32>
    %166 = vector.broadcast %121 : vector<1x128xf32> to vector<8x128xf32>
    %167 = arith.mulf %165, %166 : vector<8x128xf32>
    %168 = vector.broadcast %122 : vector<1x128xf32> to vector<8x128xf32>
    %169 = arith.addf %167, %168 : vector<8x128xf32>
    %170 = arith.negf %169 : vector<8x128xf32>
    %171 = math.exp %170 : vector<8x128xf32>
    %cst_68 = arith.constant 1.000000e+00 : f32
    %172 = vector.broadcast %cst_68 : f32 to vector<8x128xf32>
    %173 = arith.addf %172, %171 : vector<8x128xf32>
    %174 = arith.divf %172, %173 : vector<8x128xf32>
    %175 = arith.mulf %169, %174 : vector<8x128xf32>
    %c0_69 = arith.constant 0 : index
    %c1664 = arith.constant 1664 : index
    %176 = vector.load %arg4[%c0_69, %c1664] : memref<1x3072xf32, #tpu.memory_space<vmem>>, vector<1x128xf32>
    %c0_70 = arith.constant 0 : index
    %c1792 = arith.constant 1792 : index
    %177 = vector.load %arg4[%c0_70, %c1792] : memref<1x3072xf32, #tpu.memory_space<vmem>>, vector<1x128xf32>
    %c0_71 = arith.constant 0 : index
    %c1920 = arith.constant 1920 : index
    %178 = vector.load %arg4[%c0_71, %c1920] : memref<1x3072xf32, #tpu.memory_space<vmem>>, vector<1x128xf32>
    %c0_72 = arith.constant 0 : index
    %c2048 = arith.constant 2048 : index
    %179 = vector.load %arg4[%c0_72, %c2048] : memref<1x3072xf32, #tpu.memory_space<vmem>>, vector<1x128xf32>
    %c0_73 = arith.constant 0 : index
    %c2176 = arith.constant 2176 : index
    %180 = vector.load %arg4[%c0_73, %c2176] : memref<1x3072xf32, #tpu.memory_space<vmem>>, vector<1x128xf32>
    %c0_74 = arith.constant 0 : index
    %c0_75 = arith.constant 0 : index
    %181 = vector.load %arg12[%c0_74, %c0_75] : memref<128x128xbf16, #tpu.memory_space<vmem>>, vector<128x128xbf16>
    %182 = arith.truncf %23 : vector<8x128xf32> to vector<8x128xbf16>
    %cst_76 = arith.constant dense<0.000000e+00> : vector<8x128xf32>
    %183 = tpu.matmul %182, %181, %cst_76 {dimension_numbers = #tpu.dot_dimension_numbers<[1], [0], [0], [1], [0, 0, 1, 1], [], []>} : vector<8x128xbf16>, vector<128x128xbf16>, vector<8x128xf32> -> vector<8x128xf32>
    %184 = vector.broadcast %176 : vector<1x128xf32> to vector<8x128xf32>
    %185 = arith.addf %183, %184 : vector<8x128xf32>
    %186 = arith.negf %185 : vector<8x128xf32>
    %187 = math.exp %186 : vector<8x128xf32>
    %cst_77 = arith.constant 1.000000e+00 : f32
    %188 = vector.broadcast %cst_77 : f32 to vector<8x128xf32>
    %189 = arith.addf %188, %187 : vector<8x128xf32>
    %190 = arith.divf %188, %189 : vector<8x128xf32>
    %191 = arith.mulf %185, %190 : vector<8x128xf32>
    %192 = tpu.concatenate %191, %59 in 1 : vector<8x128xf32>, vector<8x128xf32> -> vector<8x256xf32>
    %c0_78 = arith.constant 0 : index
    %c0_79 = arith.constant 0 : index
    %193 = vector.load %arg13[%c0_78, %c0_79] : memref<256x128xbf16, #tpu.memory_space<vmem>>, vector<256x128xbf16>
    %194 = arith.truncf %192 : vector<8x256xf32> to vector<8x256xbf16>
    %cst_80 = arith.constant dense<0.000000e+00> : vector<8x128xf32>
    %195 = tpu.matmul %194, %193, %cst_80 {dimension_numbers = #tpu.dot_dimension_numbers<[1], [0], [0], [1], [0, 0, 1, 1], [], []>} : vector<8x256xbf16>, vector<256x128xbf16>, vector<8x128xf32> -> vector<8x128xf32>
    %196 = arith.addf %175, %195 : vector<8x128xf32>
    %197 = vector.broadcast %177 : vector<1x128xf32> to vector<8x128xf32>
    %198 = arith.addf %196, %197 : vector<8x128xf32>
    %c0_81 = arith.constant 0 : index
    %c0_82 = arith.constant 0 : index
    %199 = vector.load %arg14[%c0_81, %c0_82] : memref<128x128xbf16, #tpu.memory_space<vmem>>, vector<128x128xbf16>
    %200 = arith.truncf %198 : vector<8x128xf32> to vector<8x128xbf16>
    %cst_83 = arith.constant dense<0.000000e+00> : vector<8x128xf32>
    %201 = tpu.matmul %200, %199, %cst_83 {dimension_numbers = #tpu.dot_dimension_numbers<[1], [0], [0], [1], [0, 0, 1, 1], [], []>} : vector<8x128xbf16>, vector<128x128xbf16>, vector<8x128xf32> -> vector<8x128xf32>
    %202 = vector.broadcast %178 : vector<1x128xf32> to vector<8x128xf32>
    %203 = arith.addf %201, %202 : vector<8x128xf32>
    %cst_84 = arith.constant dense<0.000000e+00> : vector<8xf32>
    %204 = vector.multi_reduction <add>, %203, %cst_84 [1] : vector<8x128xf32> to vector<8xf32>
    %205 = vector.shape_cast %204 : vector<8xf32> to vector<8x1xf32>
    %cst_85 = arith.constant 1.562500e-02 : f32
    %206 = vector.broadcast %cst_85 : f32 to vector<8x1xf32>
    %207 = arith.mulf %205, %206 : vector<8x1xf32>
    %c64_i32_86 = arith.constant 64 : i32
    %208 = vector.broadcast %c64_i32_86 : i32 to vector<8x128xi32>
    %209 = arith.cmpi slt, %0, %208 : vector<8x128xi32>
    %210 = vector.broadcast %207 : vector<8x1xf32> to vector<8x128xf32>
    %211 = arith.subf %203, %210 : vector<8x128xf32>
    %cst_87 = arith.constant 0.000000e+00 : f32
    %212 = vector.broadcast %cst_87 : f32 to vector<8x128xf32>
    %213 = arith.select %209, %211, %212 : vector<8x128xi1>, vector<8x128xf32>
    %214 = arith.mulf %213, %213 : vector<8x128xf32>
    %cst_88 = arith.constant dense<0.000000e+00> : vector<8xf32>
    %215 = vector.multi_reduction <add>, %214, %cst_88 [1] : vector<8x128xf32> to vector<8xf32>
    %216 = vector.shape_cast %215 : vector<8xf32> to vector<8x1xf32>
    %cst_89 = arith.constant 1.562500e-02 : f32
    %217 = vector.broadcast %cst_89 : f32 to vector<8x1xf32>
    %218 = arith.mulf %216, %217 : vector<8x1xf32>
    %cst_90 = arith.constant 9.99999974E-6 : f32
    %219 = vector.broadcast %cst_90 : f32 to vector<8x1xf32>
    %220 = arith.addf %218, %219 : vector<8x1xf32>
    %221 = math.rsqrt %220 : vector<8x1xf32>
    %222 = vector.broadcast %221 : vector<8x1xf32> to vector<8x128xf32>
    %223 = arith.mulf %213, %222 : vector<8x128xf32>
    %224 = vector.broadcast %179 : vector<1x128xf32> to vector<8x128xf32>
    %225 = arith.mulf %223, %224 : vector<8x128xf32>
    %226 = vector.broadcast %180 : vector<1x128xf32> to vector<8x128xf32>
    %227 = arith.addf %225, %226 : vector<8x128xf32>
    %228 = arith.negf %227 : vector<8x128xf32>
    %229 = math.exp %228 : vector<8x128xf32>
    %cst_91 = arith.constant 1.000000e+00 : f32
    %230 = vector.broadcast %cst_91 : f32 to vector<8x128xf32>
    %231 = arith.addf %230, %229 : vector<8x128xf32>
    %232 = arith.divf %230, %231 : vector<8x128xf32>
    %233 = arith.mulf %227, %232 : vector<8x128xf32>
    %234 = arith.addf %233, %117 : vector<8x128xf32>
    %c0_92 = arith.constant 0 : index
    %c2304 = arith.constant 2304 : index
    %235 = vector.load %arg4[%c0_92, %c2304] : memref<1x3072xf32, #tpu.memory_space<vmem>>, vector<1x128xf32>
    %c0_93 = arith.constant 0 : index
    %c2432 = arith.constant 2432 : index
    %236 = vector.load %arg4[%c0_93, %c2432] : memref<1x3072xf32, #tpu.memory_space<vmem>>, vector<1x128xf32>
    %c0_94 = arith.constant 0 : index
    %c2560 = arith.constant 2560 : index
    %237 = vector.load %arg4[%c0_94, %c2560] : memref<1x3072xf32, #tpu.memory_space<vmem>>, vector<1x128xf32>
    %c0_95 = arith.constant 0 : index
    %c2688 = arith.constant 2688 : index
    %238 = vector.load %arg4[%c0_95, %c2688] : memref<1x3072xf32, #tpu.memory_space<vmem>>, vector<1x128xf32>
    %c0_96 = arith.constant 0 : index
    %c2816 = arith.constant 2816 : index
    %239 = vector.load %arg4[%c0_96, %c2816] : memref<1x3072xf32, #tpu.memory_space<vmem>>, vector<1x128xf32>
    %c0_97 = arith.constant 0 : index
    %c0_98 = arith.constant 0 : index
    %240 = vector.load %arg15[%c0_97, %c0_98] : memref<128x128xbf16, #tpu.memory_space<vmem>>, vector<128x128xbf16>
    %241 = arith.truncf %23 : vector<8x128xf32> to vector<8x128xbf16>
    %cst_99 = arith.constant dense<0.000000e+00> : vector<8x128xf32>
    %242 = tpu.matmul %241, %240, %cst_99 {dimension_numbers = #tpu.dot_dimension_numbers<[1], [0], [0], [1], [0, 0, 1, 1], [], []>} : vector<8x128xbf16>, vector<128x128xbf16>, vector<8x128xf32> -> vector<8x128xf32>
    %243 = vector.broadcast %235 : vector<1x128xf32> to vector<8x128xf32>
    %244 = arith.addf %242, %243 : vector<8x128xf32>
    %245 = arith.negf %244 : vector<8x128xf32>
    %246 = math.exp %245 : vector<8x128xf32>
    %cst_100 = arith.constant 1.000000e+00 : f32
    %247 = vector.broadcast %cst_100 : f32 to vector<8x128xf32>
    %248 = arith.addf %247, %246 : vector<8x128xf32>
    %249 = arith.divf %247, %248 : vector<8x128xf32>
    %250 = arith.mulf %244, %249 : vector<8x128xf32>
    %251 = tpu.concatenate %250, %59 in 1 : vector<8x128xf32>, vector<8x128xf32> -> vector<8x256xf32>
    %c0_101 = arith.constant 0 : index
    %c0_102 = arith.constant 0 : index
    %252 = vector.load %arg16[%c0_101, %c0_102] : memref<256x128xbf16, #tpu.memory_space<vmem>>, vector<256x128xbf16>
    %253 = arith.truncf %251 : vector<8x256xf32> to vector<8x256xbf16>
    %cst_103 = arith.constant dense<0.000000e+00> : vector<8x128xf32>
    %254 = tpu.matmul %253, %252, %cst_103 {dimension_numbers = #tpu.dot_dimension_numbers<[1], [0], [0], [1], [0, 0, 1, 1], [], []>} : vector<8x256xbf16>, vector<256x128xbf16>, vector<8x128xf32> -> vector<8x128xf32>
    %255 = arith.addf %234, %254 : vector<8x128xf32>
    %256 = vector.broadcast %236 : vector<1x128xf32> to vector<8x128xf32>
    %257 = arith.addf %255, %256 : vector<8x128xf32>
    %c0_104 = arith.constant 0 : index
    %c0_105 = arith.constant 0 : index
    %258 = vector.load %arg17[%c0_104, %c0_105] : memref<128x128xbf16, #tpu.memory_space<vmem>>, vector<128x128xbf16>
    %259 = arith.truncf %257 : vector<8x128xf32> to vector<8x128xbf16>
    %cst_106 = arith.constant dense<0.000000e+00> : vector<8x128xf32>
    %260 = tpu.matmul %259, %258, %cst_106 {dimension_numbers = #tpu.dot_dimension_numbers<[1], [0], [0], [1], [0, 0, 1, 1], [], []>} : vector<8x128xbf16>, vector<128x128xbf16>, vector<8x128xf32> -> vector<8x128xf32>
    %261 = vector.broadcast %237 : vector<1x128xf32> to vector<8x128xf32>
    %262 = arith.addf %260, %261 : vector<8x128xf32>
    %cst_107 = arith.constant dense<0.000000e+00> : vector<8xf32>
    %263 = vector.multi_reduction <add>, %262, %cst_107 [1] : vector<8x128xf32> to vector<8xf32>
    %264 = vector.shape_cast %263 : vector<8xf32> to vector<8x1xf32>
    %cst_108 = arith.constant 1.280000e+02 : f32
    %265 = vector.broadcast %cst_108 : f32 to vector<8x1xf32>
    %266 = arith.divf %264, %265 : vector<8x1xf32>
    %267 = vector.broadcast %266 : vector<8x1xf32> to vector<8x128xf32>
    %268 = arith.subf %262, %267 : vector<8x128xf32>
    %269 = arith.mulf %268, %268 : vector<8x128xf32>
    %cst_109 = arith.constant dense<0.000000e+00> : vector<8xf32>
    %270 = vector.multi_reduction <add>, %269, %cst_109 [1] : vector<8x128xf32> to vector<8xf32>
    %271 = vector.shape_cast %270 : vector<8xf32> to vector<8x1xf32>
    %cst_110 = arith.constant 1.280000e+02 : f32
    %272 = vector.broadcast %cst_110 : f32 to vector<8x1xf32>
    %273 = arith.divf %271, %272 : vector<8x1xf32>
    %cst_111 = arith.constant 9.99999974E-6 : f32
    %274 = vector.broadcast %cst_111 : f32 to vector<8x1xf32>
    %275 = arith.addf %273, %274 : vector<8x1xf32>
    %276 = math.rsqrt %275 : vector<8x1xf32>
    %277 = vector.broadcast %276 : vector<8x1xf32> to vector<8x128xf32>
    %278 = arith.mulf %268, %277 : vector<8x128xf32>
    %279 = vector.broadcast %238 : vector<1x128xf32> to vector<8x128xf32>
    %280 = arith.mulf %278, %279 : vector<8x128xf32>
    %281 = vector.broadcast %239 : vector<1x128xf32> to vector<8x128xf32>
    %282 = arith.addf %280, %281 : vector<8x128xf32>
    %283 = arith.negf %282 : vector<8x128xf32>
    %284 = math.exp %283 : vector<8x128xf32>
    %cst_112 = arith.constant 1.000000e+00 : f32
    %285 = vector.broadcast %cst_112 : f32 to vector<8x128xf32>
    %286 = arith.addf %285, %284 : vector<8x128xf32>
    %287 = arith.divf %285, %286 : vector<8x128xf32>
    %288 = arith.mulf %282, %287 : vector<8x128xf32>
    %289 = arith.addf %288, %58 : vector<8x128xf32>
    %c0_113 = arith.constant 0 : index
    %c2944 = arith.constant 2944 : index
    %290 = vector.load %arg4[%c0_113, %c2944] : memref<1x3072xf32, #tpu.memory_space<vmem>>, vector<1x128xf32>
    %c0_114 = arith.constant 0 : index
    %c0_115 = arith.constant 0 : index
    %291 = vector.load %arg18[%c0_114, %c0_115] : memref<128x128xbf16, #tpu.memory_space<vmem>>, vector<128x128xbf16>
    %292 = arith.truncf %289 : vector<8x128xf32> to vector<8x128xbf16>
    %cst_116 = arith.constant dense<0.000000e+00> : vector<8x128xf32>
    %293 = tpu.matmul %292, %291, %cst_116 {dimension_numbers = #tpu.dot_dimension_numbers<[1], [0], [0], [1], [0, 0, 1, 1], [], []>} : vector<8x128xbf16>, vector<128x128xbf16>, vector<8x128xf32> -> vector<8x128xf32>
    %294 = vector.broadcast %290 : vector<1x128xf32> to vector<8x128xf32>
    %295 = arith.addf %293, %294 : vector<8x128xf32>
    %c0_117 = arith.constant 0 : index
    %c0_118 = arith.constant 0 : index
    %296 = vector.load %arg19[%c0_117, %c0_118] : memref<8x128xf32, #tpu.memory_space<vmem>>, vector<8x128xf32>
    tpu.vector_store %arg19[%c0_117, %c0_118], %295 {strides = array<i32>} : memref<8x128xf32, #tpu.memory_space<vmem>>, vector<8x128xf32>,
    return
  }
  func.func @transform_0(%arg0: i32) -> (i32, i32) {
    %c0_i32 = arith.constant 0 : i32
    %c0_i32_0 = arith.constant 0 : i32
    return %arg0, %c0_i32 : i32, i32
  }
  func.func @transform_1(%arg0: i32) -> (i32, i32) {
    %c0_i32 = arith.constant 0 : i32
    %c0_i32_0 = arith.constant 0 : i32
    return %arg0, %c0_i32 : i32, i32
  }
  func.func @transform_2(%arg0: i32) -> (i32, i32) {
    %c0_i32 = arith.constant 0 : i32
    %c0_i32_0 = arith.constant 0 : i32
    return %arg0, %c0_i32 : i32, i32
  }
  func.func @transform_3(%arg0: i32) -> (i32, i32) {
    %c0_i32 = arith.constant 0 : i32
    %c0_i32_0 = arith.constant 0 : i32
    %c0_i32_1 = arith.constant 0 : i32
    return %c0_i32, %c0_i32_0 : i32, i32
  }
  func.func @transform_4(%arg0: i32) -> (i32, i32) {
    %c0_i32 = arith.constant 0 : i32
    %c0_i32_0 = arith.constant 0 : i32
    %c0_i32_1 = arith.constant 0 : i32
    return %c0_i32, %c0_i32_0 : i32, i32
  }
  func.func @transform_5(%arg0: i32) -> (i32, i32) {
    %c0_i32 = arith.constant 0 : i32
    %c0_i32_0 = arith.constant 0 : i32
    %c0_i32_1 = arith.constant 0 : i32
    return %c0_i32, %c0_i32_0 : i32, i32
  }
  func.func @transform_6(%arg0: i32) -> (i32, i32) {
    %c0_i32 = arith.constant 0 : i32
    %c0_i32_0 = arith.constant 0 : i32
    %c0_i32_1 = arith.constant 0 : i32
    return %c0_i32, %c0_i32_0 : i32, i32
  }
  func.func @transform_7(%arg0: i32) -> (i32, i32) {
    %c0_i32 = arith.constant 0 : i32
    %c0_i32_0 = arith.constant 0 : i32
    %c0_i32_1 = arith.constant 0 : i32
    return %c0_i32, %c0_i32_0 : i32, i32
  }
  func.func @transform_8(%arg0: i32) -> (i32, i32) {
    %c0_i32 = arith.constant 0 : i32
    %c0_i32_0 = arith.constant 0 : i32
    %c0_i32_1 = arith.constant 0 : i32
    return %c0_i32, %c0_i32_0 : i32, i32
  }
  func.func @transform_9(%arg0: i32) -> (i32, i32) {
    %c0_i32 = arith.constant 0 : i32
    %c0_i32_0 = arith.constant 0 : i32
    %c0_i32_1 = arith.constant 0 : i32
    return %c0_i32, %c0_i32_0 : i32, i32
  }
  func.func @transform_10(%arg0: i32) -> (i32, i32) {
    %c0_i32 = arith.constant 0 : i32
    %c0_i32_0 = arith.constant 0 : i32
    %c0_i32_1 = arith.constant 0 : i32
    return %c0_i32, %c0_i32_0 : i32, i32
  }
  func.func @transform_11(%arg0: i32) -> (i32, i32) {
    %c0_i32 = arith.constant 0 : i32
    %c0_i32_0 = arith.constant 0 : i32
    %c0_i32_1 = arith.constant 0 : i32
    return %c0_i32, %c0_i32_0 : i32, i32
  }
  func.func @transform_12(%arg0: i32) -> (i32, i32) {
    %c0_i32 = arith.constant 0 : i32
    %c0_i32_0 = arith.constant 0 : i32
    %c0_i32_1 = arith.constant 0 : i32
    return %c0_i32, %c0_i32_0 : i32, i32
  }
  func.func @transform_13(%arg0: i32) -> (i32, i32) {
    %c0_i32 = arith.constant 0 : i32
    %c0_i32_0 = arith.constant 0 : i32
    %c0_i32_1 = arith.constant 0 : i32
    return %c0_i32, %c0_i32_0 : i32, i32
  }
  func.func @transform_14(%arg0: i32) -> (i32, i32) {
    %c0_i32 = arith.constant 0 : i32
    %c0_i32_0 = arith.constant 0 : i32
    %c0_i32_1 = arith.constant 0 : i32
    return %c0_i32, %c0_i32_0 : i32, i32
  }
  func.func @transform_15(%arg0: i32) -> (i32, i32) {
    %c0_i32 = arith.constant 0 : i32
    %c0_i32_0 = arith.constant 0 : i32
    %c0_i32_1 = arith.constant 0 : i32
    return %c0_i32, %c0_i32_0 : i32, i32
  }
  func.func @transform_16(%arg0: i32) -> (i32, i32) {
    %c0_i32 = arith.constant 0 : i32
    %c0_i32_0 = arith.constant 0 : i32
    %c0_i32_1 = arith.constant 0 : i32
    return %c0_i32, %c0_i32_0 : i32, i32
  }
  func.func @transform_17(%arg0: i32) -> (i32, i32) {
    %c0_i32 = arith.constant 0 : i32
    %c0_i32_0 = arith.constant 0 : i32
    %c0_i32_1 = arith.constant 0 : i32
    return %c0_i32, %c0_i32_0 : i32, i32
  }
  func.func @transform_18(%arg0: i32) -> (i32, i32) {
    %c0_i32 = arith.constant 0 : i32
    %c0_i32_0 = arith.constant 0 : i32
    return %arg0, %c0_i32 : i32, i32
  }
}

module attributes {stable_mosaic.version = 11 : i64} {
  func.func @fused_unet_kernel(%arg0: i32, %arg1: memref<8x128xf32, #tpu.memory_space<vmem>>, %arg2: memref<8x128xf32, #tpu.memory_space<vmem>>, %arg3: memref<8x128xf32, #tpu.memory_space<vmem>>, %arg4: memref<1x3072xf32, #tpu.memory_space<vmem>>, %arg5: memref<128x128xbf16, #tpu.memory_space<vmem>>, %arg6: memref<128x128xbf16, #tpu.memory_space<vmem>>, %arg7: memref<256x128xbf16, #tpu.memory_space<vmem>>, %arg8: memref<128x128xbf16, #tpu.memory_space<vmem>>, %arg9: memref<128x128xbf16, #tpu.memory_space<vmem>>, %arg10: memref<256x128xbf16, #tpu.memory_space<vmem>>, %arg11: memref<128x128xbf16, #tpu.memory_space<vmem>>, %arg12: memref<128x128xbf16, #tpu.memory_space<vmem>>, %arg13: memref<256x128xbf16, #tpu.memory_space<vmem>>, %arg14: memref<128x128xbf16, #tpu.memory_space<vmem>>, %arg15: memref<128x128xbf16, #tpu.memory_space<vmem>>, %arg16: memref<256x128xbf16, #tpu.memory_space<vmem>>, %arg17: memref<128x128xbf16, #tpu.memory_space<vmem>>, %arg18: memref<128x128xbf16, #tpu.memory_space<vmem>>, %arg19: memref<8x128xf32, #tpu.memory_space<vmem>>) attributes {dimension_semantics = [#tpu.dimension_semantics<parallel>], iteration_bounds = array<i64: 1>, scalar_prefetch = 0 : i64, scratch_operands = 0 : i64, tpu.core_type = #tpu.core_type<tc>, window_params = [{transform_indices = @transform_0, window_bounds = array<i64: 8, 128>}, {transform_indices = @transform_1, window_bounds = array<i64: 8, 128>}, {transform_indices = @transform_2, window_bounds = array<i64: 8, 128>}, {pipeline_mode = #tpu.pipeline_mode<synchronous>, transform_indices = @transform_3, window_bounds = array<i64: 1, 3072>}, {pipeline_mode = #tpu.pipeline_mode<synchronous>, transform_indices = @transform_4, window_bounds = array<i64: 128, 128>}, {pipeline_mode = #tpu.pipeline_mode<synchronous>, transform_indices = @transform_5, window_bounds = array<i64: 128, 128>}, {pipeline_mode = #tpu.pipeline_mode<synchronous>, transform_indices = @transform_6, window_bounds = array<i64: 256, 128>}, {pipeline_mode = #tpu.pipeline_mode<synchronous>, transform_indices = @transform_7, window_bounds = array<i64: 128, 128>}, {pipeline_mode = #tpu.pipeline_mode<synchronous>, transform_indices = @transform_8, window_bounds = array<i64: 128, 128>}, {pipeline_mode = #tpu.pipeline_mode<synchronous>, transform_indices = @transform_9, window_bounds = array<i64: 256, 128>}, {pipeline_mode = #tpu.pipeline_mode<synchronous>, transform_indices = @transform_10, window_bounds = array<i64: 128, 128>}, {pipeline_mode = #tpu.pipeline_mode<synchronous>, transform_indices = @transform_11, window_bounds = array<i64: 128, 128>}, {pipeline_mode = #tpu.pipeline_mode<synchronous>, transform_indices = @transform_12, window_bounds = array<i64: 256, 128>}, {pipeline_mode = #tpu.pipeline_mode<synchronous>, transform_indices = @transform_13, window_bounds = array<i64: 128, 128>}, {pipeline_mode = #tpu.pipeline_mode<synchronous>, transform_indices = @transform_14, window_bounds = array<i64: 128, 128>}, {pipeline_mode = #tpu.pipeline_mode<synchronous>, transform_indices = @transform_15, window_bounds = array<i64: 256, 128>}, {pipeline_mode = #tpu.pipeline_mode<synchronous>, transform_indices = @transform_16, window_bounds = array<i64: 128, 128>}, {pipeline_mode = #tpu.pipeline_mode<synchronous>, transform_indices = @transform_17, window_bounds = array<i64: 128, 128>}, {transform_indices = @transform_18, window_bounds = array<i64: 8, 128>}]} {
    %0 = tpu.iota {dimensions = array<i32: 1>} : vector<8x128xi32>
    %1 = arith.sitofp %0 : vector<8x128xi32> to vector<8x128xf32>
    %cst = arith.constant 3.200000e+01 : f32
    %2 = vector.broadcast %cst : f32 to vector<8x128xf32>
    %3 = arith.cmpf olt, %1, %2 : vector<8x128xf32>
    %cst_0 = arith.constant 3.200000e+01 : f32
    %4 = vector.broadcast %cst_0 : f32 to vector<8x128xf32>
    %5 = arith.subf %1, %4 : vector<8x128xf32>
    %6 = arith.select %3, %1, %5 : vector<8x128xi1>, vector<8x128xf32>
    %cst_1 = arith.constant 1.000000e+04 : f32
    %7 = math.log %cst_1 : f32
    %cst_2 = arith.constant 0.000000e+00 : f32
    %8 = arith.subf %cst_2, %7 : f32
    %cst_3 = arith.constant 3.200000e+01 : f32
    %9 = arith.divf %8, %cst_3 : f32
    %10 = vector.broadcast %9 : f32 to vector<8x128xf32>
    %11 = arith.mulf %10, %6 : vector<8x128xf32>
    %12 = math.exp %11 : vector<8x128xf32>
    %c0 = arith.constant 0 : index
    %c0_4 = arith.constant 0 : index
    %13 = vector.load %arg1[%c0, %c0_4] : memref<8x128xf32, #tpu.memory_space<vmem>>, vector<8x128xf32>
    %14 = arith.mulf %13, %12 : vector<8x128xf32>
    %cst_5 = arith.constant 3.200000e+01 : f32
    %15 = vector.broadcast %cst_5 : f32 to vector<8x128xf32>
    %16 = arith.cmpf olt, %1, %15 : vector<8x128xf32>
    %17 = math.cos %14 : vector<8x128xf32>
    %18 = math.sin %14 : vector<8x128xf32>
    %19 = arith.select %16, %17, %18 : vector<8x128xi1>, vector<8x128xf32>
    %cst_6 = arith.constant 6.400000e+01 : f32
    %20 = vector.broadcast %cst_6 : f32 to vector<8x128xf32>
    %21 = arith.cmpf olt, %1, %20 : vector<8x128xf32>
    %cst_7 = arith.constant 0.000000e+00 : f32
    %22 = vector.broadcast %cst_7 : f32 to vector<8x128xf32>
    %23 = arith.select %21, %19, %22 : vector<8x128xi1>, vector<8x128xf32>
    %c0_8 = arith.constant 0 : index
    %c0_9 = arith.constant 0 : index
    %24 = vector.load %arg4[%c0_8, %c0_9] : memref<1x3072xf32, #tpu.memory_space<vmem>>, vector<1x128xf32>
    %c0_10 = arith.constant 0 : index
    %c128 = arith.constant 128 : index
    %25 = vector.load %arg4[%c0_10, %c128] : memref<1x3072xf32, #tpu.memory_space<vmem>>, vector<1x128xf32>
    %c0_11 = arith.constant 0 : index
    %c256 = arith.constant 256 : index
    %26 = vector.load %arg4[%c0_11, %c256] : memref<1x3072xf32, #tpu.memory_space<vmem>>, vector<1x128xf32>
    %c0_12 = arith.constant 0 : index
    %c0_13 = arith.constant 0 : index
    %27 = vector.load %arg2[%c0_12, %c0_13] : memref<8x128xf32, #tpu.memory_space<vmem>>, vector<8x128xf32>
    %c0_14 = arith.constant 0 : index
    %c0_15 = arith.constant 0 : index
    %28 = vector.load %arg5[%c0_14, %c0_15] : memref<128x128xbf16, #tpu.memory_space<vmem>>, vector<128x128xbf16>
    %29 = arith.truncf %27 : vector<8x128xf32> to vector<8x128xbf16>
    %cst_16 = arith.constant dense<0.000000e+00> : vector<8x128xf32>
    %30 = tpu.matmul %29, %28, %cst_16 {dimension_numbers = #tpu.dot_dimension_numbers<[1], [0], [0], [1], [0, 0, 1, 1], [], []>} : vector<8x128xbf16>, vector<128x128xbf16>, vector<8x128xf32> -> vector<8x128xf32>
    %31 = vector.broadcast %24 : vector<1x128xf32> to vector<8x128xf32>
    %32 = arith.addf %30, %31 : vector<8x128xf32>
    %cst_17 = arith.constant dense<0.000000e+00> : vector<8xf32>
    %33 = vector.multi_reduction <add>, %32, %cst_17 [1] : vector<8x128xf32> to vector<8xf32>
    %34 = vector.shape_cast %33 : vector<8xf32> to vector<8x1xf32>
    %cst_18 = arith.constant 1.280000e+02 : f32
    %35 = vector.broadcast %cst_18 : f32 to vector<8x1xf32>
    %36 = arith.divf %34, %35 : vector<8x1xf32>
    %37 = vector.broadcast %36 : vector<8x1xf32> to vector<8x128xf32>
    %38 = arith.subf %32, %37 : vector<8x128xf32>
    %39 = arith.mulf %38, %38 : vector<8x128xf32>
    %cst_19 = arith.constant dense<0.000000e+00> : vector<8xf32>
    %40 = vector.multi_reduction <add>, %39, %cst_19 [1] : vector<8x128xf32> to vector<8xf32>
    %41 = vector.shape_cast %40 : vector<8xf32> to vector<8x1xf32>
    %cst_20 = arith.constant 1.280000e+02 : f32
    %42 = vector.broadcast %cst_20 : f32 to vector<8x1xf32>
    %43 = arith.divf %41, %42 : vector<8x1xf32>
    %cst_21 = arith.constant 9.99999974E-6 : f32
    %44 = vector.broadcast %cst_21 : f32 to vector<8x1xf32>
    %45 = arith.addf %43, %44 : vector<8x1xf32>
    %46 = math.rsqrt %45 : vector<8x1xf32>
    %47 = vector.broadcast %46 : vector<8x1xf32> to vector<8x128xf32>
    %48 = arith.mulf %38, %47 : vector<8x128xf32>
    %49 = vector.broadcast %25 : vector<1x128xf32> to vector<8x128xf32>
    %50 = arith.mulf %48, %49 : vector<8x128xf32>
    %51 = vector.broadcast %26 : vector<1x128xf32> to vector<8x128xf32>
    %52 = arith.addf %50, %51 : vector<8x128xf32>
    %53 = arith.negf %52 : vector<8x128xf32>
    %54 = math.exp %53 : vector<8x128xf32>
    %cst_22 = arith.constant 1.000000e+00 : f32
    %55 = vector.broadcast %cst_22 : f32 to vector<8x128xf32>
    %56 = arith.addf %55, %54 : vector<8x128xf32>
    %57 = arith.divf %55, %56 : vector<8x128xf32>
    %58 = arith.mulf %52, %57 : vector<8x128xf32>
    %c0_23 = arith.constant 0 : index
    %c0_24 = arith.constant 0 : index
    %59 = vector.load %arg3[%c0_23, %c0_24] : memref<8x128xf32, #tpu.memory_space<vmem>>, vector<8x128xf32>
    %c0_25 = arith.constant 0 : index
    %c384 = arith.constant 384 : index
    %60 = vector.load %arg4[%c0_25, %c384] : memref<1x3072xf32, #tpu.memory_space<vmem>>, vector<1x128xf32>
    %c0_26 = arith.constant 0 : index
    %c512 = arith.constant 512 : index
    %61 = vector.load %arg4[%c0_26, %c512] : memref<1x3072xf32, #tpu.memory_space<vmem>>, vector<1x128xf32>
    %c0_27 = arith.constant 0 : index
    %c640 = arith.constant 640 : index
    %62 = vector.load %arg4[%c0_27, %c640] : memref<1x3072xf32, #tpu.memory_space<vmem>>, vector<1x128xf32>
    %c0_28 = arith.constant 0 : index
    %c768 = arith.constant 768 : index
    %63 = vector.load %arg4[%c0_28, %c768] : memref<1x3072xf32, #tpu.memory_space<vmem>>, vector<1x128xf32>
    %c0_29 = arith.constant 0 : index
    %c896 = arith.constant 896 : index
    %64 = vector.load %arg4[%c0_29, %c896] : memref<1x3072xf32, #tpu.memory_space<vmem>>, vector<1x128xf32>
    %c0_30 = arith.constant 0 : index
    %c0_31 = arith.constant 0 : index
    %65 = vector.load %arg6[%c0_30, %c0_31] : memref<128x128xbf16, #tpu.memory_space<vmem>>, vector<128x128xbf16>
    %66 = arith.truncf %23 : vector<8x128xf32> to vector<8x128xbf16>
    %cst_32 = arith.constant dense<0.000000e+00> : vector<8x128xf32>
    %67 = tpu.matmul %66, %65, %cst_32 {dimension_numbers = #tpu.dot_dimension_numbers<[1], [0], [0], [1], [0, 0, 1, 1], [], []>} : vector<8x128xbf16>, vector<128x128xbf16>, vector<8x128xf32> -> vector<8x128xf32>
    %68 = vector.broadcast %60 : vector<1x128xf32> to vector<8x128xf32>
    %69 = arith.addf %67, %68 : vector<8x128xf32>
    %70 = arith.negf %69 : vector<8x128xf32>
    %71 = math.exp %70 : vector<8x128xf32>
    %cst_33 = arith.constant 1.000000e+00 : f32
    %72 = vector.broadcast %cst_33 : f32 to vector<8x128xf32>
    %73 = arith.addf %72, %71 : vector<8x128xf32>
    %74 = arith.divf %72, %73 : vector<8x128xf32>
    %75 = arith.mulf %69, %74 : vector<8x128xf32>
    %76 = tpu.concatenate %75, %59 in 1 : vector<8x128xf32>, vector<8x128xf32> -> vector<8x256xf32>
    %c0_34 = arith.constant 0 : index
    %c0_35 = arith.constant 0 : index
    %77 = vector.load %arg7[%c0_34, %c0_35] : memref<256x128xbf16, #tpu.memory_space<vmem>>, vector<256x128xbf16>
    %78 = arith.truncf %76 : vector<8x256xf32> to vector<8x256xbf16>
    %cst_36 = arith.constant dense<0.000000e+00> : vector<8x128xf32>
    %79 = tpu.matmul %78, %77, %cst_36 {dimension_numbers = #tpu.dot_dimension_numbers<[1], [0], [0], [1], [0, 0, 1, 1], [], []>} : vector<8x256xbf16>, vector<256x128xbf16>, vector<8x128xf32> -> vector<8x128xf32>
    %80 = arith.addf %58, %79 : vector<8x128xf32>
    %81 = vector.broadcast %61 : vector<1x128xf32> to vector<8x128xf32>
    %82 = arith.addf %80, %81 : vector<8x128xf32>
    %c0_37 = arith.constant 0 : index
    %c0_38 = arith.constant 0 : index
    %83 = vector.load %arg8[%c0_37, %c0_38] : memref<128x128xbf16, #tpu.memory_space<vmem>>, vector<128x128xbf16>
    %84 = arith.truncf %82 : vector<8x128xf32> to vector<8x128xbf16>
    %cst_39 = arith.constant dense<0.000000e+00> : vector<8x128xf32>
    %85 = tpu.matmul %84, %83, %cst_39 {dimension_numbers = #tpu.dot_dimension_numbers<[1], [0], [0], [1], [0, 0, 1, 1], [], []>} : vector<8x128xbf16>, vector<128x128xbf16>, vector<8x128xf32> -> vector<8x128xf32>
    %86 = vector.broadcast %62 : vector<1x128xf32> to vector<8x128xf32>
    %87 = arith.addf %85, %86 : vector<8x128xf32>
    %cst_40 = arith.constant dense<0.000000e+00> : vector<8xf32>
    %88 = vector.multi_reduction <add>, %87, %cst_40 [1] : vector<8x128xf32> to vector<8xf32>
    %89 = vector.shape_cast %88 : vector<8xf32> to vector<8x1xf32>
    %cst_41 = arith.constant 1.562500e-02 : f32
    %90 = vector.broadcast %cst_41 : f32 to vector<8x1xf32>
    %91 = arith.mulf %89, %90 : vector<8x1xf32>
    %c64_i32 = arith.constant 64 : i32
    %92 = vector.broadcast %c64_i32 : i32 to vector<8x128xi32>
    %93 = arith.cmpi slt, %0, %92 : vector<8x128xi32>
    %94 = vector.broadcast %91 : vector<8x1xf32> to vector<8x128xf32>
    %95 = arith.subf %87, %94 : vector<8x128xf32>
    %cst_42 = arith.constant 0.000000e+00 : f32
    %96 = vector.broadcast %cst_42 : f32 to vector<8x128xf32>
    %97 = arith.select %93, %95, %96 : vector<8x128xi1>, vector<8x128xf32>
    %98 = arith.mulf %97, %97 : vector<8x128xf32>
    %cst_43 = arith.constant dense<0.000000e+00> : vector<8xf32>
    %99 = vector.multi_reduction <add>, %98, %cst_43 [1] : vector<8x128xf32> to vector<8xf32>
    %100 = vector.shape_cast %99 : vector<8xf32> to vector<8x1xf32>
    %cst_44 = arith.constant 1.562500e-02 : f32
    %101 = vector.broadcast %cst_44 : f32 to vector<8x1xf32>
    %102 = arith.mulf %100, %101 : vector<8x1xf32>
    %cst_45 = arith.constant 9.99999974E-6 : f32
    %103 = vector.broadcast %cst_45 : f32 to vector<8x1xf32>
    %104 = arith.addf %102, %103 : vector<8x1xf32>
    %105 = math.rsqrt %104 : vector<8x1xf32>
    %106 = vector.broadcast %105 : vector<8x1xf32> to vector<8x128xf32>
    %107 = arith.mulf %97, %106 : vector<8x128xf32>
    %108 = vector.broadcast %63 : vector<1x128xf32> to vector<8x128xf32>
    %109 = arith.mulf %107, %108 : vector<8x128xf32>
    %110 = vector.broadcast %64 : vector<1x128xf32> to vector<8x128xf32>
    %111 = arith.addf %109, %110 : vector<8x128xf32>
    %112 = arith.negf %111 : vector<8x128xf32>
    %113 = math.exp %112 : vector<8x128xf32>
    %cst_46 = arith.constant 1.000000e+00 : f32
    %114 = vector.broadcast %cst_46 : f32 to vector<8x128xf32>
    %115 = arith.addf %114, %113 : vector<8x128xf32>
    %116 = arith.divf %114, %115 : vector<8x128xf32>
    %117 = arith.mulf %111, %116 : vector<8x128xf32>
    %c0_47 = arith.constant 0 : index
    %c1024 = arith.constant 1024 : index
    %118 = vector.load %arg4[%c0_47, %c1024] : memref<1x3072xf32, #tpu.memory_space<vmem>>, vector<1x128xf32>
    %c0_48 = arith.constant 0 : index
    %c1152 = arith.constant 1152 : index
    %119 = vector.load %arg4[%c0_48, %c1152] : memref<1x3072xf32, #tpu.memory_space<vmem>>, vector<1x128xf32>
    %c0_49 = arith.constant 0 : index
    %c1280 = arith.constant 1280 : index
    %120 = vector.load %arg4[%c0_49, %c1280] : memref<1x3072xf32, #tpu.memory_space<vmem>>, vector<1x128xf32>
    %c0_50 = arith.constant 0 : index
    %c1408 = arith.constant 1408 : index
    %121 = vector.load %arg4[%c0_50, %c1408] : memref<1x3072xf32, #tpu.memory_space<vmem>>, vector<1x128xf32>
    %c0_51 = arith.constant 0 : index
    %c1536 = arith.constant 1536 : index
    %122 = vector.load %arg4[%c0_51, %c1536] : memref<1x3072xf32, #tpu.memory_space<vmem>>, vector<1x128xf32>
    %c0_52 = arith.constant 0 : index
    %c0_53 = arith.constant 0 : index
    %123 = vector.load %arg9[%c0_52, %c0_53] : memref<128x128xbf16, #tpu.memory_space<vmem>>, vector<128x128xbf16>
    %124 = arith.truncf %23 : vector<8x128xf32> to vector<8x128xbf16>
    %cst_54 = arith.constant dense<0.000000e+00> : vector<8x128xf32>
    %125 = tpu.matmul %124, %123, %cst_54 {dimension_numbers = #tpu.dot_dimension_numbers<[1], [0], [0], [1], [0, 0, 1, 1], [], []>} : vector<8x128xbf16>, vector<128x128xbf16>, vector<8x128xf32> -> vector<8x128xf32>
    %126 = vector.broadcast %118 : vector<1x128xf32> to vector<8x128xf32>
    %127 = arith.addf %125, %126 : vector<8x128xf32>
    %128 = arith.negf %127 : vector<8x128xf32>
    %129 = math.exp %128 : vector<8x128xf32>
    %cst_55 = arith.constant 1.000000e+00 : f32
    %130 = vector.broadcast %cst_55 : f32 to vector<8x128xf32>
    %131 = arith.addf %130, %129 : vector<8x128xf32>
    %132 = arith.divf %130, %131 : vector<8x128xf32>
    %133 = arith.mulf %127, %132 : vector<8x128xf32>
    %134 = tpu.concatenate %133, %59 in 1 : vector<8x128xf32>, vector<8x128xf32> -> vector<8x256xf32>
    %c0_56 = arith.constant 0 : index
    %c0_57 = arith.constant 0 : index
    %135 = vector.load %arg10[%c0_56, %c0_57] : memref<256x128xbf16, #tpu.memory_space<vmem>>, vector<256x128xbf16>
    %136 = arith.truncf %134 : vector<8x256xf32> to vector<8x256xbf16>
    %cst_58 = arith.constant dense<0.000000e+00> : vector<8x128xf32>
    %137 = tpu.matmul %136, %135, %cst_58 {dimension_numbers = #tpu.dot_dimension_numbers<[1], [0], [0], [1], [0, 0, 1, 1], [], []>} : vector<8x256xbf16>, vector<256x128xbf16>, vector<8x128xf32> -> vector<8x128xf32>
    %138 = arith.addf %117, %137 : vector<8x128xf32>
    %139 = vector.broadcast %119 : vector<1x128xf32> to vector<8x128xf32>
    %140 = arith.addf %138, %139 : vector<8x128xf32>
    %c0_59 = arith.constant 0 : index
    %c0_60 = arith.constant 0 : index
    %141 = vector.load %arg11[%c0_59, %c0_60] : memref<128x128xbf16, #tpu.memory_space<vmem>>, vector<128x128xbf16>
    %142 = arith.truncf %140 : vector<8x128xf32> to vector<8x128xbf16>
    %cst_61 = arith.constant dense<0.000000e+00> : vector<8x128xf32>
    %143 = tpu.matmul %142, %141, %cst_61 {dimension_numbers = #tpu.dot_dimension_numbers<[1], [0], [0], [1], [0, 0, 1, 1], [], []>} : vector<8x128xbf16>, vector<128x128xbf16>, vector<8x128xf32> -> vector<8x128xf32>
    %144 = vector.broadcast %120 : vector<1x128xf32> to vector<8x128xf32>
    %145 = arith.addf %143, %144 : vector<8x128xf32>
    %cst_62 = arith.constant dense<0.000000e+00> : vector<8xf32>
    %146 = vector.multi_reduction <add>, %145, %cst_62 [1] : vector<8x128xf32> to vector<8xf32>
    %147 = vector.shape_cast %146 : vector<8xf32> to vector<8x1xf32>
    %cst_63 = arith.constant 3.125000e-02 : f32
    %148 = vector.broadcast %cst_63 : f32 to vector<8x1xf32>
    %149 = arith.mulf %147, %148 : vector<8x1xf32>
    %c32_i32 = arith.constant 32 : i32
    %150 = vector.broadcast %c32_i32 : i32 to vector<8x128xi32>
    %151 = arith.cmpi slt, %0, %150 : vector<8x128xi32>
    %152 = vector.broadcast %149 : vector<8x1xf32> to vector<8x128xf32>
    %153 = arith.subf %145, %152 : vector<8x128xf32>
    %cst_64 = arith.constant 0.000000e+00 : f32
    %154 = vector.broadcast %cst_64 : f32 to vector<8x128xf32>
    %155 = arith.select %151, %153, %154 : vector<8x128xi1>, vector<8x128xf32>
    %156 = arith.mulf %155, %155 : vector<8x128xf32>
    %cst_65 = arith.constant dense<0.000000e+00> : vector<8xf32>
    %157 = vector.multi_reduction <add>, %156, %cst_65 [1] : vector<8x128xf32> to vector<8xf32>
    %158 = vector.shape_cast %157 : vector<8xf32> to vector<8x1xf32>
    %cst_66 = arith.constant 3.125000e-02 : f32
    %159 = vector.broadcast %cst_66 : f32 to vector<8x1xf32>
    %160 = arith.mulf %158, %159 : vector<8x1xf32>
    %cst_67 = arith.constant 9.99999974E-6 : f32
    %161 = vector.broadcast %cst_67 : f32 to vector<8x1xf32>
    %162 = arith.addf %160, %161 : vector<8x1xf32>
    %163 = math.rsqrt %162 : vector<8x1xf32>
    %164 = vector.broadcast %163 : vector<8x1xf32> to vector<8x128xf32>
    %165 = arith.mulf %155, %164 : vector<8x128xf32>
    %166 = vector.broadcast %121 : vector<1x128xf32> to vector<8x128xf32>
    %167 = arith.mulf %165, %166 : vector<8x128xf32>
    %168 = vector.broadcast %122 : vector<1x128xf32> to vector<8x128xf32>
    %169 = arith.addf %167, %168 : vector<8x128xf32>
    %170 = arith.negf %169 : vector<8x128xf32>
    %171 = math.exp %170 : vector<8x128xf32>
    %cst_68 = arith.constant 1.000000e+00 : f32
    %172 = vector.broadcast %cst_68 : f32 to vector<8x128xf32>
    %173 = arith.addf %172, %171 : vector<8x128xf32>
    %174 = arith.divf %172, %173 : vector<8x128xf32>
    %175 = arith.mulf %169, %174 : vector<8x128xf32>
    %c0_69 = arith.constant 0 : index
    %c1664 = arith.constant 1664 : index
    %176 = vector.load %arg4[%c0_69, %c1664] : memref<1x3072xf32, #tpu.memory_space<vmem>>, vector<1x128xf32>
    %c0_70 = arith.constant 0 : index
    %c1792 = arith.constant 1792 : index
    %177 = vector.load %arg4[%c0_70, %c1792] : memref<1x3072xf32, #tpu.memory_space<vmem>>, vector<1x128xf32>
    %c0_71 = arith.constant 0 : index
    %c1920 = arith.constant 1920 : index
    %178 = vector.load %arg4[%c0_71, %c1920] : memref<1x3072xf32, #tpu.memory_space<vmem>>, vector<1x128xf32>
    %c0_72 = arith.constant 0 : index
    %c2048 = arith.constant 2048 : index
    %179 = vector.load %arg4[%c0_72, %c2048] : memref<1x3072xf32, #tpu.memory_space<vmem>>, vector<1x128xf32>
    %c0_73 = arith.constant 0 : index
    %c2176 = arith.constant 2176 : index
    %180 = vector.load %arg4[%c0_73, %c2176] : memref<1x3072xf32, #tpu.memory_space<vmem>>, vector<1x128xf32>
    %c0_74 = arith.constant 0 : index
    %c0_75 = arith.constant 0 : index
    %181 = vector.load %arg12[%c0_74, %c0_75] : memref<128x128xbf16, #tpu.memory_space<vmem>>, vector<128x128xbf16>
    %182 = arith.truncf %23 : vector<8x128xf32> to vector<8x128xbf16>
    %cst_76 = arith.constant dense<0.000000e+00> : vector<8x128xf32>
    %183 = tpu.matmul %182, %181, %cst_76 {dimension_numbers = #tpu.dot_dimension_numbers<[1], [0], [0], [1], [0, 0, 1, 1], [], []>} : vector<8x128xbf16>, vector<128x128xbf16>, vector<8x128xf32> -> vector<8x128xf32>
    %184 = vector.broadcast %176 : vector<1x128xf32> to vector<8x128xf32>
    %185 = arith.addf %183, %184 : vector<8x128xf32>
    %186 = arith.negf %185 : vector<8x128xf32>
    %187 = math.exp %186 : vector<8x128xf32>
    %cst_77 = arith.constant 1.000000e+00 : f32
    %188 = vector.broadcast %cst_77 : f32 to vector<8x128xf32>
    %189 = arith.addf %188, %187 : vector<8x128xf32>
    %190 = arith.divf %188, %189 : vector<8x128xf32>
    %191 = arith.mulf %185, %190 : vector<8x128xf32>
    %192 = tpu.concatenate %191, %59 in 1 : vector<8x128xf32>, vector<8x128xf32> -> vector<8x256xf32>
    %c0_78 = arith.constant 0 : index
    %c0_79 = arith.constant 0 : index
    %193 = vector.load %arg13[%c0_78, %c0_79] : memref<256x128xbf16, #tpu.memory_space<vmem>>, vector<256x128xbf16>
    %194 = arith.truncf %192 : vector<8x256xf32> to vector<8x256xbf16>
    %cst_80 = arith.constant dense<0.000000e+00> : vector<8x128xf32>
    %195 = tpu.matmul %194, %193, %cst_80 {dimension_numbers = #tpu.dot_dimension_numbers<[1], [0], [0], [1], [0, 0, 1, 1], [], []>} : vector<8x256xbf16>, vector<256x128xbf16>, vector<8x128xf32> -> vector<8x128xf32>
    %196 = arith.addf %175, %195 : vector<8x128xf32>
    %197 = vector.broadcast %177 : vector<1x128xf32> to vector<8x128xf32>
    %198 = arith.addf %196, %197 : vector<8x128xf32>
    %c0_81 = arith.constant 0 : index
    %c0_82 = arith.constant 0 : index
    %199 = vector.load %arg14[%c0_81, %c0_82] : memref<128x128xbf16, #tpu.memory_space<vmem>>, vector<128x128xbf16>
    %200 = arith.truncf %198 : vector<8x128xf32> to vector<8x128xbf16>
    %cst_83 = arith.constant dense<0.000000e+00> : vector<8x128xf32>
    %201 = tpu.matmul %200, %199, %cst_83 {dimension_numbers = #tpu.dot_dimension_numbers<[1], [0], [0], [1], [0, 0, 1, 1], [], []>} : vector<8x128xbf16>, vector<128x128xbf16>, vector<8x128xf32> -> vector<8x128xf32>
    %202 = vector.broadcast %178 : vector<1x128xf32> to vector<8x128xf32>
    %203 = arith.addf %201, %202 : vector<8x128xf32>
    %cst_84 = arith.constant dense<0.000000e+00> : vector<8xf32>
    %204 = vector.multi_reduction <add>, %203, %cst_84 [1] : vector<8x128xf32> to vector<8xf32>
    %205 = vector.shape_cast %204 : vector<8xf32> to vector<8x1xf32>
    %cst_85 = arith.constant 1.562500e-02 : f32
    %206 = vector.broadcast %cst_85 : f32 to vector<8x1xf32>
    %207 = arith.mulf %205, %206 : vector<8x1xf32>
    %c64_i32_86 = arith.constant 64 : i32
    %208 = vector.broadcast %c64_i32_86 : i32 to vector<8x128xi32>
    %209 = arith.cmpi slt, %0, %208 : vector<8x128xi32>
    %210 = vector.broadcast %207 : vector<8x1xf32> to vector<8x128xf32>
    %211 = arith.subf %203, %210 : vector<8x128xf32>
    %cst_87 = arith.constant 0.000000e+00 : f32
    %212 = vector.broadcast %cst_87 : f32 to vector<8x128xf32>
    %213 = arith.select %209, %211, %212 : vector<8x128xi1>, vector<8x128xf32>
    %214 = arith.mulf %213, %213 : vector<8x128xf32>
    %cst_88 = arith.constant dense<0.000000e+00> : vector<8xf32>
    %215 = vector.multi_reduction <add>, %214, %cst_88 [1] : vector<8x128xf32> to vector<8xf32>
    %216 = vector.shape_cast %215 : vector<8xf32> to vector<8x1xf32>
    %cst_89 = arith.constant 1.562500e-02 : f32
    %217 = vector.broadcast %cst_89 : f32 to vector<8x1xf32>
    %218 = arith.mulf %216, %217 : vector<8x1xf32>
    %cst_90 = arith.constant 9.99999974E-6 : f32
    %219 = vector.broadcast %cst_90 : f32 to vector<8x1xf32>
    %220 = arith.addf %218, %219 : vector<8x1xf32>
    %221 = math.rsqrt %220 : vector<8x1xf32>
    %222 = vector.broadcast %221 : vector<8x1xf32> to vector<8x128xf32>
    %223 = arith.mulf %213, %222 : vector<8x128xf32>
    %224 = vector.broadcast %179 : vector<1x128xf32> to vector<8x128xf32>
    %225 = arith.mulf %223, %224 : vector<8x128xf32>
    %226 = vector.broadcast %180 : vector<1x128xf32> to vector<8x128xf32>
    %227 = arith.addf %225, %226 : vector<8x128xf32>
    %228 = arith.negf %227 : vector<8x128xf32>
    %229 = math.exp %228 : vector<8x128xf32>
    %cst_91 = arith.constant 1.000000e+00 : f32
    %230 = vector.broadcast %cst_91 : f32 to vector<8x128xf32>
    %231 = arith.addf %230, %229 : vector<8x128xf32>
    %232 = arith.divf %230, %231 : vector<8x128xf32>
    %233 = arith.mulf %227, %232 : vector<8x128xf32>
    %234 = arith.addf %233, %117 : vector<8x128xf32>
    %c0_92 = arith.constant 0 : index
    %c2304 = arith.constant 2304 : index
    %235 = vector.load %arg4[%c0_92, %c2304] : memref<1x3072xf32, #tpu.memory_space<vmem>>, vector<1x128xf32>
    %c0_93 = arith.constant 0 : index
    %c2432 = arith.constant 2432 : index
    %236 = vector.load %arg4[%c0_93, %c2432] : memref<1x3072xf32, #tpu.memory_space<vmem>>, vector<1x128xf32>
    %c0_94 = arith.constant 0 : index
    %c2560 = arith.constant 2560 : index
    %237 = vector.load %arg4[%c0_94, %c2560] : memref<1x3072xf32, #tpu.memory_space<vmem>>, vector<1x128xf32>
    %c0_95 = arith.constant 0 : index
    %c2688 = arith.constant 2688 : index
    %238 = vector.load %arg4[%c0_95, %c2688] : memref<1x3072xf32, #tpu.memory_space<vmem>>, vector<1x128xf32>
    %c0_96 = arith.constant 0 : index
    %c2816 = arith.constant 2816 : index
    %239 = vector.load %arg4[%c0_96, %c2816] : memref<1x3072xf32, #tpu.memory_space<vmem>>, vector<1x128xf32>
    %c0_97 = arith.constant 0 : index
    %c0_98 = arith.constant 0 : index
    %240 = vector.load %arg15[%c0_97, %c0_98] : memref<128x128xbf16, #tpu.memory_space<vmem>>, vector<128x128xbf16>
    %241 = arith.truncf %23 : vector<8x128xf32> to vector<8x128xbf16>
    %cst_99 = arith.constant dense<0.000000e+00> : vector<8x128xf32>
    %242 = tpu.matmul %241, %240, %cst_99 {dimension_numbers = #tpu.dot_dimension_numbers<[1], [0], [0], [1], [0, 0, 1, 1], [], []>} : vector<8x128xbf16>, vector<128x128xbf16>, vector<8x128xf32> -> vector<8x128xf32>
    %243 = vector.broadcast %235 : vector<1x128xf32> to vector<8x128xf32>
    %244 = arith.addf %242, %243 : vector<8x128xf32>
    %245 = arith.negf %244 : vector<8x128xf32>
    %246 = math.exp %245 : vector<8x128xf32>
    %cst_100 = arith.constant 1.000000e+00 : f32
    %247 = vector.broadcast %cst_100 : f32 to vector<8x128xf32>
    %248 = arith.addf %247, %246 : vector<8x128xf32>
    %249 = arith.divf %247, %248 : vector<8x128xf32>
    %250 = arith.mulf %244, %249 : vector<8x128xf32>
    %251 = tpu.concatenate %250, %59 in 1 : vector<8x128xf32>, vector<8x128xf32> -> vector<8x256xf32>
    %c0_101 = arith.constant 0 : index
    %c0_102 = arith.constant 0 : index
    %252 = vector.load %arg16[%c0_101, %c0_102] : memref<256x128xbf16, #tpu.memory_space<vmem>>, vector<256x128xbf16>
    %253 = arith.truncf %251 : vector<8x256xf32> to vector<8x256xbf16>
    %cst_103 = arith.constant dense<0.000000e+00> : vector<8x128xf32>
    %254 = tpu.matmul %253, %252, %cst_103 {dimension_numbers = #tpu.dot_dimension_numbers<[1], [0], [0], [1], [0, 0, 1, 1], [], []>} : vector<8x256xbf16>, vector<256x128xbf16>, vector<8x128xf32> -> vector<8x128xf32>
    %255 = arith.addf %234, %254 : vector<8x128xf32>
    %256 = vector.broadcast %236 : vector<1x128xf32> to vector<8x128xf32>
    %257 = arith.addf %255, %256 : vector<8x128xf32>
    %c0_104 = arith.constant 0 : index
    %c0_105 = arith.constant 0 : index
    %258 = vector.load %arg17[%c0_104, %c0_105] : memref<128x128xbf16, #tpu.memory_space<vmem>>, vector<128x128xbf16>
    %259 = arith.truncf %257 : vector<8x128xf32> to vector<8x128xbf16>
    %cst_106 = arith.constant dense<0.000000e+00> : vector<8x128xf32>
    %260 = tpu.matmul %259, %258, %cst_106 {dimension_numbers = #tpu.dot_dimension_numbers<[1], [0], [0], [1], [0, 0, 1, 1], [], []>} : vector<8x128xbf16>, vector<128x128xbf16>, vector<8x128xf32> -> vector<8x128xf32>
    %261 = vector.broadcast %237 : vector<1x128xf32> to vector<8x128xf32>
    %262 = arith.addf %260, %261 : vector<8x128xf32>
    %cst_107 = arith.constant dense<0.000000e+00> : vector<8xf32>
    %263 = vector.multi_reduction <add>, %262, %cst_107 [1] : vector<8x128xf32> to vector<8xf32>
    %264 = vector.shape_cast %263 : vector<8xf32> to vector<8x1xf32>
    %cst_108 = arith.constant 1.280000e+02 : f32
    %265 = vector.broadcast %cst_108 : f32 to vector<8x1xf32>
    %266 = arith.divf %264, %265 : vector<8x1xf32>
    %267 = vector.broadcast %266 : vector<8x1xf32> to vector<8x128xf32>
    %268 = arith.subf %262, %267 : vector<8x128xf32>
    %269 = arith.mulf %268, %268 : vector<8x128xf32>
    %cst_109 = arith.constant dense<0.000000e+00> : vector<8xf32>
    %270 = vector.multi_reduction <add>, %269, %cst_109 [1] : vector<8x128xf32> to vector<8xf32>
    %271 = vector.shape_cast %270 : vector<8xf32> to vector<8x1xf32>
    %cst_110 = arith.constant 1.280000e+02 : f32
    %272 = vector.broadcast %cst_110 : f32 to vector<8x1xf32>
    %273 = arith.divf %271, %272 : vector<8x1xf32>
    %cst_111 = arith.constant 9.99999974E-6 : f32
    %274 = vector.broadcast %cst_111 : f32 to vector<8x1xf32>
    %275 = arith.addf %273, %274 : vector<8x1xf32>
    %276 = math.rsqrt %275 : vector<8x1xf32>
    %277 = vector.broadcast %276 : vector<8x1xf32> to vector<8x128xf32>
    %278 = arith.mulf %268, %277 : vector<8x128xf32>
    %279 = vector.broadcast %238 : vector<1x128xf32> to vector<8x128xf32>
    %280 = arith.mulf %278, %279 : vector<8x128xf32>
    %281 = vector.broadcast %239 : vector<1x128xf32> to vector<8x128xf32>
    %282 = arith.addf %280, %281 : vector<8x128xf32>
    %283 = arith.negf %282 : vector<8x128xf32>
    %284 = math.exp %283 : vector<8x128xf32>
    %cst_112 = arith.constant 1.000000e+00 : f32
    %285 = vector.broadcast %cst_112 : f32 to vector<8x128xf32>
    %286 = arith.addf %285, %284 : vector<8x128xf32>
    %287 = arith.divf %285, %286 : vector<8x128xf32>
    %288 = arith.mulf %282, %287 : vector<8x128xf32>
    %289 = arith.addf %288, %58 : vector<8x128xf32>
    %c0_113 = arith.constant 0 : index
    %c2944 = arith.constant 2944 : index
    %290 = vector.load %arg4[%c0_113, %c2944] : memref<1x3072xf32, #tpu.memory_space<vmem>>, vector<1x128xf32>
    %c0_114 = arith.constant 0 : index
    %c0_115 = arith.constant 0 : index
    %291 = vector.load %arg18[%c0_114, %c0_115] : memref<128x128xbf16, #tpu.memory_space<vmem>>, vector<128x128xbf16>
    %292 = arith.truncf %289 : vector<8x128xf32> to vector<8x128xbf16>
    %cst_116 = arith.constant dense<0.000000e+00> : vector<8x128xf32>
    %293 = tpu.matmul %292, %291, %cst_116 {dimension_numbers = #tpu.dot_dimension_numbers<[1], [0], [0], [1], [0, 0, 1, 1], [], []>} : vector<8x128xbf16>, vector<128x128xbf16>, vector<8x128xf32> -> vector<8x128xf32>
    %294 = vector.broadcast %290 : vector<1x128xf32> to vector<8x128xf32>
    %295 = arith.addf %293, %294 : vector<8x128xf32>
    %c0_117 = arith.constant 0 : index
    %c0_118 = arith.constant 0 : index
    %296 = vector.load %arg19[%c0_117, %c0_118] : memref<8x128xf32, #tpu.memory_space<vmem>>, vector<8x128xf32>
    tpu.vector_store %arg19[%c0_117, %c0_118], %295 {strides = array<i32>} : memref<8x128xf32, #tpu.memory_space<vmem>>, vector<8x128xf32>,
    return
  }
  func.func @transform_0(%arg0: i32) -> (i32, i32) {
    %c0_i32 = arith.constant 0 : i32
    %c0_i32_0 = arith.constant 0 : i32
    return %arg0, %c0_i32 : i32, i32
  }
  func.func @transform_1(%arg0: i32) -> (i32, i32) {
    %c0_i32 = arith.constant 0 : i32
    %c0_i32_0 = arith.constant 0 : i32
    return %arg0, %c0_i32 : i32, i32
  }
  func.func @transform_2(%arg0: i32) -> (i32, i32) {
    %c0_i32 = arith.constant 0 : i32
    %c0_i32_0 = arith.constant 0 : i32
    return %arg0, %c0_i32 : i32, i32
  }
  func.func @transform_3(%arg0: i32) -> (i32, i32) {
    %c0_i32 = arith.constant 0 : i32
    %c0_i32_0 = arith.constant 0 : i32
    %c0_i32_1 = arith.constant 0 : i32
    return %c0_i32, %c0_i32_0 : i32, i32
  }
  func.func @transform_4(%arg0: i32) -> (i32, i32) {
    %c0_i32 = arith.constant 0 : i32
    %c0_i32_0 = arith.constant 0 : i32
    %c0_i32_1 = arith.constant 0 : i32
    return %c0_i32, %c0_i32_0 : i32, i32
  }
  func.func @transform_5(%arg0: i32) -> (i32, i32) {
    %c0_i32 = arith.constant 0 : i32
    %c0_i32_0 = arith.constant 0 : i32
    %c0_i32_1 = arith.constant 0 : i32
    return %c0_i32, %c0_i32_0 : i32, i32
  }
  func.func @transform_6(%arg0: i32) -> (i32, i32) {
    %c0_i32 = arith.constant 0 : i32
    %c0_i32_0 = arith.constant 0 : i32
    %c0_i32_1 = arith.constant 0 : i32
    return %c0_i32, %c0_i32_0 : i32, i32
  }
  func.func @transform_7(%arg0: i32) -> (i32, i32) {
    %c0_i32 = arith.constant 0 : i32
    %c0_i32_0 = arith.constant 0 : i32
    %c0_i32_1 = arith.constant 0 : i32
    return %c0_i32, %c0_i32_0 : i32, i32
  }
  func.func @transform_8(%arg0: i32) -> (i32, i32) {
    %c0_i32 = arith.constant 0 : i32
    %c0_i32_0 = arith.constant 0 : i32
    %c0_i32_1 = arith.constant 0 : i32
    return %c0_i32, %c0_i32_0 : i32, i32
  }
  func.func @transform_9(%arg0: i32) -> (i32, i32) {
    %c0_i32 = arith.constant 0 : i32
    %c0_i32_0 = arith.constant 0 : i32
    %c0_i32_1 = arith.constant 0 : i32
    return %c0_i32, %c0_i32_0 : i32, i32
  }
  func.func @transform_10(%arg0: i32) -> (i32, i32) {
    %c0_i32 = arith.constant 0 : i32
    %c0_i32_0 = arith.constant 0 : i32
    %c0_i32_1 = arith.constant 0 : i32
    return %c0_i32, %c0_i32_0 : i32, i32
  }
  func.func @transform_11(%arg0: i32) -> (i32, i32) {
    %c0_i32 = arith.constant 0 : i32
    %c0_i32_0 = arith.constant 0 : i32
    %c0_i32_1 = arith.constant 0 : i32
    return %c0_i32, %c0_i32_0 : i32, i32
  }
  func.func @transform_12(%arg0: i32) -> (i32, i32) {
    %c0_i32 = arith.constant 0 : i32
    %c0_i32_0 = arith.constant 0 : i32
    %c0_i32_1 = arith.constant 0 : i32
    return %c0_i32, %c0_i32_0 : i32, i32
  }
  func.func @transform_13(%arg0: i32) -> (i32, i32) {
    %c0_i32 = arith.constant 0 : i32
    %c0_i32_0 = arith.constant 0 : i32
    %c0_i32_1 = arith.constant 0 : i32
    return %c0_i32, %c0_i32_0 : i32, i32
  }
  func.func @transform_14(%arg0: i32) -> (i32, i32) {
    %c0_i32 = arith.constant 0 : i32
    %c0_i32_0 = arith.constant 0 : i32
    %c0_i32_1 = arith.constant 0 : i32
    return %c0_i32, %c0_i32_0 : i32, i32
  }
  func.func @transform_15(%arg0: i32) -> (i32, i32) {
    %c0_i32 = arith.constant 0 : i32
    %c0_i32_0 = arith.constant 0 : i32
    %c0_i32_1 = arith.constant 0 : i32
    return %c0_i32, %c0_i32_0 : i32, i32
  }
  func.func @transform_16(%arg0: i32) -> (i32, i32) {
    %c0_i32 = arith.constant 0 : i32
    %c0_i32_0 = arith.constant 0 : i32
    %c0_i32_1 = arith.constant 0 : i32
    return %c0_i32, %c0_i32_0 : i32, i32
  }
  func.func @transform_17(%arg0: i32) -> (i32, i32) {
    %c0_i32 = arith.constant 0 : i32
    %c0_i32_0 = arith.constant 0 : i32
    %c0_i32_1 = arith.constant 0 : i32
    return %c0_i32, %c0_i32_0 : i32, i32
  }
  func.func @transform_18(%arg0: i32) -> (i32, i32) {
    %c0_i32 = arith.constant 0 : i32
    %c0_i32_0 = arith.constant 0 : i32
    return %arg0, %c0_i32 : i32, i32
  }
}

</mosaic_0001>

<bundles_post_ra>
// kernel: tpu_custom_call.1
= control target key start
LH: loop header
LB: loop body
LE: loop exit
PB: predicated region body
PF: predicated region fallthrough
CT: control target
= control target key end

     0   :  { %s4439_s0 = inlined_call_operand.hbm [shape: f32[8,128], index: 0, kind: input, shape index: {}]   ;;  %s4440_s1 = inlined_call_operand.hbm [shape: f32[8,128], index: 1, kind: input, shape index: {}]   ;;  %s4441_s2 = inlined_call_operand.hbm [shape: f32[8,128], index: 2, kind: input, shape index: {}]   ;;  %s4442_s3 = inlined_call_operand.hbm [shape: f32[1,3072], index: 3, kind: input, shape index: {}]   ;;  %s4443_s4 = inlined_call_operand.hbm [shape: bf16[128,128], index: 4, kind: input, shape index: {}]   ;;  %s4444_s5 = inlined_call_operand.hbm [shape: bf16[128,128], index: 5, kind: input, shape index: {}]   ;;  %s4445_s6 = inlined_call_operand.hbm [shape: bf16[256,128], index: 6, kind: input, shape index: {}]   ;;  %s4446_s7 = inlined_call_operand.hbm [shape: bf16[128,128], index: 7, kind: input, shape index: {}]   ;;  %s4447_s8 = inlined_call_operand.hbm [shape: bf16[128,128], index: 8, kind: input, shape index: {}]   ;;  %s4448_s9 = inlined_call_operand.hbm [shape: bf16[256,128], index: 9, kind: input, shape index: {}]   ;;  %s4449_s10 = inlined_call_operand.hbm [shape: bf16[128,128], index: 10, kind: input, shape index: {}]   ;;  %s4450_s11 = inlined_call_operand.hbm [shape: bf16[128,128], index: 11, kind: input, shape index: {}]   ;;  %s4451_s12 = inlined_call_operand.hbm [shape: bf16[256,128], index: 12, kind: input, shape index: {}]   ;;  %s4452_s13 = inlined_call_operand.hbm [shape: bf16[128,128], index: 13, kind: input, shape index: {}]   ;;  %s4453_s14 = inlined_call_operand.hbm [shape: bf16[128,128], index: 14, kind: input, shape index: {}]   ;;  %s4454_s15 = inlined_call_operand.hbm [shape: bf16[256,128], index: 15, kind: input, shape index: {}]   ;;  %s4455_s16 = inlined_call_operand.hbm [shape: bf16[128,128], index: 16, kind: input, shape index: {}]   ;;  %s4456_s17 = inlined_call_operand.vmem [shape: bf16[128,128], index: 17, kind: input, shape index: {}]   ;;  %s4457_s18 = inlined_call_operand.hbm [shape: f32[8,128], index: 18, kind: output, shape index: {}]  }
   0x1   :  { %4461 = sst [smem:[#allocation40_spill]] %s4439_s0 }
   0x2   :  { %4462 = sst [smem:[#allocation41_spill]] %s4440_s1 }
   0x3   :  { %4463 = sst [smem:[#allocation42_spill]] %s4441_s2 }
   0x4   :  { %23 = vsyncpa [#allocation3], 0 }
   0x5   :  { %24 = vsyncpa [#allocation6], 0 }
   0x6   :  { %25 = vsyncpa [#allocation9], 0 }
   0x7   :  { %26 = vsyncpa [#allocation12], 0 }
   0x8   :  { %27 = vsyncpa [#allocation15], 0 }
   0x9   :  { %28 = vsyncpa [#allocation18], 0 }
   0xa   :  { %29 = vsyncpa [#allocation21], 0 }
   0xb   :  { %30 = vsyncpa [#allocation24], 0 }
   0xc   :  { %31 = vsyncpa [#allocation27], 0 }
   0xd   :  { %32 = vsyncpa [#allocation4], 0  ;;  %s3786_s27 = smov [#allocation5]   ;;  %s3787_s29 = smov [#allocation8]  }
   0xe   :  { %s49_s28 = sshll.u32 %s3786_s27, 4  ;;  %s69_s30 = sshll.u32 %s3787_s29, 4  ;;  %s50_s28 = int_to_ptr.vmem [resolvable:$true] %s49_s28  ;;  %s70_s30 = int_to_ptr.vmem [resolvable:$true] %s69_s30 }
   0xf   :  { %s4464_s1 = sld [smem:[#allocation41_spill]] }
  0x15   :  { %s3370_s20 = scalar_lea.hbm %s4464_s1, 128 }
  0x16   :  { %p3371_p0 = scmp.ne.s32.totalorder %s4464_s1, %s3370_s20  ;;  %p3374_p1 = scmp.lt.u32.totalorder %s3370_s20, %s4464_s1 }
  0x18   :  { %p3376_p2 = pnand %p3374_p1, %p3371_p0 }
  0x1a   :  { %3379 = shalt.err (!%p3376_p2)
}
  0x1b   :  { %s3380_s24 = scalar_lea.vmem %s50_s28, 128  ;;  %p3385_p4 = scmp.lt.s32.totalorder %s50_s28, %s50_s28 }
  0x1c   :  { %p3381_p3 = scmp.ne.s32.totalorder %s50_s28, %s3380_s24  ;;  %p3386_p5 = scmp.lt.s32.totalorder %s3380_s24, %s3380_s24 }
  0x1e   :  { %p3387_p6 = por %p3386_p5, %p3385_p4 }
  0x20   :  { %p3388_p7 = pnand %p3387_p6, %p3381_p3 }
  0x22   :  { %3391 = shalt.err (!%p3388_p7)
}
  0x23   :  { %52 = dma.hbm_to_vmem [thread:$0]  %s4464_s1, 128, %s50_s28, [#allocation6]  }
  0x24   :  { %s3392_s0 = scalar_lea.hbm %s4442_s3, 384 }
  0x25   :  { %p3393_p8 = scmp.ne.s32.totalorder %s4442_s3, %s3392_s0  ;;  %p3396_p9 = scmp.lt.u32.totalorder %s3392_s0, %s4442_s3 }
  0x27   :  { %p3398_p10 = pnand %p3396_p9, %p3393_p8 }
  0x29   :  { %3401 = shalt.err (!%p3398_p10)
}
  0x2a   :  { %s3402_s2 = scalar_lea.vmem %s70_s30, 384  ;;  %p3407_p12 = scmp.lt.s32.totalorder %s70_s30, %s70_s30 }
  0x2b   :  { %p3403_p11 = scmp.ne.s32.totalorder %s70_s30, %s3402_s2  ;;  %p3408_p13 = scmp.lt.s32.totalorder %s3402_s2, %s3402_s2 }
  0x2d   :  { %p3409_p0 = por %p3408_p13, %p3407_p12 }
  0x2f   :  { %p3410_p1 = pnand %p3409_p0, %p3403_p11 }
  0x31   :  { %3413 = shalt.err (!%p3410_p1)
}
  0x32   :  { %72 = dma.hbm_to_vmem [thread:$0]  %s4442_s3, 384, %s70_s30, [#allocation9]  }
  0x33   :  { %s3788_s23 = smov [#allocation11]   ;;  %s3789_s25 = smov [#allocation14]  }
  0x34   :  { %s90_s24 = sshll.u32 %s3788_s23, 4  ;;  %s114_s26 = sshll.u32 %s3789_s25, 4  ;;  %s91_s24 = int_to_ptr.vmem [resolvable:$true] %s90_s24  ;;  %s3933_s26 = int_to_ptr.vmem [resolvable:$true] %s114_s26 }
  0x35   :  { %s3414_s0 = scalar_lea.hbm %s4444_s5, 1024 }
  0x36   :  { %p3415_p2 = scmp.ne.s32.totalorder %s4444_s5, %s3414_s0  ;;  %p3418_p3 = scmp.lt.u32.totalorder %s3414_s0, %s4444_s5 }
  0x38   :  { %p3420_p4 = pnand %p3418_p3, %p3415_p2 }
  0x3a   :  { %3423 = shalt.err (!%p3420_p4)
}
  0x3b   :  { %s3424_s3 = scalar_lea.vmem %s91_s24, 1024  ;;  %p3429_p6 = scmp.lt.s32.totalorder %s91_s24, %s91_s24 }
  0x3c   :  { %p3425_p5 = scmp.ne.s32.totalorder %s91_s24, %s3424_s3  ;;  %p3430_p7 = scmp.lt.s32.totalorder %s3424_s3, %s3424_s3 }
  0x3e   :  { %p3431_p8 = por %p3430_p7, %p3429_p6 }
  0x40   :  { %p3432_p9 = pnand %p3431_p8, %p3425_p5 }
  0x42   :  { %3435 = shalt.err (!%p3432_p9)
}
  0x43   :  { %s3790_s30 = smov 64   ;;  %s3791_s2 = smov 4  }
  0x44   :  { %96 = dma.hbm_to_vmem [thread:$0]  %s4444_s5, 1024, %s91_s24, [#allocation12], %s3790_s30, %s3790_s30, %s3791_s2  }
  0x45   :  { %s3436_s27 = scalar_lea.hbm %s4446_s7, 1024 }
  0x46   :  { %p3437_p10 = scmp.ne.s32.totalorder %s4446_s7, %s3436_s27  ;;  %p3440_p11 = scmp.lt.u32.totalorder %s3436_s27, %s4446_s7 }
  0x48   :  { %p3442_p12 = pnand %p3440_p11, %p3437_p10 }
  0x4a   :  { %3445 = shalt.err (!%p3442_p12)
}
  0x4b   :  { %s3446_s20 = scalar_lea.vmem %s3933_s26, 1024  ;;  %p3451_p0 = scmp.lt.s32.totalorder %s3933_s26, %s3933_s26 }
  0x4c   :  { %p3447_p13 = scmp.ne.s32.totalorder %s3933_s26, %s3446_s20  ;;  %p3452_p1 = scmp.lt.s32.totalorder %s3446_s20, %s3446_s20 }
  0x4e   :  { %p3453_p2 = por %p3452_p1, %p3451_p0 }
  0x50   :  { %p3454_p3 = pnand %p3453_p2, %p3447_p13 }
  0x52   :  { %3457 = shalt.err (!%p3454_p3)
}
  0x53   :  { %120 = dma.hbm_to_vmem [thread:$0]  %s4446_s7, 1024, %s3933_s26, [#allocation15], %s3790_s30, %s3790_s30, %s3791_s2  }
  0x54   :  { %s3792_s22 = smov [#allocation17]   ;;  %s3793_s28 = smov [#allocation20]  }
  0x55   :  { %s138_s3 = sshll.u32 %s3792_s22, 4  ;;  %s162_s1 = sshll.u32 %s3793_s28, 4  ;;  %s139_s3 = int_to_ptr.vmem [resolvable:$true] %s138_s3  ;;  %s3970_s1 = int_to_ptr.vmem [resolvable:$true] %s162_s1 }
  0x56   :  { %s3458_s27 = scalar_lea.hbm %s4448_s9, 2048 }
  0x57   :  { %p3459_p4 = scmp.ne.s32.totalorder %s4448_s9, %s3458_s27  ;;  %p3462_p5 = scmp.lt.u32.totalorder %s3458_s27, %s4448_s9 }
  0x59   :  { %p3464_p6 = pnand %p3462_p5, %p3459_p4 }
  0x5b   :  { %3467 = shalt.err (!%p3464_p6)
}
  0x5c   :  { %s3468_s7 = scalar_lea.vmem %s139_s3, 2048  ;;  %p3473_p8 = scmp.lt.s32.totalorder %s139_s3, %s139_s3 }
  0x5d   :  { %p3469_p7 = scmp.ne.s32.totalorder %s139_s3, %s3468_s7  ;;  %p3474_p9 = scmp.lt.s32.totalorder %s3468_s7, %s3468_s7 }
  0x5f   :  { %p3475_p10 = por %p3474_p9, %p3473_p8 }
  0x61   :  { %p3476_p11 = pnand %p3475_p10, %p3469_p7 }
  0x63   :  { %3479 = shalt.err (!%p3476_p11)
}
  0x64   :  { %144 = dma.hbm_to_vmem [thread:$0]  %s4448_s9, 2048, %s139_s3, [#allocation18], %s3790_s30, %s3790_s30, %s3791_s2  }
  0x65   :  { %s3480_s22 = scalar_lea.hbm %s4450_s11, 1024 }
  0x66   :  { %p3481_p12 = scmp.ne.s32.totalorder %s4450_s11, %s3480_s22  ;;  %p3484_p13 = scmp.lt.u32.totalorder %s3480_s22, %s4450_s11 }
  0x68   :  { %p3486_p0 = pnand %p3484_p13, %p3481_p12 }
  0x6a   :  { %3489 = shalt.err (!%p3486_p0)
}
  0x6b   :  { %s3490_s29 = scalar_lea.vmem %s3970_s1, 1024  ;;  %p3495_p2 = scmp.lt.s32.totalorder %s3970_s1, %s3970_s1 }
  0x6c   :  { %p3491_p1 = scmp.ne.s32.totalorder %s3970_s1, %s3490_s29  ;;  %p3496_p3 = scmp.lt.s32.totalorder %s3490_s29, %s3490_s29 }
  0x6e   :  { %p3497_p4 = por %p3496_p3, %p3495_p2 }
  0x70   :  { %p3498_p5 = pnand %p3497_p4, %p3491_p1 }
  0x72   :  { %3501 = shalt.err (!%p3498_p5)
}
  0x73   :  { %168 = dma.hbm_to_vmem [thread:$0]  %s4450_s11, 1024, %s3970_s1, [#allocation21], %s3790_s30, %s3790_s30, %s3791_s2  }
  0x74   :  { %s3794_s0 = smov [#allocation23]   ;;  %s3795_s21 = smov [#allocation26]  }
  0x75   :  { %s186_s19 = sshll.u32 %s3794_s0, 4  ;;  %s210_s7 = sshll.u32 %s3795_s21, 4  ;;  %s187_s19 = int_to_ptr.vmem [resolvable:$true] %s186_s19  ;;  %s4007_s7 = int_to_ptr.vmem [resolvable:$true] %s210_s7 }
  0x76   :  { %s3502_s5 = scalar_lea.hbm %s4452_s13, 1024 }
  0x77   :  { %p3503_p6 = scmp.ne.s32.totalorder %s4452_s13, %s3502_s5  ;;  %p3506_p7 = scmp.lt.u32.totalorder %s3502_s5, %s4452_s13 }
  0x79   :  { %p3508_p8 = pnand %p3506_p7, %p3503_p6 }
  0x7b   :  { %3511 = shalt.err (!%p3508_p8)
}
  0x7c   :  { %s3512_s11 = scalar_lea.vmem %s187_s19, 1024  ;;  %p3517_p10 = scmp.lt.s32.totalorder %s187_s19, %s187_s19 }
  0x7d   :  { %p3513_p9 = scmp.ne.s32.totalorder %s187_s19, %s3512_s11  ;;  %p3518_p11 = scmp.lt.s32.totalorder %s3512_s11, %s3512_s11 }
  0x7f   :  { %p3519_p12 = por %p3518_p11, %p3517_p10 }
  0x81   :  { %p3520_p13 = pnand %p3519_p12, %p3513_p9 }
  0x83   :  { %3523 = shalt.err (!%p3520_p13)
}
  0x84   :  { %192 = dma.hbm_to_vmem [thread:$0]  %s4452_s13, 1024, %s187_s19, [#allocation24], %s3790_s30, %s3790_s30, %s3791_s2  }
  0x85   :  { %s3524_s9 = scalar_lea.hbm %s4454_s15, 2048 }
  0x86   :  { %p3525_p0 = scmp.ne.s32.totalorder %s4454_s15, %s3524_s9  ;;  %p3528_p1 = scmp.lt.u32.totalorder %s3524_s9, %s4454_s15 }
  0x88   :  { %p3530_p2 = pnand %p3528_p1, %p3525_p0 }
  0x8a   :  { %3533 = shalt.err (!%p3530_p2)
}
  0x8b   :  { %s3534_s20 = scalar_lea.vmem %s4007_s7, 2048  ;;  %p3539_p4 = scmp.lt.s32.totalorder %s4007_s7, %s4007_s7 }
  0x8c   :  { %p3535_p3 = scmp.ne.s32.totalorder %s4007_s7, %s3534_s20  ;;  %p3540_p5 = scmp.lt.s32.totalorder %s3534_s20, %s3534_s20 }
  0x8e   :  { %p3541_p6 = por %p3540_p5, %p3539_p4 }
  0x90   :  { %p3542_p7 = pnand %p3541_p6, %p3535_p3 }
  0x92   :  { %3545 = shalt.err (!%p3542_p7)
}
  0x93   :  { %216 = dma.hbm_to_vmem [thread:$0]  %s4454_s15, 2048, %s4007_s7, [#allocation27], %s3790_s30, %s3790_s30, %s3791_s2  }
  0x94   :  { %s3796_s5 = smov [#allocation2]   ;;  %s3797_s22 = smov [#allocation7]  }
  0x95   :  { %s39_s24 = sshll.u32 %s3796_s5, 4  ;;  %s59_s28 = sshll.u32 %s3797_s22, 4  ;;  %s40_s24 = int_to_ptr.vmem [resolvable:$true] %s39_s24  ;;  %s60_s28 = int_to_ptr.vmem [resolvable:$true] %s59_s28 }
  0x96   :  { %s4465_s1 = sld [smem:[#allocation40_spill]] }
  0x9c   :  { %s3546_s25 = scalar_lea.hbm %s4465_s1, 128 }
  0x9d   :  { %p3547_p8 = scmp.ne.s32.totalorder %s4465_s1, %s3546_s25  ;;  %p3550_p9 = scmp.lt.u32.totalorder %s3546_s25, %s4465_s1 }
  0x9f   :  { %p3552_p10 = pnand %p3550_p9, %p3547_p8 }
  0xa1   :  { %3555 = shalt.err (!%p3552_p10)
}
  0xa2   :  { %s3556_s15 = scalar_lea.vmem %s40_s24, 128  ;;  %p3561_p12 = scmp.lt.s32.totalorder %s40_s24, %s40_s24 }
  0xa3   :  { %p3557_p11 = scmp.ne.s32.totalorder %s40_s24, %s3556_s15  ;;  %p3562_p13 = scmp.lt.s32.totalorder %s3556_s15, %s3556_s15 }
  0xa5   :  { %p3563_p0 = por %p3562_p13, %p3561_p12 }
  0xa7   :  { %p3564_p1 = pnand %p3563_p0, %p3557_p11 }
  0xa9   :  { %3567 = shalt.err (!%p3564_p1)
}
  0xaa   :  { %42 = dma.hbm_to_vmem [thread:$0]  %s4465_s1, 128, %s40_s24, [#allocation3]  }
  0xab   :  { %s4466_s20 = sld [smem:[#allocation42_spill]] }
  0xb1   :  { %s3568_s13 = scalar_lea.hbm %s4466_s20, 128 }
  0xb2   :  { %p3569_p2 = scmp.ne.s32.totalorder %s4466_s20, %s3568_s13  ;;  %p3572_p3 = scmp.lt.u32.totalorder %s3568_s13, %s4466_s20 }
  0xb4   :  { %p3574_p4 = pnand %p3572_p3, %p3569_p2 }
  0xb6   :  { %3577 = shalt.err (!%p3574_p4)
}
  0xb7   :  { %s3578_s11 = scalar_lea.vmem %s60_s28, 128  ;;  %p3583_p6 = scmp.lt.s32.totalorder %s60_s28, %s60_s28 }
  0xb8   :  { %p3579_p5 = scmp.ne.s32.totalorder %s60_s28, %s3578_s11  ;;  %p3584_p7 = scmp.lt.s32.totalorder %s3578_s11, %s3578_s11 }
  0xba   :  { %p3585_p8 = por %p3584_p7, %p3583_p6 }
  0xbc   :  { %p3586_p9 = pnand %p3585_p8, %p3579_p5 }
  0xbe   :  { %3589 = shalt.err (!%p3586_p9)
}
  0xbf   :  { %62 = dma.hbm_to_vmem [thread:$0]  %s4466_s20, 128, %s60_s28, [#allocation6]  }
  0xc0   :  { %s3798_s25 = smov [#allocation10]   ;;  %s3799_s29 = smov [#allocation13]  }
  0xc1   :  { %s78_s27 = sshll.u32 %s3798_s25, 4  ;;  %s102_s9 = sshll.u32 %s3799_s29, 4  ;;  %s79_s27 = int_to_ptr.vmem [resolvable:$true] %s78_s27  ;;  %s4068_s9 = int_to_ptr.vmem [resolvable:$true] %s102_s9 }
  0xc2   :  { %s3590_s7 = scalar_lea.hbm %s4443_s4, 1024 }
  0xc3   :  { %p3591_p10 = scmp.ne.s32.totalorder %s4443_s4, %s3590_s7  ;;  %p3594_p11 = scmp.lt.u32.totalorder %s3590_s7, %s4443_s4 }
  0xc5   :  { %p3596_p12 = pnand %p3594_p11, %p3591_p10 }
  0xc7   :  { %3599 = shalt.err (!%p3596_p12)
}
  0xc8   :  { %s3600_s28 = scalar_lea.vmem %s79_s27, 1024  ;;  %p3605_p0 = scmp.lt.s32.totalorder %s79_s27, %s79_s27 }
  0xc9   :  { %p3601_p13 = scmp.ne.s32.totalorder %s79_s27, %s3600_s28  ;;  %p3606_p1 = scmp.lt.s32.totalorder %s3600_s28, %s3600_s28 }
  0xcb   :  { %p3607_p2 = por %p3606_p1, %p3605_p0 }
  0xcd   :  { %p3608_p3 = pnand %p3607_p2, %p3601_p13 }
  0xcf   :  { %3611 = shalt.err (!%p3608_p3)
}
  0xd0   :  { %84 = dma.hbm_to_vmem [thread:$0]  %s4443_s4, 1024, %s79_s27, [#allocation9], %s3790_s30, %s3790_s30, %s3791_s2  }
  0xd1   :  { %s3612_s23 = scalar_lea.hbm %s4445_s6, 2048 }
  0xd2   :  { %p3613_p4 = scmp.ne.s32.totalorder %s4445_s6, %s3612_s23  ;;  %p3616_p5 = scmp.lt.u32.totalorder %s3612_s23, %s4445_s6 }
  0xd4   :  { %p3618_p6 = pnand %p3616_p5, %p3613_p4 }
  0xd6   :  { %3621 = shalt.err (!%p3618_p6)
}
  0xd7   :  { %s3622_s29 = scalar_lea.vmem %s4068_s9, 2048  ;;  %p3627_p8 = scmp.lt.s32.totalorder %s4068_s9, %s4068_s9 }
  0xd8   :  { %p3623_p7 = scmp.ne.s32.totalorder %s4068_s9, %s3622_s29  ;;  %p3628_p9 = scmp.lt.s32.totalorder %s3622_s29, %s3622_s29 }
  0xda   :  { %p3629_p10 = por %p3628_p9, %p3627_p8 }
  0xdc   :  { %p3630_p11 = pnand %p3629_p10, %p3623_p7 }
  0xde   :  { %3633 = shalt.err (!%p3630_p11)
}
  0xdf   :  { %108 = dma.hbm_to_vmem [thread:$0]  %s4445_s6, 2048, %s4068_s9, [#allocation12], %s3790_s30, %s3790_s30, %s3791_s2  }
  0xe0   :  { %s3800_s3 = smov [#allocation16]   ;;  %s3801_s7 = smov [#allocation19]  }
  0xe1   :  { %s126_s15 = sshll.u32 %s3800_s3, 4  ;;  %s150_s0 = sshll.u32 %s3801_s7, 4  ;;  %s127_s15 = int_to_ptr.vmem [resolvable:$true] %s126_s15  ;;  %s4105_s0 = int_to_ptr.vmem [resolvable:$true] %s150_s0 }
  0xe2   :  { %s3634_s13 = scalar_lea.hbm %s4447_s8, 1024 }
  0xe3   :  { %p3635_p12 = scmp.ne.s32.totalorder %s4447_s8, %s3634_s13  ;;  %p3638_p13 = scmp.lt.u32.totalorder %s3634_s13, %s4447_s8 }
  0xe5   :  { %p3640_p0 = pnand %p3638_p13, %p3635_p12 }
  0xe7   :  { %3643 = shalt.err (!%p3640_p0)
}
  0xe8   :  { %s3644_s6 = scalar_lea.vmem %s127_s15, 1024  ;;  %p3649_p2 = scmp.lt.s32.totalorder %s127_s15, %s127_s15 }
  0xe9   :  { %p3645_p1 = scmp.ne.s32.totalorder %s127_s15, %s3644_s6  ;;  %p3650_p3 = scmp.lt.s32.totalorder %s3644_s6, %s3644_s6 }
  0xeb   :  { %p3651_p4 = por %p3650_p3, %p3649_p2 }
  0xed   :  { %p3652_p5 = pnand %p3651_p4, %p3645_p1 }
  0xef   :  { %3655 = shalt.err (!%p3652_p5)
}
  0xf0   :  { %132 = dma.hbm_to_vmem [thread:$0]  %s4447_s8, 1024, %s127_s15, [#allocation15], %s3790_s30, %s3790_s30, %s3791_s2  }
  0xf1   :  { %s3656_s24 = scalar_lea.hbm %s4449_s10, 1024 }
  0xf2   :  { %p3657_p6 = scmp.ne.s32.totalorder %s4449_s10, %s3656_s24  ;;  %p3660_p7 = scmp.lt.u32.totalorder %s3656_s24, %s4449_s10 }
  0xf4   :  { %p3662_p8 = pnand %p3660_p7, %p3657_p6 }
  0xf6   :  { %3665 = shalt.err (!%p3662_p8)
}
  0xf7   :  { %s3666_s27 = scalar_lea.vmem %s4105_s0, 1024  ;;  %p3671_p10 = scmp.lt.s32.totalorder %s4105_s0, %s4105_s0 }
  0xf8   :  { %p3667_p9 = scmp.ne.s32.totalorder %s4105_s0, %s3666_s27  ;;  %p3672_p11 = scmp.lt.s32.totalorder %s3666_s27, %s3666_s27 }
  0xfa   :  { %p3673_p12 = por %p3672_p11, %p3671_p10 }
  0xfc   :  { %p3674_p13 = pnand %p3673_p12, %p3667_p9 }
  0xfe   :  { %3677 = shalt.err (!%p3674_p13)
}
  0xff   :  { %156 = dma.hbm_to_vmem [thread:$0]  %s4449_s10, 1024, %s4105_s0, [#allocation18], %s3790_s30, %s3790_s30, %s3791_s2  }
 0x100   :  { %s3802_s15 = smov [#allocation22]   ;;  %s3803_s21 = smov [#allocation25]  }
 0x101   :  { %s174_s7 = sshll.u32 %s3802_s15, 4  ;;  %s198_s26 = sshll.u32 %s3803_s21, 4  ;;  %s175_s7 = int_to_ptr.vmem [resolvable:$true] %s174_s7  ;;  %s4142_s26 = int_to_ptr.vmem [resolvable:$true] %s198_s26 }
 0x102   :  { %s3678_s20 = scalar_lea.hbm %s4451_s12, 2048 }
 0x103   :  { %p3679_p0 = scmp.ne.s32.totalorder %s4451_s12, %s3678_s20  ;;  %p3682_p1 = scmp.lt.u32.totalorder %s3678_s20, %s4451_s12 }
 0x105   :  { %p3684_p2 = pnand %p3682_p1, %p3679_p0 }
 0x107   :  { %3687 = shalt.err (!%p3684_p2)
}
 0x108   :  { %s3688_s10 = scalar_lea.vmem %s175_s7, 2048  ;;  %p3693_p4 = scmp.lt.s32.totalorder %s175_s7, %s175_s7 }
 0x109   :  { %p3689_p3 = scmp.ne.s32.totalorder %s175_s7, %s3688_s10  ;;  %p3694_p5 = scmp.lt.s32.totalorder %s3688_s10, %s3688_s10 }
 0x10b   :  { %p3695_p6 = por %p3694_p5, %p3693_p4 }
 0x10d   :  { %p3696_p7 = pnand %p3695_p6, %p3689_p3 }
 0x10f   :  { %3699 = shalt.err (!%p3696_p7)
}
 0x110   :  { %180 = dma.hbm_to_vmem [thread:$0]  %s4451_s12, 2048, %s175_s7, [#allocation21], %s3790_s30, %s3790_s30, %s3791_s2  }
 0x111   :  { %s3700_s24 = scalar_lea.hbm %s4453_s14, 1024 }
 0x112   :  { %p3701_p8 = scmp.ne.s32.totalorder %s4453_s14, %s3700_s24  ;;  %p3704_p9 = scmp.lt.u32.totalorder %s3700_s24, %s4453_s14 }
 0x114   :  { %p3706_p10 = pnand %p3704_p9, %p3701_p8 }
 0x116   :  { %3709 = shalt.err (!%p3706_p10)
}
 0x117   :  { %s3710_s27 = scalar_lea.vmem %s4142_s26, 1024  ;;  %p3715_p12 = scmp.lt.s32.totalorder %s4142_s26, %s4142_s26 }
 0x118   :  { %p3711_p11 = scmp.ne.s32.totalorder %s4142_s26, %s3710_s27  ;;  %p3716_p13 = scmp.lt.s32.totalorder %s3710_s27, %s3710_s27 }
 0x11a   :  { %p3717_p0 = por %p3716_p13, %p3715_p12 }
 0x11c   :  { %p3718_p1 = pnand %p3717_p0, %p3711_p11 }
 0x11e   :  { %3721 = shalt.err (!%p3718_p1)
}
 0x11f   :  { %204 = dma.hbm_to_vmem [thread:$0]  %s4453_s14, 1024, %s4142_s26, [#allocation24], %s3790_s30, %s3790_s30, %s3791_s2  }
 0x120   :  { %s3804_s3 = smov [#allocation28]   ;;  %s3722_s13 = scalar_lea.hbm %s4455_s16, 1024 }
 0x121   :  { %s222_s15 = sshll.u32 %s3804_s3, 4  ;;  %p3723_p2 = scmp.ne.s32.totalorder %s4455_s16, %s3722_s13  ;;  %s223_s15 = int_to_ptr.vmem [resolvable:$true] %s222_s15 }
 0x122   :  { %p3726_p3 = scmp.lt.u32.totalorder %s3722_s13, %s4455_s16 }
 0x124   :  { %p3728_p4 = pnand %p3726_p3, %p3723_p2 }
 0x126   :  { %3731 = shalt.err (!%p3728_p4)
}
 0x127   :  { %s3732_s6 = scalar_lea.vmem %s223_s15, 1024  ;;  %p3737_p6 = scmp.lt.s32.totalorder %s223_s15, %s223_s15 }
 0x128   :  { %p3733_p5 = scmp.ne.s32.totalorder %s223_s15, %s3732_s6  ;;  %p3738_p7 = scmp.lt.s32.totalorder %s3732_s6, %s3732_s6 }
 0x12a   :  { %p3739_p8 = por %p3738_p7, %p3737_p6 }
 0x12c   :  { %p3740_p9 = pnand %p3739_p8, %p3733_p5 }
 0x12e   :  { %3743 = shalt.err (!%p3740_p9)
}
 0x12f   :  { %228 = dma.hbm_to_vmem [thread:$0]  %s4455_s16, 1024, %s223_s15, [#allocation27], %s3790_s30, %s3790_s30, %s3791_s2  }
 0x130   :  { %3766 = dma.done.wait [#allocation3], 128  }
 0x131   :  { %3767 = vsyncadd [#allocation3], 4294967168 }
 0x132   :  { %3768 = dma.done.wait [#allocation6], 256  }
 0x133   :  { %3769 = vsyncadd [#allocation6], 4294967040 }
 0x134   :  { %3770 = dma.done.wait [#allocation9], 1408  }
 0x135   :  { %3771 = vsyncadd [#allocation9], 4294965888 }
 0x136   :  { %3772 = dma.done.wait [#allocation12], 3072  }
 0x137   :  { %3773 = vsyncadd [#allocation12], 4294964224 }
 0x138   :  { %3774 = dma.done.wait [#allocation15], 2048  }
 0x139   :  { %3775 = vsyncadd [#allocation15], 4294965248 }
 0x13a   :  { %3776 = dma.done.wait [#allocation18], 3072  }
 0x13b   :  { %3777 = vsyncadd [#allocation18], 4294964224 }
 0x13c   :  { %3778 = dma.done.wait [#allocation21], 3072  }
 0x13d   :  { %3779 = vsyncadd [#allocation21], 4294964224 }
 0x13e   :  { %3780 = dma.done.wait [#allocation24], 2048  }
 0x13f   :  { %3781 = vsyncadd [#allocation24], 4294965248 }
 0x140   :  { %3782 = dma.done.wait [#allocation27], 3072  }
 0x141   :  { %3783 = vsyncadd [#allocation27], 4294964224  ;;  %v3805_v0 = vmov 0.0   ;;  %vm3806_vm0 = vmmov 0   ;;  %v283_v1 = vlaneseq  ;;  %v3174_v2 = vld [vmem:[#allocation10] sm:$0xff]   ;;  %v3175_v4 = vld [vmem:[#allocation10 + $0x8] sm:$0xff]  }
 0x142   :  { %2942 = vmatprep.subr.bf16.mxu0 %v3805_v0  ;;  %2958 = vmatprep.mubr.msk.bf16.mxu0 %vm3806_vm0, %v3805_v0  ;;  %v3176_v6 = vld [vmem:[#allocation10 + $0x10] sm:$0xff]   ;;  %v3182_v7 = vld [vmem:[#allocation11] sm:$0xff]   ;;  %v3177_v9 = vld [vmem:[#allocation10 + $0x18] sm:$0xff]   ;;  %v3807_v41 = vmov 683565275  }
 0x143   :  { %2962 = vmatprep.subr.bf16.mxu1 %v3805_v0  ;;  %2978 = vmatprep.mubr.msk.bf16.mxu1 %vm3806_vm0, %v3805_v0  ;;  %v4200_v3 = vand.u32 127, %v283_v1  ;;  %v3183_v10 = vld [vmem:[#allocation11 + $0x8] sm:$0xff]   ;;  %v3178_v12 = vld [vmem:[#allocation10 + $0x20] sm:$0xff]   ;;  %v3184_v13 = vld [vmem:[#allocation11 + $0x10] sm:$0xff]   ;;  %v3808_v43 = vmov 2475754826  }
 0x144   :  { %2943 = vmatpush3.bf16.msra.mxu0 %v3174_v2  ;;  %2963 = vmatpush3.bf16.msra.mxu1 %v3182_v7  ;;  %v3179_v14 = vld [vmem:[#allocation10 + $0x28] sm:$0xff]   ;;  %v3185_v16 = vld [vmem:[#allocation11 + $0x18] sm:$0xff]   ;;  %v3180_v18 = vld [vmem:[#allocation10 + $0x30] sm:$0xff]   ;;  %v3809_v45 = vmov 2131351028  }
 0x145   :  { %2944 = vmatprep.subr.bf16.mxu0 %v3805_v0  ;;  %v4204_v5 = vcvt.s32.f32 %v4200_v3  ;;  %2964 = vmatprep.subr.bf16.mxu1 %v3805_v0  ;;  %v3186_v19 = vld [vmem:[#allocation11 + $0x20] sm:$0xff]   ;;  %v3181_v20 = vld [vmem:[#allocation10 + $0x38] sm:$0xff]   ;;  %v3187_v22 = vld [vmem:[#allocation11 + $0x28] sm:$0xff]   ;;  %v3810_v47 = vmov 2102212464  }
 0x146   :  { %v507_v21 = vld [vmem:[#allocation5] sm:$0xff]  ;;  %v292_v23 = vld [vmem:[#allocation2] sm:$0xff]  ;;  %v3811_v49 = vmov 920167782   ;;  %v3812_v56 = vmov 1326507024  }
 0x147   :  { %v2566_v8 = vadd.f32 -32.0, %v4204_v5  ;;  %vm286_vm1 = vcmp.lt.f32.partialorder %v4204_v5, 32.0  ;;  %v524_v24 = vpack.c.bf16 %v507_v21, %v507_v21  ;;  %v3188_v25 = vld [vmem:[#allocation11 + $0x30] sm:$0xff]   ;;  %v3189_v30 = vld [vmem:[#allocation11 + $0x38] sm:$0xff]   ;;  %vm502_vm15 = vcmp.lt.f32.partialorder %v4204_v5, 64.0 }
 0x148   :  { %2945 = vmatpush3.bf16.msra.mxu0 %v3175_v4  ;;  %2965 = vmatpush3.bf16.msra.mxu1 %v3183_v10 }
 0x149   :  { %2946 = vmatprep.subr.bf16.mxu0 %v3805_v0  ;;  %v288_v11 = vsel %vm286_vm1, %v4204_v5, %v2566_v8  ;;  %2966 = vmatprep.subr.bf16.mxu1 %v3805_v0  ;;  %v3195_v5 = vld [vmem:[#allocation13 + $0x10] sm:$0xff]  }
 0x14a   :  { %v289_v15 = vmul.f32 -0.28782314, %v288_v11 }
 0x14c   :  { %2947 = vmatpush3.bf16.msra.mxu0 %v3176_v6  ;;  %v290_v17 = vmul.f32 1.442695, %v289_v15  ;;  %2967 = vmatpush3.bf16.msra.mxu1 %v3184_v13 }
 0x14d   :  { %2948 = vmatprep.subr.bf16.mxu0 %v3805_v0  ;;  %2968 = vmatprep.subr.bf16.mxu1 %v3805_v0 }
 0x14e   :  { %3318 = vpow2.f32 %v290_v17 }
 0x150   :  { %2949 = vmatpush3.bf16.msra.mxu0 %v3177_v9  ;;  %2969 = vmatpush3.bf16.msra.mxu1 %v3185_v16 }
 0x151   :  { %2950 = vmatprep.subr.bf16.mxu0 %v3805_v0  ;;  %2970 = vmatprep.subr.bf16.mxu1 %v3805_v0 }
 0x154   :  { %2951 = vmatpush3.bf16.msra.mxu0 %v3178_v12  ;;  %2971 = vmatpush3.bf16.msra.mxu1 %v3186_v19 }
 0x155   :  { %2952 = vmatprep.subr.bf16.mxu0 %v3805_v0  ;;  %2972 = vmatprep.subr.bf16.mxu1 %v3805_v0 }
 0x158   :  { %2953 = vmatpush3.bf16.msra.mxu0 %v3179_v14  ;;  %v3319_v26 = vpop.eup %3318  ;;  %2973 = vmatpush3.bf16.msra.mxu1 %v3187_v22 }
 0x159   :  { %2954 = vmatprep.subr.bf16.mxu0 %v3805_v0  ;;  %v4222_v27 = vmul.f32 %v3319_v26, %v292_v23  ;;  %2974 = vmatprep.subr.bf16.mxu1 %v3805_v0 }
 0x15b   :  { %v294_v28 = vand.u32 2147483647, %v4222_v27  ;;  %v297_v29 = vand.u32 2139095040, %v4222_v27  ;;  %vm296_vm9 = vcmp.lt.s32.totalorder %v4222_v27, 0 }
 0x15c   :  { %2955 = vmatpush3.bf16.msra.mxu0 %v3180_v18  ;;  %2975 = vmatpush3.bf16.msra.mxu1 %v3188_v25 }
 0x15d   :  { %2956 = vmatprep.subr.bf16.mxu0 %v3805_v0  ;;  %v298_v31 = vshrl.u32 %v297_v29, 23  ;;  %v301_v32 = vand.u32 8388607, %v294_v28  ;;  %2976 = vmatprep.subr.bf16.mxu1 %v3805_v0  ;;  %vm4248_vm8 = vcmp.le.f32.partialorder %v294_v28, 0.7853982 }
 0x15f   :  { %v2567_v33 = vadd.s32 4294967169, %v298_v31  ;;  %v302_v34 = vor.u32 8388608, %v301_v32  ;;  %v2587_v32 = vld [vmem:[#allocation8 + $0x3] ss:$0 sm:$0xff] }
 0x160   :  { %2957 = vmatpush3.bf16.msra.mxu0 %v3181_v20  ;;  %2977 = vmatpush3.bf16.msra.mxu1 %v3189_v30 }
 0x161   :  { %v304_v35 = vadd.s32 1, %v2567_v33  ;;  %2982 = vmatprep.subr.bf16.mxu1 %v3805_v0  ;;  %v342_v37 = vshll.u32 %v302_v34, 8 }
 0x163   :  { %2959 = vmatmul.mubr.bf16.vlgmr.msra.gmra.mrb[0].mxu0 %v524_v24  ;;  %vm305_vm2 = vcmp.gt.s32.totalorder %v304_v35, 0 }
 0x164   :  { %v306_v36 = vsel %vm305_vm2, %v304_v35, 0 }
 0x165   :  { %v307_v38 = vshrl.u32 %v306_v36, 5  ;;  %v308_v39 = vand.u32 31, %v306_v36 }
 0x167   :  { %v309_v40 = vsub.s32 32, %v308_v39  ;;  %v311_v42 = vshll.u32 %v3807_v41, %v308_v39  ;;  %v314_v44 = vshll.u32 %v3808_v43, %v308_v39  ;;  %v317_v46 = vshll.u32 %v3809_v45, %v308_v39 }
 0x168   :  { %v320_v48 = vshll.u32 %v3810_v47, %v308_v39  ;;  %v323_v50 = vshll.u32 %v3811_v49, %v308_v39  ;;  %vm326_vm3 = vcmp.lt.s32.totalorder %v307_v38, 1  ;;  %vm327_vm4 = vcmp.lt.s32.totalorder %v307_v38, 2 }
 0x169   :  { %v310_v51 = vshrl.u32 %v3807_v41, %v309_v40  ;;  %v312_v52 = vshrl.u32 %v3808_v43, %v309_v40  ;;  %v315_v53 = vshrl.u32 %v3809_v45, %v309_v40  ;;  %v318_v54 = vshrl.u32 %v3810_v47, %v309_v40 }
 0x16a   :  { %v321_v55 = vshrl.u32 %v3811_v49, %v309_v40  ;;  %v324_v57 = vshrl.u32 %v3812_v56, %v309_v40  ;;  %vm328_vm5 = vcmp.lt.s32.totalorder %v307_v38, 3  ;;  %vm329_vm6 = vcmp.lt.s32.totalorder %v307_v38, 4 }
 0x16b   :  { %v313_v58 = vor.u32 %v312_v52, %v311_v42  ;;  %v316_v59 = vor.u32 %v315_v53, %v314_v44  ;;  %v319_v60 = vor.u32 %v318_v54, %v317_v46 }
 0x16c   :  { %v322_v61 = vor.u32 %v321_v55, %v320_v48  ;;  %v325_v62 = vor.u32 %v324_v57, %v323_v50 }
 0x16d   :  { %v330_v63 = vsel %vm326_vm3, %v310_v51, %v313_v58  ;;  %v331_v1 = vsel %vm329_vm6, %v319_v60, 2102212464  ;;  %v334_v2 = vsel %vm326_vm3, %v313_v58, %v316_v59  ;;  %v338_v4 = vsel %vm326_vm3, %v316_v59, %v319_v60 }
 0x16e   :  { %v332_v6 = vsel %vm328_vm5, %v316_v59, %v331_v1  ;;  %v335_v7 = vsel %vm329_vm6, %v322_v61, 920167782  ;;  %v339_v8 = vsel %vm329_vm6, %v325_v62, 1326507024  ;;  %vm1512_vm6 = vcmp.lt.s32.totalorder %v4200_v3, 32 }
 0x16f   :  { %v336_v9 = vsel %vm328_vm5, %v319_v60, %v335_v7  ;;  %v340_v10 = vsel %vm328_vm5, %v322_v61, %v339_v8  ;;  %v333_v11 = vsel %vm327_vm4, %v330_v63, %v332_v6  ;;  %vm4268_vm5 = vmpackc.low %vm502_vm15, %vm502_vm15  ;;  %v3191_v8 = vld [vmem:[#allocation13] sm:$0xff]  }
 0x170   :  { %v337_v12 = vsel %vm327_vm4, %v334_v2, %v336_v9  ;;  %v341_v13 = vsel %vm327_vm4, %v338_v4, %v340_v10  ;;  %v349_v18 = vmul.u32 %v342_v37, %v333_v11  ;;  %vm386_vm4 = vweird.f32 %v4222_v27  ;;  %v3192_v9 = vld [vmem:[#allocation13 + $0x48] sm:$0xff]   ;;  %v3194_v11 = vld [vmem:[#allocation13 + $0x50] sm:$0xff]  }
 0x171   :  { %v4237_v14 = vmul.u32.u64.low %v342_v37, %v341_v13  ;;  %v4238_v15 = vmul.u32.u64.high %v342_v37, %v341_v13, %v4237_v14  ;;  %v4240_v16 = vmul.u32.u64.low %v342_v37, %v337_v12  ;;  %v4241_v17 = vmul.u32.u64.high %v342_v37, %v337_v12, %v4240_v16  ;;  %v3193_v10 = vld [vmem:[#allocation13 + $0x8] sm:$0xff]   ;;  %v3196_v12 = vld [vmem:[#allocation13 + $0x58] sm:$0xff]  }
 0x172   :  { %v3197_v13 = vld [vmem:[#allocation13 + $0x18] sm:$0xff]   ;;  %v3198_v14 = vld [vmem:[#allocation13 + $0x60] sm:$0xff]  }
 0x173   :  { %vm351_vm7 = vc.u32 %v4238_v15, %v4240_v16  ;;  %v352_v19 = vadd.s32 1, %v4241_v17  ;;  %v350_v35 = vadd.s32 %v4240_v16, %v4238_v15  ;;  %v3199_v15 = vld [vmem:[#allocation13 + $0x20] sm:$0xff]   ;;  %v3200_v16 = vld [vmem:[#allocation13 + $0x68] sm:$0xff]  }
 0x175   :  { %v353_v20 = vsel %vm351_vm7, %v352_v19, %v4241_v17  ;;  %v3201_v17 = vld [vmem:[#allocation13 + $0x28] sm:$0xff]   ;;  %v3203_v19 = vld [vmem:[#allocation13 + $0x30] sm:$0xff]  }
 0x176   :  { %v354_v21 = vadd.s32 %v353_v20, %v349_v18  ;;  %v3202_v18 = vld [vmem:[#allocation13 + $0x70] sm:$0xff]   ;;  %v3204_v20 = vld [vmem:[#allocation13 + $0x78] sm:$0xff]  }
 0x178   :  { %v355_v22 = vadd.s32 536870912, %v354_v21 }
 0x17a   :  { %v356_v23 = vshrl.u32 %v355_v22, 30  ;;  %v652_v22 = vld [vmem:[#allocation7] sm:$0xff] }
 0x17c   :  { %v357_v24 = vshll.u32 %v356_v23, 30  ;;  %v380_v30 = vsub.s32 4, %v356_v23 }
 0x17e   :  { %v358_v25 = vsub.s32 %v354_v21, %v357_v24  ;;  %v381_v34 = vsel %vm296_vm9, %v380_v30, %v356_v23  ;;  %v3205_v21 = vld [vmem:[#allocation13 + $0x38] sm:$0xff]   ;;  %v4281_v23 = vpack.c.bf16 %v652_v22, %v652_v22  ;;  %v2575_v24 = vld [vmem:[#allocation8] ss:$0 sm:$0xff] }
 0x17f   :  { %v383_v37 = vsel %vm4248_vm8, 0, %v381_v34 }
 0x180   :  { %v360_v26 = vsub.s32 0, %v358_v25  ;;  %v387_v42 = vand.u32 3, %v383_v37  ;;  %v490_v45 = vadd.s32 3, %v383_v37  ;;  %938 = vmatprep.mubr.bf16.mxu0 %v4281_v23 }
 0x182   :  { %v2568_v29 = vmin.u32 %v360_v26, %v358_v25  ;;  %v491_v51 = vand.u32 3, %v490_v45  ;;  %vm392_vm11 = vcmp.eq.s32.totalorder %v387_v42, 2  ;;  %vm389_vm13 = vcmp.eq.s32.totalorder %v387_v42, 0 }
 0x183   :  { %vm388_vm14 = vcmp.lt.s32.totalorder %v387_v42, 2 }
 0x184   :  { %v362_v31 = vclz %v2568_v29  ;;  %vm496_vm12 = vcmp.eq.s32.totalorder %v491_v51, 2  ;;  %vm493_vm2 = vcmp.eq.s32.totalorder %v491_v51, 0  ;;  %vm492_vm3 = vcmp.lt.s32.totalorder %v491_v51, 2  ;;  %v3210_v51 = vld [vmem:[#allocation14 + $0x20] sm:$0xff]  }
 0x186   :  { %v2569_v33 = vadd.s32 4294967294, %v362_v31 }
 0x188   :  { %vm2570_vm10 = vcmp.lt.s32.totalorder %v2569_v33, 0 }
 0x189   :  { %v365_v36 = vsel %vm2570_vm10, 0, %v2569_v33 }
 0x18a   :  { %v366_v38 = vsub.s32 32, %v365_v36  ;;  %v367_v39 = vshll.u32 %v358_v25, %v365_v36  ;;  %v370_v40 = vsub.s32 4294967266, %v365_v36 }
 0x18c   :  { %v368_v28 = vshrl.u32 %v350_v35, %v366_v38  ;;  %v371_v41 = vadd.s32 127, %v370_v40 }
 0x18e   :  { %v369_v43 = vor.u32 %v368_v28, %v367_v39  ;;  %v372_v44 = vshll.u32 %v371_v41, 23 }
 0x190   :  { %v373_v46 = vor.u32 4788187, %v372_v44  ;;  %v376_v47 = vcvt.s32.f32 %v369_v43 }
 0x192   :  { %v374_v48 = vand.u32 2147483647, %v373_v46 }
 0x194   :  { %v377_v49 = vmul.f32 %v376_v47, %v374_v48  ;;  %v3206_v47 = vld [vmem:[#allocation14] sm:$0xff]   ;;  %v3207_v48 = vld [vmem:[#allocation14 + $0x8] sm:$0xff]  }
 0x196   :  { %v378_v50 = vxor.u32 2147483648, %v377_v49 }
 0x198   :  { %v379_v52 = vsel %vm296_vm9, %v378_v50, %v377_v49  ;;  %v3208_v49 = vld [vmem:[#allocation14 + $0x10] sm:$0xff]   ;;  %v3209_v50 = vld [vmem:[#allocation14 + $0x18] sm:$0xff]  }
 0x199   :  { %v382_v53 = vsel %vm4248_vm8, %v4222_v27, %v379_v52  ;;  %v3190_v27 = vld [vmem:[#allocation13 + $0x40] sm:$0xff]  }
 0x19a   :  { %3320 = vcosq.f32 %v382_v53  ;;  %2782 = vmatprep.subr.bf16.mxu0 %v3190_v27  ;;  %v3214_v52 = vld [vmem:[#allocation16] sm:$0xff]   ;;  %v2584_v27 = vld [vmem:[#allocation8 + $0x1] ss:$0 sm:$0xff] }
 0x19b   :  { %3322 = vsinq.f32 %v382_v53  ;;  %2783 = vmatpush3.bf16.msra.mxu0 %v3191_v8  ;;  %v3211_v53 = vld [vmem:[#allocation14 + $0x28] sm:$0xff]  }
 0x19c   :  { %2784 = vmatprep.subr.bf16.mxu0 %v3192_v9  ;;  %v2585_v9 = vld [vmem:[#allocation8 + $0x2] ss:$0 sm:$0xff] }
 0x19f   :  { %2785 = vmatpush3.bf16.msra.mxu0 %v3193_v10 }
 0x1a0   :  { %2786 = vmatprep.subr.bf16.mxu0 %v3194_v11 }
 0x1a3   :  { %2787 = vmatpush3.bf16.msra.mxu0 %v3195_v5 }
 0x1a4   :  { %v3321_v54 = vpop.eup %3320  ;;  %2788 = vmatprep.subr.bf16.mxu0 %v3196_v12 }
 0x1a5   :  { %v3323_v55 = vpop.eup %3322  ;;  %v393_v56 = vxor.u32 2147483648, %v3321_v54 }
 0x1a6   :  { %v390_v57 = vxor.u32 2147483648, %v3323_v55 }
 0x1a7   :  { %v394_v58 = vsel %vm392_vm11, %v393_v56, %v3323_v55  ;;  %v498_v59 = vsel %vm496_vm12, %v393_v56, %v3323_v55  ;;  %2789 = vmatpush3.bf16.msra.mxu0 %v3197_v13  ;;  %v3212_v55 = vld [vmem:[#allocation14 + $0x30] sm:$0xff]  }
 0x1a8   :  { %v391_v60 = vsel %vm389_vm13, %v3321_v54, %v390_v57  ;;  %v495_v61 = vsel %vm493_vm2, %v3321_v54, %v390_v57  ;;  %2790 = vmatprep.subr.bf16.mxu0 %v3198_v14  ;;  %v3215_v54 = vld [vmem:[#allocation16 + $0x8] sm:$0xff]   ;;  %v3216_v56 = vld [vmem:[#allocation16 + $0x10] sm:$0xff]   ;;  %v3213_v57 = vld [vmem:[#allocation14 + $0x38] sm:$0xff]  }
 0x1a9   :  { %v395_v62 = vsel %vm388_vm14, %v391_v60, %v394_v58  ;;  %v499_v63 = vsel %vm492_vm3, %v495_v61, %v498_v59  ;;  %v3217_v58 = vld [vmem:[#allocation16 + $0x18] sm:$0xff]   ;;  %v3218_v59 = vld [vmem:[#allocation16 + $0x20] sm:$0xff]   ;;  %v3219_v60 = vld [vmem:[#allocation16 + $0x28] sm:$0xff]  }
 0x1aa   :  { %v396_v1 = vsel %vm386_vm4, nan, %v395_v62  ;;  %v500_v2 = vsel %vm386_vm4, nan, %v499_v63  ;;  %v3220_v61 = vld [vmem:[#allocation16 + $0x30] sm:$0xff]   ;;  %v3221_v62 = vld [vmem:[#allocation16 + $0x38] sm:$0xff]  }
 0x1ab   :  { %v501_v6 = vsel %vm286_vm1, %v396_v1, %v500_v2  ;;  %2791 = vmatpush3.bf16.msra.mxu0 %v3199_v15  ;;  %vm1068_vm1 = vcmp.lt.s32.totalorder %v4200_v3, 64  ;;  %v3305_v3 = vld [vmem:[#allocation28 + $0x18] sm:$0xff]  }
 0x1ac   :  { %v4274_v7 = vpack.c.bf16 %v501_v6, %v501_v6  ;;  %2792 = vmatprep.subr.bf16.mxu0 %v3200_v16 }
 0x1ae   :  { %2979 = vmatmul.mubr.msk.bf16.vlgmr.msra.gmra.mrb[0].mxu1 %vm4268_vm5, %v4274_v7 }
 0x1af   :  { %2998 = vmatprep.mubr.msk.bf16.mxu1 %vm3806_vm0, %v3805_v0  ;;  %2793 = vmatpush3.bf16.msra.mxu0 %v3201_v17 }
 0x1b0   :  { %2794 = vmatprep.subr.bf16.mxu0 %v3202_v18  ;;  %2983 = vmatpush3.bf16.msra.mxu1 %v3206_v47 }
 0x1b1   :  { %2984 = vmatprep.subr.bf16.mxu1 %v3805_v0 }
 0x1b3   :  { %2795 = vmatpush3.bf16.msra.mxu0 %v3203_v19 }
 0x1b4   :  { %2796 = vmatprep.subr.bf16.mxu0 %v3204_v20  ;;  %2985 = vmatpush3.bf16.msra.mxu1 %v3207_v48 }
 0x1b5   :  { %2986 = vmatprep.subr.bf16.mxu1 %v3805_v0 }
 0x1b7   :  { %2797 = vmatpush3.bf16.msra.mxu0 %v3205_v21  ;;  %v2616_v21 = vld [vmem:[#allocation8 + $0x4] ss:$0 sm:$0xff] }
 0x1b8   :  { %3002 = vmatprep.subr.bf16.mxu0 %v3805_v0  ;;  %2987 = vmatpush3.bf16.msra.mxu1 %v3208_v49 }
 0x1b9   :  { %2988 = vmatprep.subr.bf16.mxu1 %v3805_v0 }
 0x1bc   :  { %2989 = vmatpush3.bf16.msra.mxu1 %v3209_v50 }
 0x1bd   :  { %2990 = vmatprep.subr.bf16.mxu1 %v3805_v0 }
 0x1c0   :  { %2991 = vmatpush3.bf16.msra.mxu1 %v3210_v51 }
 0x1c1   :  { %2992 = vmatprep.subr.bf16.mxu1 %v3805_v0 }
 0x1c4   :  { %2993 = vmatpush3.bf16.msra.mxu1 %v3211_v53 }
 0x1c5   :  { %2994 = vmatprep.subr.bf16.mxu1 %v3805_v0 }
 0x1c8   :  { %2995 = vmatpush3.bf16.msra.mxu1 %v3212_v55  ;;  %v2617_v55 = vld [vmem:[#allocation8 + $0x5] ss:$0 sm:$0xff] }
 0x1c9   :  { %2996 = vmatprep.subr.bf16.mxu1 %v3805_v0 }
 0x1cc   :  { %2997 = vmatpush3.bf16.msra.mxu1 %v3213_v57 }
 0x236   :  { %v613_v25 = vpop.f32.mrb[0].mxu0 }
 0x237   :  { %v614_v26 = vadd.f32 %v2575_v24, %v613_v25  ;;  %v2960_v29 = vpop.f32.mrb[1].mxu0 }
 0x238   :  { %v616_v30 = vpop.f32.mrb[2].mxu0  ;;  %v3223_v29 = vld [vmem:[#allocation17] sm:$0xff]  }
 0x239   :  { %v2961_v31 = vpop.f32.mrb[3].mxu0  ;;  %619 = vadd.xlane.f32.xlu0 %v614_v26  ;;  %v3224_v30 = vld [vmem:[#allocation17 + $0x48] sm:$0xff]  }
 0x23a   :  { %v3225_v31 = vld [vmem:[#allocation17 + $0x8] sm:$0xff]  }
 0x281   :  { %v763_v33 = vpop.f32.mrb[0].mxu1 }
 0x282   :  { %v764_v34 = vadd.f32 %v2587_v32, %v763_v33  ;;  %v2980_v35 = vpop.f32.mrb[1].mxu1  ;;  %v3226_v32 = vld [vmem:[#allocation17 + $0x50] sm:$0xff]  }
 0x283   :  { %v766_v36 = vpop.f32.mrb[2].mxu1  ;;  %v3227_v33 = vld [vmem:[#allocation17 + $0x10] sm:$0xff]   ;;  %v3229_v35 = vld [vmem:[#allocation17 + $0x18] sm:$0xff]  }
 0x284   :  { %v2599_v37 = vmul.f32 -1.442695, %v764_v34  ;;  %v2981_v38 = vpop.f32.mrb[3].mxu1  ;;  %v3230_v36 = vld [vmem:[#allocation17 + $0x60] sm:$0xff]  }
 0x285   :  { %v3232_v38 = vld [vmem:[#allocation17 + $0x68] sm:$0xff]  }
 0x286   :  { %3324 = vpow2.f32 %v2599_v37  ;;  %v3231_v37 = vld [vmem:[#allocation17 + $0x20] sm:$0xff]  }
 0x290   :  { %v3325_v39 = vpop.eup %3324 }
 0x291   :  { %v772_v40 = vadd.f32 1.0, %v3325_v39  ;;  %v3233_v39 = vld [vmem:[#allocation17 + $0x28] sm:$0xff]  }
 0x293   :  { %3326 = vrcp.f32 %v772_v40  ;;  %v3234_v40 = vld [vmem:[#allocation17 + $0x70] sm:$0xff]  }
 0x29d   :  { %v3327_v28 = vpop.eup %3326 }
 0x29e   :  { %v775_v41 = vmul.f32 %v3327_v28, %v764_v34  ;;  %v3228_v34 = vld [vmem:[#allocation17 + $0x58] sm:$0xff]   ;;  %v3235_v28 = vld [vmem:[#allocation17 + $0x30] sm:$0xff]  }
 0x2a0   :  { %v808_v42 = vpack.c.bf16 %v775_v41, %v775_v41  ;;  %v3236_v41 = vld [vmem:[#allocation17 + $0x78] sm:$0xff]  }
 0x2a2   :  { %939 = vmatmul.mubr.bf16.vlgmr.msra.gmra.mrb[4].mxu0 %v808_v42  ;;  %v3237_v42 = vld [vmem:[#allocation17 + $0x38] sm:$0xff]  }
 0x2a3   :  { %3018 = vmatprep.mubr.msk.bf16.mxu0 %vm3806_vm0, %v3805_v0  ;;  %3003 = vmatpush3.bf16.msra.mxu0 %v3214_v52 }
 0x2a4   :  { %3004 = vmatprep.subr.bf16.mxu0 %v3805_v0 }
 0x2a7   :  { %3005 = vmatpush3.bf16.msra.mxu0 %v3215_v54 }
 0x2a8   :  { %3006 = vmatprep.subr.bf16.mxu0 %v3805_v0 }
 0x2ab   :  { %3007 = vmatpush3.bf16.msra.mxu0 %v3216_v56 }
 0x2ac   :  { %3008 = vmatprep.subr.bf16.mxu0 %v3805_v0 }
 0x2af   :  { %3009 = vmatpush3.bf16.msra.mxu0 %v3217_v58 }
 0x2b0   :  { %3010 = vmatprep.subr.bf16.mxu0 %v3805_v0 }
 0x2b3   :  { %3011 = vmatpush3.bf16.msra.mxu0 %v3218_v59 }
 0x2b4   :  { %3012 = vmatprep.subr.bf16.mxu0 %v3805_v0 }
 0x2b7   :  { %3013 = vmatpush3.bf16.msra.mxu0 %v3219_v60 }
 0x2b8   :  { %3014 = vmatprep.subr.bf16.mxu0 %v3805_v0 }
 0x2bb   :  { %3015 = vmatpush3.bf16.msra.mxu0 %v3220_v61 }
 0x2bc   :  { %3016 = vmatprep.subr.bf16.mxu0 %v3805_v0 }
 0x2bf   :  { %3017 = vmatpush3.bf16.msra.mxu0 %v3221_v62 }
 0x2c0   :  { %3022 = vmatprep.subr.bf16.mxu0 %v3805_v0 }
 0x2c2   :  { %3019 = vmatmul.mubr.msk.bf16.vlgmr.msra.gmra.mrb[8].mxu0 %vm4268_vm5, %v4274_v7 }
 0x2c3   :  { %3038 = vmatprep.mubr.msk.bf16.mxu0 %vm3806_vm0, %v3805_v0 }
 0x2c6   :  { %v620_v43 = vpop.xlane.xlu0 %619 }
 0x2c7   :  { %v622_v44 = vmul.f32 0.0078125, %v620_v43  ;;  %v2629_v43 = vld [vmem:[#allocation8 + $0x8] ss:$0 sm:$0xff] }
 0x2c9   :  { %v623_v45 = vsub.f32 %v614_v26, %v622_v44  ;;  %v3222_v26 = vld [vmem:[#allocation17 + $0x40] sm:$0xff]  }
 0x2ca   :  { %2822 = vmatprep.subr.bf16.mxu1 %v3222_v26  ;;  %v3252_v26 = vld [vmem:[#allocation20 + $0x30] sm:$0xff]  }
 0x2cb   :  { %v624_v46 = vmul.f32 %v623_v45, %v623_v45 }
 0x2cd   :  { %625 = vadd.xlane.f32.xlu0 %v624_v46 }
 0x35a   :  { %v626_v63 = vpop.xlane.xlu0 %625 }
 0x35b   :  { %v627_v1 = vmul.f32 0.0078125, %v626_v63 }
 0x35d   :  { %v628_v2 = vadd.f32 1e-05, %v627_v1 }
 0x35f   :  { %3328 = vrsqrt.f32 %v628_v2 }
 0x369   :  { %v3329_v6 = vpop.eup %3328 }
 0x36a   :  { %v630_v8 = vmul.f32 %v3329_v6, %v623_v45 }
 0x36c   :  { %v637_v10 = vmul.f32 %v2584_v27, %v630_v8 }
 0x36e   :  { %v644_v11 = vadd.f32 %v2585_v9, %v637_v10 }
 0x370   :  { %v2586_v5 = vmul.f32 -1.442695, %v644_v11 }
 0x372   :  { %3330 = vpow2.f32 %v2586_v5  ;;  %v3239_v5 = vld [vmem:[#allocation19 + $0x8] sm:$0xff]  }
 0x375   :  { %v2798_v14 = vpop.f32.mrb[4].mxu0 }
 0x376   :  { %v2799_v15 = vpop.f32.mrb[5].mxu0 }
 0x377   :  { %v2800_v16 = vadd.f32 %v2799_v15, %v2798_v14  ;;  %v2801_v17 = vpop.f32.mrb[6].mxu0  ;;  %v3242_v14 = vld [vmem:[#allocation19 + $0x20] sm:$0xff]  }
 0x378   :  { %v2802_v18 = vpop.f32.mrb[7].mxu0  ;;  %v3246_v15 = vld [vmem:[#allocation20] sm:$0xff]   ;;  %v3247_v17 = vld [vmem:[#allocation20 + $0x8] sm:$0xff]  }
 0x379   :  { %v3244_v18 = vld [vmem:[#allocation19 + $0x30] sm:$0xff]  }
 0x37c   :  { %v3331_v12 = vpop.eup %3330 }
 0x37d   :  { %v648_v13 = vadd.f32 1.0, %v3331_v12  ;;  %v3240_v12 = vld [vmem:[#allocation19 + $0x10] sm:$0xff]  }
 0x37f   :  { %3332 = vrcp.f32 %v648_v13  ;;  %v3241_v13 = vld [vmem:[#allocation19 + $0x18] sm:$0xff]  }
 0x389   :  { %v3333_v19 = vpop.eup %3332 }
 0x38a   :  { %v4307_v20 = vmul.f32 %v3333_v19, %v644_v11  ;;  %v3238_v11 = vld [vmem:[#allocation19] sm:$0xff]   ;;  %v3248_v19 = vld [vmem:[#allocation20 + $0x10] sm:$0xff]  }
 0x38b   :  { %3023 = vmatpush3.bf16.msra.mxu0 %v3238_v11 }
 0x38c   :  { %v946_v22 = vadd.f32 %v2800_v16, %v4307_v20  ;;  %3024 = vmatprep.subr.bf16.mxu0 %v3805_v0  ;;  %v3243_v16 = vld [vmem:[#allocation19 + $0x28] sm:$0xff]  }
 0x38e   :  { %v953_v24 = vadd.f32 %v2616_v21, %v946_v22  ;;  %v3245_v21 = vld [vmem:[#allocation19 + $0x38] sm:$0xff]  }
 0x38f   :  { %3025 = vmatpush3.bf16.msra.mxu0 %v3239_v5  ;;  %v3249_v22 = vld [vmem:[#allocation20 + $0x18] sm:$0xff]  }
 0x390   :  { %v970_v25 = vpack.c.bf16 %v953_v24, %v953_v24  ;;  %3026 = vmatprep.subr.bf16.mxu0 %v3805_v0  ;;  %v3250_v24 = vld [vmem:[#allocation20 + $0x20] sm:$0xff]  }
 0x392   :  { %2999 = vmatmul.mubr.bf16.vlgmr.msra.gmra.mrb[4].mxu1 %v970_v25  ;;  %v3251_v25 = vld [vmem:[#allocation20 + $0x28] sm:$0xff]  }
 0x393   :  { %1382 = vmatprep.mubr.bf16.mxu1 %v4281_v23  ;;  %2823 = vmatpush3.bf16.msra.mxu1 %v3223_v29  ;;  %v3253_v29 = vld [vmem:[#allocation20 + $0x38] sm:$0xff]  }
 0x394   :  { %2824 = vmatprep.subr.bf16.mxu1 %v3224_v30  ;;  %3027 = vmatpush3.bf16.msra.mxu0 %v3240_v12 }
 0x395   :  { %v1208_v44 = vpop.f32.mrb[8].mxu0  ;;  %3028 = vmatprep.subr.bf16.mxu0 %v3805_v0 }
 0x396   :  { %v1209_v45 = vadd.f32 %v2629_v43, %v1208_v44  ;;  %v3020_v46 = vpop.f32.mrb[9].mxu0  ;;  %v2658_v43 = vld [vmem:[#allocation8 + $0x9] ss:$0 sm:$0xff] }
 0x397   :  { %2825 = vmatpush3.bf16.msra.mxu1 %v3225_v31  ;;  %v1211_v47 = vpop.f32.mrb[10].mxu0 }
 0x398   :  { %2826 = vmatprep.subr.bf16.mxu1 %v3226_v32  ;;  %v2641_v48 = vmul.f32 -1.442695, %v1209_v45  ;;  %v3021_v49 = vpop.f32.mrb[11].mxu0  ;;  %3029 = vmatpush3.bf16.msra.mxu0 %v3241_v13  ;;  %v3254_v47 = vld [vmem:[#allocation22 + $0x40] sm:$0xff]  }
 0x399   :  { %3030 = vmatprep.subr.bf16.mxu0 %v3805_v0  ;;  %v3256_v49 = vld [vmem:[#allocation22 + $0x48] sm:$0xff]  }
 0x39a   :  { %3334 = vpow2.f32 %v2641_v48  ;;  %v3255_v48 = vld [vmem:[#allocation22] sm:$0xff]  }
 0x39b   :  { %2827 = vmatpush3.bf16.msra.mxu1 %v3227_v33 }
 0x39c   :  { %2828 = vmatprep.subr.bf16.mxu1 %v3228_v34  ;;  %3031 = vmatpush3.bf16.msra.mxu0 %v3242_v14  ;;  %v2626_v34 = vld [vmem:[#allocation8 + $0x6] ss:$0 sm:$0xff]  ;;  %v2659_v14 = vld [vmem:[#allocation8 + $0xa] ss:$0 sm:$0xff] }
 0x39d   :  { %3032 = vmatprep.subr.bf16.mxu0 %v3805_v0 }
 0x39f   :  { %2829 = vmatpush3.bf16.msra.mxu1 %v3229_v35 }
 0x3a0   :  { %2830 = vmatprep.subr.bf16.mxu1 %v3230_v36  ;;  %3033 = vmatpush3.bf16.msra.mxu0 %v3243_v16  ;;  %v2627_v36 = vld [vmem:[#allocation8 + $0x7] ss:$0 sm:$0xff] }
 0x3a1   :  { %3034 = vmatprep.subr.bf16.mxu0 %v3805_v0 }
 0x3a3   :  { %2831 = vmatpush3.bf16.msra.mxu1 %v3231_v37 }
 0x3a4   :  { %2832 = vmatprep.subr.bf16.mxu1 %v3232_v38  ;;  %v3335_v50 = vpop.eup %3334  ;;  %3035 = vmatpush3.bf16.msra.mxu0 %v3244_v18 }
 0x3a5   :  { %v1217_v51 = vadd.f32 1.0, %v3335_v50  ;;  %3036 = vmatprep.subr.bf16.mxu0 %v3805_v0  ;;  %v3257_v50 = vld [vmem:[#allocation22 + $0x8] sm:$0xff]  }
 0x3a7   :  { %2833 = vmatpush3.bf16.msra.mxu1 %v3233_v39  ;;  %3336 = vrcp.f32 %v1217_v51  ;;  %v3258_v51 = vld [vmem:[#allocation22 + $0x50] sm:$0xff]  }
 0x3a8   :  { %2834 = vmatprep.subr.bf16.mxu1 %v3234_v40  ;;  %3037 = vmatpush3.bf16.msra.mxu0 %v3245_v21 }
 0x3a9   :  { %2862 = vmatprep.subr.bf16.mxu0 %v3254_v47  ;;  %v3283_v47 = vld [vmem:[#allocation25 + $0x28] sm:$0xff]  }
 0x3ab   :  { %2835 = vmatpush3.bf16.msra.mxu1 %v3235_v28 }
 0x3ac   :  { %2836 = vmatprep.subr.bf16.mxu1 %v3236_v41 }
 0x3af   :  { %2837 = vmatpush3.bf16.msra.mxu1 %v3237_v42 }
 0x3b0   :  { %3042 = vmatprep.subr.bf16.mxu1 %v3805_v0 }
 0x3b1   :  { %v3337_v52 = vpop.eup %3336 }
 0x3b2   :  { %v1220_v53 = vmul.f32 %v3337_v52, %v1209_v45  ;;  %v3259_v52 = vld [vmem:[#allocation22 + $0x10] sm:$0xff]  }
 0x3b4   :  { %v1253_v54 = vpack.c.bf16 %v1220_v53, %v1220_v53  ;;  %v3260_v53 = vld [vmem:[#allocation22 + $0x58] sm:$0xff]  }
 0x3b6   :  { %1383 = vmatmul.mubr.bf16.vlgmr.msra.gmra.mrb[8].mxu1 %v1253_v54  ;;  %v3261_v54 = vld [vmem:[#allocation22 + $0x18] sm:$0xff]  }
 0x3b7   :  { %3058 = vmatprep.mubr.msk.bf16.mxu1 %vm3806_vm0, %v3805_v0  ;;  %3043 = vmatpush3.bf16.msra.mxu1 %v3246_v15 }
 0x3b8   :  { %3044 = vmatprep.subr.bf16.mxu1 %v3805_v0 }
 0x3bb   :  { %3045 = vmatpush3.bf16.msra.mxu1 %v3247_v17 }
 0x3bc   :  { %3046 = vmatprep.subr.bf16.mxu1 %v3805_v0 }
 0x3bf   :  { %3047 = vmatpush3.bf16.msra.mxu1 %v3248_v19 }
 0x3c0   :  { %3048 = vmatprep.subr.bf16.mxu1 %v3805_v0 }
 0x3c3   :  { %3049 = vmatpush3.bf16.msra.mxu1 %v3249_v22 }
 0x3c4   :  { %3050 = vmatprep.subr.bf16.mxu1 %v3805_v0 }
 0x3c7   :  { %3051 = vmatpush3.bf16.msra.mxu1 %v3250_v24 }
 0x3c8   :  { %3052 = vmatprep.subr.bf16.mxu1 %v3805_v0 }
 0x3cb   :  { %3053 = vmatpush3.bf16.msra.mxu1 %v3251_v25 }
 0x3cc   :  { %3054 = vmatprep.subr.bf16.mxu1 %v3805_v0 }
 0x3cf   :  { %3055 = vmatpush3.bf16.msra.mxu1 %v3252_v26 }
 0x3d0   :  { %3056 = vmatprep.subr.bf16.mxu1 %v3805_v0 }
 0x3d3   :  { %3057 = vmatpush3.bf16.msra.mxu1 %v3253_v29 }
 0x3d4   :  { %3062 = vmatprep.subr.bf16.mxu1 %v3805_v0 }
 0x3d6   :  { %3059 = vmatmul.mubr.msk.bf16.vlgmr.msra.gmra.mrb[12].mxu1 %vm4268_vm5, %v4274_v7 }
 0x3d7   :  { %3078 = vmatprep.mubr.msk.bf16.mxu1 %vm3806_vm0, %v3805_v0 }
 0x465   :  { %v1059_v56 = vpop.f32.mrb[4].mxu1 }
 0x466   :  { %v1060_v57 = vadd.f32 %v2617_v55, %v1059_v56  ;;  %v3000_v58 = vpop.f32.mrb[5].mxu1  ;;  %v3262_v55 = vld [vmem:[#allocation22 + $0x60] sm:$0xff]  }
 0x467   :  { %v1062_v59 = vpop.f32.mrb[6].mxu1  ;;  %v3263_v56 = vld [vmem:[#allocation22 + $0x20] sm:$0xff]   ;;  %v3265_v58 = vld [vmem:[#allocation22 + $0x28] sm:$0xff]  }
 0x468   :  { %1065 = vadd.xlane.f32.xlu1 %v1060_v57  ;;  %v3001_v60 = vpop.f32.mrb[7].mxu1  ;;  %v3266_v59 = vld [vmem:[#allocation22 + $0x70] sm:$0xff]  }
 0x469   :  { %v3267_v60 = vld [vmem:[#allocation22 + $0x30] sm:$0xff]  }
 0x489   :  { %v2838_v6 = vpop.f32.mrb[8].mxu1 }
 0x48a   :  { %v2839_v27 = vpop.f32.mrb[9].mxu1 }
 0x48b   :  { %v2841_v8 = vpop.f32.mrb[10].mxu1  ;;  %v4321_v10 = vadd.f32 %v2839_v27, %v2838_v6 }
 0x48c   :  { %v2842_v9 = vpop.f32.mrb[11].mxu1 }
 0x4f5   :  { %v1066_v61 = vpop.xlane.xlu1 %1065 }
 0x4f6   :  { %v1067_v62 = vmul.f32 0.015625, %v1066_v61  ;;  %v3268_v61 = vld [vmem:[#allocation22 + $0x78] sm:$0xff]  }
 0x4f8   :  { %v1069_v63 = vsub.f32 %v1060_v57, %v1067_v62  ;;  %v3264_v57 = vld [vmem:[#allocation22 + $0x68] sm:$0xff]   ;;  %v3269_v62 = vld [vmem:[#allocation22 + $0x38] sm:$0xff]  }
 0x4fa   :  { %v4317_v1 = vsel %vm1068_vm1, %v1069_v63, 0.0  ;;  %v2671_v63 = vld [vmem:[#allocation8 + $0xd] ss:$0 sm:$0xff] }
 0x4fb   :  { %v1071_v2 = vmul.f32 %v4317_v1, %v4317_v1 }
 0x4fd   :  { %1072 = vadd.xlane.f32.xlu1 %v1071_v2 }
 0x58a   :  { %v1073_v30 = vpop.xlane.xlu1 %1072 }
 0x58b   :  { %v1074_v31 = vmul.f32 0.015625, %v1073_v30 }
 0x58d   :  { %v1075_v32 = vadd.f32 1e-05, %v1074_v31 }
 0x58f   :  { %3338 = vrsqrt.f32 %v1075_v32 }
 0x599   :  { %v3339_v33 = vpop.eup %3338 }
 0x59a   :  { %v1077_v35 = vmul.f32 %v3339_v33, %v4317_v1  ;;  %v1652_v1 = vpop.f32.mrb[12].mxu1 }
 0x59b   :  { %v1653_v2 = vadd.f32 %v2671_v63, %v1652_v1  ;;  %v3060_v6 = vpop.f32.mrb[13].mxu1 }
 0x59c   :  { %v1084_v37 = vmul.f32 %v2626_v34, %v1077_v35  ;;  %v1655_v27 = vpop.f32.mrb[14].mxu1  ;;  %v3270_v34 = vld [vmem:[#allocation23] sm:$0xff]   ;;  %v3271_v35 = vld [vmem:[#allocation23 + $0x8] sm:$0xff]  }
 0x59d   :  { %v2683_v8 = vmul.f32 -1.442695, %v1653_v2  ;;  %v3061_v9 = vpop.f32.mrb[15].mxu1  ;;  %3063 = vmatpush3.bf16.msra.mxu1 %v3270_v34  ;;  %v3286_v6 = vld [vmem:[#allocation26 + $0x40] sm:$0xff]  }
 0x59e   :  { %v1091_v38 = vadd.f32 %v2627_v36, %v1084_v37  ;;  %3064 = vmatprep.subr.bf16.mxu1 %v3805_v0  ;;  %v3272_v36 = vld [vmem:[#allocation23 + $0x10] sm:$0xff]   ;;  %v3273_v37 = vld [vmem:[#allocation23 + $0x18] sm:$0xff]   ;;  %v3287_v27 = vld [vmem:[#allocation26] sm:$0xff]  }
 0x59f   :  { %v3289_v9 = vld [vmem:[#allocation26 + $0x8] sm:$0xff]  }
 0x5a0   :  { %v2628_v39 = vmul.f32 -1.442695, %v1091_v38 }
 0x5a1   :  { %3065 = vmatpush3.bf16.msra.mxu1 %v3271_v35 }
 0x5a2   :  { %3340 = vpow2.f32 %v2628_v39  ;;  %3066 = vmatprep.subr.bf16.mxu1 %v3805_v0  ;;  %v3278_v39 = vld [vmem:[#allocation25] sm:$0xff]  }
 0x5a5   :  { %3067 = vmatpush3.bf16.msra.mxu1 %v3272_v36  ;;  %v2701_v36 = vld [vmem:[#allocation8 + $0xf] ss:$0 sm:$0xff] }
 0x5a6   :  { %3068 = vmatprep.subr.bf16.mxu1 %v3805_v0 }
 0x5a9   :  { %3069 = vmatpush3.bf16.msra.mxu1 %v3273_v37 }
 0x5aa   :  { %3070 = vmatprep.subr.bf16.mxu1 %v3805_v0 }
 0x5ac   :  { %v3341_v40 = vpop.eup %3340 }
 0x5ad   :  { %v1095_v28 = vadd.f32 1.0, %v3341_v40  ;;  %v3275_v40 = vld [vmem:[#allocation23 + $0x28] sm:$0xff]  }
 0x5af   :  { %3342 = vrcp.f32 %v1095_v28  ;;  %v3279_v28 = vld [vmem:[#allocation25 + $0x8] sm:$0xff]  }
 0x5b0   :  { %3344 = vpow2.f32 %v2683_v8  ;;  %v3288_v8 = vld [vmem:[#allocation26 + $0x48] sm:$0xff]  }
 0x5b9   :  { %v3343_v41 = vpop.eup %3342 }
 0x5ba   :  { %v4344_v42 = vmul.f32 %v3343_v41, %v1091_v38  ;;  %v3274_v38 = vld [vmem:[#allocation23 + $0x20] sm:$0xff]   ;;  %v3276_v41 = vld [vmem:[#allocation23 + $0x30] sm:$0xff]  }
 0x5bb   :  { %3071 = vmatpush3.bf16.msra.mxu1 %v3274_v38 }
 0x5bc   :  { %v1390_v44 = vadd.f32 %v4321_v10, %v4344_v42  ;;  %v3345_v10 = vpop.eup %3344  ;;  %3072 = vmatprep.subr.bf16.mxu1 %v3805_v0 }
 0x5bd   :  { %v1661_v11 = vadd.f32 1.0, %v3345_v10  ;;  %v3290_v10 = vld [vmem:[#allocation26 + $0x50] sm:$0xff]  }
 0x5be   :  { %v1397_v45 = vadd.f32 %v2658_v43, %v1390_v44  ;;  %v3280_v43 = vld [vmem:[#allocation25 + $0x10] sm:$0xff]   ;;  %v3277_v44 = vld [vmem:[#allocation23 + $0x38] sm:$0xff]  }
 0x5bf   :  { %3346 = vrcp.f32 %v1661_v11  ;;  %3073 = vmatpush3.bf16.msra.mxu1 %v3275_v40  ;;  %v3291_v11 = vld [vmem:[#allocation26 + $0x10] sm:$0xff]  }
 0x5c0   :  { %v1414_v46 = vpack.c.bf16 %v1397_v45, %v1397_v45  ;;  %3074 = vmatprep.subr.bf16.mxu1 %v3805_v0  ;;  %v3281_v45 = vld [vmem:[#allocation25 + $0x18] sm:$0xff]  }
 0x5c2   :  { %3039 = vmatmul.mubr.bf16.vlgmr.msra.gmra.mrb[12].mxu0 %v1414_v46  ;;  %v3282_v46 = vld [vmem:[#allocation25 + $0x20] sm:$0xff]  }
 0x5c3   :  { %1826 = vmatprep.mubr.bf16.mxu0 %v4281_v23  ;;  %2863 = vmatpush3.bf16.msra.mxu0 %v3255_v48  ;;  %v3284_v48 = vld [vmem:[#allocation25 + $0x30] sm:$0xff]  }
 0x5c4   :  { %2864 = vmatprep.subr.bf16.mxu0 %v3256_v49  ;;  %3075 = vmatpush3.bf16.msra.mxu1 %v3276_v41  ;;  %v3285_v49 = vld [vmem:[#allocation25 + $0x38] sm:$0xff]  }
 0x5c5   :  { %3076 = vmatprep.subr.bf16.mxu1 %v3805_v0 }
 0x5c7   :  { %2865 = vmatpush3.bf16.msra.mxu0 %v3257_v50 }
 0x5c8   :  { %2866 = vmatprep.subr.bf16.mxu0 %v3258_v51  ;;  %3077 = vmatpush3.bf16.msra.mxu1 %v3277_v44 }
 0x5c9   :  { %v3347_v5 = vpop.eup %3346  ;;  %2902 = vmatprep.subr.bf16.mxu1 %v3286_v6 }
 0x5ca   :  { %v1664_v12 = vmul.f32 %v3347_v5, %v1653_v2  ;;  %v3292_v5 = vld [vmem:[#allocation26 + $0x58] sm:$0xff]  }
 0x5cb   :  { %2867 = vmatpush3.bf16.msra.mxu0 %v3259_v52 }
 0x5cc   :  { %2868 = vmatprep.subr.bf16.mxu0 %v3260_v53  ;;  %v1697_v13 = vpack.c.bf16 %v1664_v12, %v1664_v12  ;;  %v3293_v12 = vld [vmem:[#allocation26 + $0x18] sm:$0xff]  }
 0x5cf   :  { %2869 = vmatpush3.bf16.msra.mxu0 %v3261_v54  ;;  %v2668_v54 = vld [vmem:[#allocation8 + $0xb] ss:$0 sm:$0xff] }
 0x5d0   :  { %2870 = vmatprep.subr.bf16.mxu0 %v3262_v55 }
 0x5d3   :  { %2871 = vmatpush3.bf16.msra.mxu0 %v3263_v56  ;;  %v2669_v56 = vld [vmem:[#allocation8 + $0xc] ss:$0 sm:$0xff] }
 0x5d4   :  { %2872 = vmatprep.subr.bf16.mxu0 %v3264_v57 }
 0x5d7   :  { %2873 = vmatpush3.bf16.msra.mxu0 %v3265_v58 }
 0x5d8   :  { %2874 = vmatprep.subr.bf16.mxu0 %v3266_v59 }
 0x5db   :  { %2875 = vmatpush3.bf16.msra.mxu0 %v3267_v60 }
 0x5dc   :  { %2876 = vmatprep.subr.bf16.mxu0 %v3268_v61 }
 0x5df   :  { %2877 = vmatpush3.bf16.msra.mxu0 %v3269_v62  ;;  %v2700_v62 = vld [vmem:[#allocation8 + $0xe] ss:$0 sm:$0xff] }
 0x5e0   :  { %3082 = vmatprep.subr.bf16.mxu0 %v3805_v0 }
 0x5e2   :  { %1827 = vmatmul.mubr.bf16.vlgmr.msra.gmra.mrb[16].mxu0 %v1697_v13  ;;  %v3294_v13 = vld [vmem:[#allocation26 + $0x60] sm:$0xff]  }
 0x5e3   :  { %3098 = vmatprep.mubr.msk.bf16.mxu0 %vm3806_vm0, %v3805_v0  ;;  %3083 = vmatpush3.bf16.msra.mxu0 %v3278_v39 }
 0x5e4   :  { %3084 = vmatprep.subr.bf16.mxu0 %v3805_v0 }
 0x5e7   :  { %3085 = vmatpush3.bf16.msra.mxu0 %v3279_v28 }
 0x5e8   :  { %3086 = vmatprep.subr.bf16.mxu0 %v3805_v0 }
 0x5eb   :  { %3087 = vmatpush3.bf16.msra.mxu0 %v3280_v43 }
 0x5ec   :  { %3088 = vmatprep.subr.bf16.mxu0 %v3805_v0 }
 0x5ef   :  { %3089 = vmatpush3.bf16.msra.mxu0 %v3281_v45 }
 0x5f0   :  { %3090 = vmatprep.subr.bf16.mxu0 %v3805_v0 }
 0x5f3   :  { %3091 = vmatpush3.bf16.msra.mxu0 %v3282_v46 }
 0x5f4   :  { %3092 = vmatprep.subr.bf16.mxu0 %v3805_v0 }
 0x5f7   :  { %3093 = vmatpush3.bf16.msra.mxu0 %v3283_v47 }
 0x5f8   :  { %3094 = vmatprep.subr.bf16.mxu0 %v3805_v0 }
 0x5fb   :  { %3095 = vmatpush3.bf16.msra.mxu0 %v3284_v48 }
 0x5fc   :  { %3096 = vmatprep.subr.bf16.mxu0 %v3805_v0 }
 0x5ff   :  { %3097 = vmatpush3.bf16.msra.mxu0 %v3285_v49 }
 0x600   :  { %3102 = vmatprep.subr.bf16.mxu0 %v3805_v0 }
 0x602   :  { %3099 = vmatmul.mubr.msk.bf16.vlgmr.msra.gmra.mrb[20].mxu0 %vm4268_vm5, %v4274_v7 }
 0x603   :  { %3118 = vmatprep.mubr.msk.bf16.mxu0 %vm3806_vm0, %v3805_v0 }
 0x695   :  { %v1503_v15 = vpop.f32.mrb[12].mxu0 }
 0x696   :  { %v1504_v16 = vadd.f32 %v2659_v14, %v1503_v15  ;;  %v3040_v17 = vpop.f32.mrb[13].mxu0  ;;  %v3295_v14 = vld [vmem:[#allocation26 + $0x20] sm:$0xff]   ;;  %v3297_v15 = vld [vmem:[#allocation26 + $0x28] sm:$0xff]  }
 0x697   :  { %v1506_v18 = vpop.f32.mrb[14].mxu0  ;;  %v3299_v17 = vld [vmem:[#allocation26 + $0x30] sm:$0xff]  }
 0x698   :  { %1509 = vadd.xlane.f32.xlu0 %v1504_v16  ;;  %v3041_v19 = vpop.f32.mrb[15].mxu0  ;;  %v3300_v18 = vld [vmem:[#allocation26 + $0x78] sm:$0xff]  }
 0x699   :  { %v3301_v19 = vld [vmem:[#allocation26 + $0x38] sm:$0xff]  }
 0x6b5   :  { %v2878_v29 = vpop.f32.mrb[16].mxu0 }
 0x6b6   :  { %v2879_v30 = vpop.f32.mrb[17].mxu0 }
 0x6b7   :  { %v2881_v31 = vpop.f32.mrb[18].mxu0  ;;  %v4357_v33 = vadd.f32 %v2879_v30, %v2878_v29 }
 0x6b8   :  { %v2882_v32 = vpop.f32.mrb[19].mxu0 }
 0x725   :  { %v1510_v21 = vpop.xlane.xlu0 %1509 }
 0x726   :  { %v1511_v22 = vmul.f32 0.03125, %v1510_v21  ;;  %v2713_v21 = vld [vmem:[#allocation8 + $0x12] ss:$0 sm:$0xff] }
 0x728   :  { %v1513_v24 = vsub.f32 %v1504_v16, %v1511_v22  ;;  %v3298_v16 = vld [vmem:[#allocation26 + $0x70] sm:$0xff]   ;;  %v2096_v22 = vpop.f32.mrb[20].mxu0 }
 0x72a   :  { %v4353_v25 = vsel %vm1512_vm6, %v1513_v24, 0.0  ;;  %v2097_v24 = vadd.f32 %v2713_v21, %v2096_v22 }
 0x72b   :  { %v1515_v26 = vmul.f32 %v4353_v25, %v4353_v25 }
 0x72c   :  { %v2725_v29 = vmul.f32 -1.442695, %v2097_v24 }
 0x72d   :  { %1516 = vadd.xlane.f32.xlu1 %v1515_v26 }
 0x7ba   :  { %v1517_v50 = vpop.xlane.xlu1 %1516 }
 0x7bb   :  { %v1518_v51 = vmul.f32 0.03125, %v1517_v50 }
 0x7bd   :  { %v1519_v52 = vadd.f32 1e-05, %v1518_v51 }
 0x7bf   :  { %3348 = vrsqrt.f32 %v1519_v52  ;;  %v3302_v52 = vld [vmem:[#allocation28] sm:$0xff]  }
 0x7c0   :  { %3103 = vmatpush3.bf16.msra.mxu0 %v3302_v52 }
 0x7c1   :  { %3104 = vmatprep.subr.bf16.mxu0 %v3805_v0 }
 0x7c9   :  { %v3349_v53 = vpop.eup %3348 }
 0x7ca   :  { %v1521_v55 = vmul.f32 %v3349_v53, %v4353_v25  ;;  %v3100_v25 = vpop.f32.mrb[21].mxu0  ;;  %v3303_v53 = vld [vmem:[#allocation28 + $0x8] sm:$0xff]  }
 0x7cb   :  { %v2099_v26 = vpop.f32.mrb[22].mxu0  ;;  %3105 = vmatpush3.bf16.msra.mxu0 %v3303_v53 }
 0x7cc   :  { %v1528_v57 = vmul.f32 %v2668_v54, %v1521_v55  ;;  %v3101_v30 = vpop.f32.mrb[23].mxu0  ;;  %3106 = vmatprep.subr.bf16.mxu0 %v3805_v0  ;;  %v3304_v54 = vld [vmem:[#allocation28 + $0x10] sm:$0xff]   ;;  %v3306_v55 = vld [vmem:[#allocation28 + $0x20] sm:$0xff]   ;;  %v3311_v26 = vld [vmem:[%s4456_s17 + $0x8] sm:$0xff]  }
 0x7cd   :  { %v3313_v30 = vld [vmem:[%s4456_s17 + $0x18] sm:$0xff]  }
 0x7ce   :  { %v1535_v58 = vadd.f32 %v2669_v56, %v1528_v57  ;;  %v3307_v56 = vld [vmem:[#allocation28 + $0x28] sm:$0xff]   ;;  %v3308_v57 = vld [vmem:[#allocation28 + $0x30] sm:$0xff]  }
 0x7cf   :  { %3107 = vmatpush3.bf16.msra.mxu0 %v3304_v54 }
 0x7d0   :  { %v2670_v59 = vmul.f32 -1.442695, %v1535_v58  ;;  %3108 = vmatprep.subr.bf16.mxu0 %v3805_v0 }
 0x7d2   :  { %3350 = vpow2.f32 %v2670_v59 }
 0x7d3   :  { %3109 = vmatpush3.bf16.msra.mxu0 %v3305_v3 }
 0x7d4   :  { %3110 = vmatprep.subr.bf16.mxu0 %v3805_v0 }
 0x7d7   :  { %3111 = vmatpush3.bf16.msra.mxu0 %v3306_v55 }
 0x7d8   :  { %3112 = vmatprep.subr.bf16.mxu0 %v3805_v0 }
 0x7db   :  { %3113 = vmatpush3.bf16.msra.mxu0 %v3307_v56 }
 0x7dc   :  { %v3351_v60 = vpop.eup %3350  ;;  %3114 = vmatprep.subr.bf16.mxu0 %v3805_v0 }
 0x7dd   :  { %v1539_v61 = vadd.f32 1.0, %v3351_v60 }
 0x7df   :  { %3352 = vrcp.f32 %v1539_v61  ;;  %3115 = vmatpush3.bf16.msra.mxu0 %v3308_v57 }
 0x7e0   :  { %3354 = vpow2.f32 %v2725_v29  ;;  %3116 = vmatprep.subr.bf16.mxu0 %v3805_v0  ;;  %v3312_v29 = vld [vmem:[%s4456_s17 + $0x10] sm:$0xff]  }
 0x7e9   :  { %v3353_v4 = vpop.eup %3352 }
 0x7ea   :  { %v1542_v7 = vmul.f32 %v3353_v4, %v1535_v58  ;;  %v3355_v31 = vpop.eup %3354  ;;  %v3309_v58 = vld [vmem:[#allocation28 + $0x38] sm:$0xff]  }
 0x7eb   :  { %v2105_v32 = vadd.f32 1.0, %v3355_v31  ;;  %3117 = vmatpush3.bf16.msra.mxu0 %v3309_v58  ;;  %v3314_v31 = vld [vmem:[%s4456_s17 + $0x20] sm:$0xff]  }
 0x7ec   :  { %v1834_v63 = vadd.f32 %v4357_v33, %v1542_v7  ;;  %v2710_v7 = vld [vmem:[#allocation8 + $0x10] ss:$0 sm:$0xff] }
 0x7ed   :  { %3356 = vrcp.f32 %v2105_v32  ;;  %v3315_v32 = vld [vmem:[%s4456_s17 + $0x28] sm:$0xff]  }
 0x7ee   :  { %v1841_v1 = vadd.f32 %v2700_v62, %v1834_v63  ;;  %v2711_v63 = vld [vmem:[#allocation8 + $0x11] ss:$0 sm:$0xff] }
 0x7f0   :  { %v1858_v2 = vpack.c.bf16 %v1841_v1, %v1841_v1 }
 0x7f2   :  { %3079 = vmatmul.mubr.bf16.vlgmr.msra.gmra.mrb[16].mxu1 %v1858_v2 }
 0x7f3   :  { %2270 = vmatprep.mubr.bf16.mxu1 %v4281_v23  ;;  %2903 = vmatpush3.bf16.msra.mxu1 %v3287_v27  ;;  %v3296_v23 = vld [vmem:[#allocation26 + $0x68] sm:$0xff]  }
 0x7f4   :  { %2904 = vmatprep.subr.bf16.mxu1 %v3288_v8 }
 0x7f7   :  { %2905 = vmatpush3.bf16.msra.mxu1 %v3289_v9  ;;  %v3357_v33 = vpop.eup %3356 }
 0x7f8   :  { %2906 = vmatprep.subr.bf16.mxu1 %v3290_v10  ;;  %v2108_v34 = vmul.f32 %v3357_v33, %v2097_v24  ;;  %v3316_v33 = vld [vmem:[%s4456_s17 + $0x30] sm:$0xff]  }
 0x7fa   :  { %v2141_v35 = vpack.c.bf16 %v2108_v34, %v2108_v34  ;;  %v3317_v34 = vld [vmem:[%s4456_s17 + $0x38] sm:$0xff]  }
 0x7fb   :  { %2907 = vmatpush3.bf16.msra.mxu1 %v3291_v11 }
 0x7fc   :  { %2908 = vmatprep.subr.bf16.mxu1 %v3292_v5  ;;  %v2742_v5 = vld [vmem:[#allocation8 + $0x13] ss:$0 sm:$0xff] }
 0x7ff   :  { %2909 = vmatpush3.bf16.msra.mxu1 %v3293_v12 }
 0x800   :  { %2910 = vmatprep.subr.bf16.mxu1 %v3294_v13 }
 0x803   :  { %2911 = vmatpush3.bf16.msra.mxu1 %v3295_v14 }
 0x804   :  { %2912 = vmatprep.subr.bf16.mxu1 %v3296_v23  ;;  %v2743_v23 = vld [vmem:[#allocation8 + $0x14] ss:$0 sm:$0xff] }
 0x807   :  { %2913 = vmatpush3.bf16.msra.mxu1 %v3297_v15 }
 0x808   :  { %2914 = vmatprep.subr.bf16.mxu1 %v3298_v16 }
 0x80b   :  { %2915 = vmatpush3.bf16.msra.mxu1 %v3299_v17 }
 0x80c   :  { %2916 = vmatprep.subr.bf16.mxu1 %v3300_v18 }
 0x80f   :  { %2917 = vmatpush3.bf16.msra.mxu1 %v3301_v19 }
 0x810   :  { %3122 = vmatprep.subr.bf16.mxu1 %v3805_v0 }
 0x812   :  { %2271 = vmatmul.mubr.bf16.vlgmr.msra.gmra.mrb[20].mxu1 %v2141_v35 }
 0x813   :  { %3138 = vmatprep.mubr.msk.bf16.mxu1 %vm3806_vm0, %v3805_v0 }
 0x8c5   :  { %v1947_v37 = vpop.f32.mrb[16].mxu1 }
 0x8c6   :  { %v1948_v38 = vadd.f32 %v2701_v36, %v1947_v37  ;;  %v3080_v39 = vpop.f32.mrb[17].mxu1 }
 0x8c7   :  { %v1950_v40 = vpop.f32.mrb[18].mxu1  ;;  %v2752_v39 = vld [vmem:[#allocation8 + $0x15] ss:$0 sm:$0xff] }
 0x8c8   :  { %1953 = vadd.xlane.f32.xlu0 %v1948_v38  ;;  %v3081_v28 = vpop.f32.mrb[19].mxu1 }
 0x8c9   :  { %v2753_v28 = vld [vmem:[#allocation8 + $0x16] ss:$0 sm:$0xff] }
 0x8e5   :  { %v2918_v47 = vpop.f32.mrb[20].mxu1 }
 0x8e6   :  { %v2919_v48 = vpop.f32.mrb[21].mxu1 }
 0x8e7   :  { %v2921_v49 = vpop.f32.mrb[22].mxu1  ;;  %v2920_v51 = vadd.f32 %v2919_v48, %v2918_v47 }
 0x8e8   :  { %v2922_v50 = vpop.f32.mrb[23].mxu1 }
 0x8e9   :  { %v2755_v50 = vld [vmem:[#allocation8 + $0x17] ss:$0 sm:$0xff] }
 0x955   :  { %v1954_v41 = vpop.xlane.xlu0 %1953 }
 0x956   :  { %v1955_v43 = vmul.f32 0.015625, %v1954_v41 }
 0x958   :  { %v1956_v44 = vsub.f32 %v1948_v38, %v1955_v43 }
 0x95a   :  { %v1957_v45 = vsel %vm1068_vm1, %v1956_v44, 0.0 }
 0x95b   :  { %v1958_v46 = vmul.f32 %v1957_v45, %v1957_v45 }
 0x95d   :  { %1959 = vadd.xlane.f32.xlu1 %v1958_v46 }
 0x9ea   :  { %v1960_v59 = vpop.xlane.xlu1 %1959 }
 0x9eb   :  { %v1961_v60 = vmul.f32 0.015625, %v1960_v59 }
 0x9ed   :  { %v1962_v61 = vadd.f32 1e-05, %v1961_v60 }
 0x9ef   :  { %3358 = vrsqrt.f32 %v1962_v61 }
 0x9f9   :  { %v3359_v4 = vpop.eup %3358 }
 0x9fa   :  { %v1964_v62 = vmul.f32 %v3359_v4, %v1957_v45 }
 0x9fc   :  { %v1971_v1 = vmul.f32 %v2710_v7, %v1964_v62 }
 0x9fe   :  { %v1978_v2 = vadd.f32 %v2711_v63, %v1971_v1 }
 0xa00   :  { %v2712_v6 = vmul.f32 -1.442695, %v1978_v2 }
 0xa02   :  { %3360 = vpow2.f32 %v2712_v6 }
 0xa0c   :  { %v3361_v27 = vpop.eup %3360 }
 0xa0d   :  { %v1982_v8 = vadd.f32 1.0, %v3361_v27 }
 0xa0f   :  { %3362 = vrcp.f32 %v1982_v8 }
 0xa19   :  { %v3363_v9 = vpop.eup %3362 }
 0xa1a   :  { %v1985_v10 = vmul.f32 %v3363_v9, %v1978_v2 }
 0xa1c   :  { %v1986_v11 = vadd.f32 %v1985_v10, %v4344_v42  ;;  %v3310_v42 = vld [vmem:[%s4456_s17] sm:$0xff]   ;;  %s3813_s17 = smov [#allocation29]  }
 0xa1d   :  { %3123 = vmatpush3.bf16.msra.mxu1 %v3310_v42  ;;  %s2549_s8 = sshll.u32 %s3813_s17, 4  ;;  %s2550_s8 = int_to_ptr.vmem [resolvable:$true] %s2549_s8 }
 0xa1e   :  { %v2278_v12 = vadd.f32 %v2920_v51, %v1986_v11  ;;  %3124 = vmatprep.subr.bf16.mxu1 %v3805_v0  ;;  %s3744_s3 = scalar_lea.vmem %s2550_s8, 128  ;;  %p3749_p11 = scmp.lt.s32.totalorder %s2550_s8, %s2550_s8 }
 0xa1f   :  { %p3745_p10 = scmp.ne.s32.totalorder %s2550_s8, %s3744_s3  ;;  %p3750_p12 = scmp.lt.s32.totalorder %s3744_s3, %s3744_s3 }
 0xa20   :  { %v2285_v13 = vadd.f32 %v2742_v5, %v2278_v12 }
 0xa21   :  { %3125 = vmatpush3.bf16.msra.mxu1 %v3311_v26  ;;  %p3751_p13 = por %p3750_p12, %p3749_p11 }
 0xa22   :  { %v2302_v14 = vpack.c.bf16 %v2285_v13, %v2285_v13  ;;  %3126 = vmatprep.subr.bf16.mxu1 %v3805_v0 }
 0xa23   :  { %p3752_p0 = pnand %p3751_p13, %p3745_p10 }
 0xa24   :  { %3119 = vmatmul.mubr.bf16.vlgmr.msra.gmra.mrb[24].mxu0 %v2302_v14 }
 0xa25   :  { %3127 = vmatpush3.bf16.msra.mxu1 %v3312_v29 }
 0xa26   :  { %3128 = vmatprep.subr.bf16.mxu1 %v3805_v0 }
 0xa29   :  { %3129 = vmatpush3.bf16.msra.mxu1 %v3313_v30 }
 0xa2a   :  { %3130 = vmatprep.subr.bf16.mxu1 %v3805_v0 }
 0xa2d   :  { %3131 = vmatpush3.bf16.msra.mxu1 %v3314_v31 }
 0xa2e   :  { %3132 = vmatprep.subr.bf16.mxu1 %v3805_v0 }
 0xa31   :  { %3133 = vmatpush3.bf16.msra.mxu1 %v3315_v32 }
 0xa32   :  { %3134 = vmatprep.subr.bf16.mxu1 %v3805_v0 }
 0xa35   :  { %3135 = vmatpush3.bf16.msra.mxu1 %v3316_v33 }
 0xa36   :  { %3136 = vmatprep.subr.bf16.mxu1 %v3805_v0 }
 0xa39   :  { %3137 = vmatpush3.bf16.msra.mxu1 %v3317_v34 }
 0xaf7   :  { %v2391_v15 = vpop.f32.mrb[24].mxu0 }
 0xaf8   :  { %v2392_v16 = vadd.f32 %v2743_v23, %v2391_v15  ;;  %v3120_v17 = vpop.f32.mrb[25].mxu0 }
 0xaf9   :  { %v2394_v18 = vpop.f32.mrb[26].mxu0 }
 0xafa   :  { %2397 = vadd.xlane.f32.xlu0 %v2392_v16  ;;  %v3121_v19 = vpop.f32.mrb[27].mxu0 }
 0xb87   :  { %v2398_v21 = vpop.xlane.xlu0 %2397 }
 0xb88   :  { %v2399_v22 = vmul.f32 0.0078125, %v2398_v21 }
 0xb8a   :  { %v2400_v24 = vsub.f32 %v2392_v16, %v2399_v22 }
 0xb8c   :  { %v2401_v25 = vmul.f32 %v2400_v24, %v2400_v24 }
 0xb8e   :  { %2402 = vadd.xlane.f32.xlu1 %v2401_v25 }
 0xc1b   :  { %v2403_v35 = vpop.xlane.xlu1 %2402 }
 0xc1c   :  { %v2404_v36 = vmul.f32 0.0078125, %v2403_v35 }
 0xc1e   :  { %v2405_v37 = vadd.f32 1e-05, %v2404_v36 }
 0xc20   :  { %3364 = vrsqrt.f32 %v2405_v37 }
 0xc2a   :  { %v3365_v38 = vpop.eup %3364 }
 0xc2b   :  { %v2407_v40 = vmul.f32 %v3365_v38, %v2400_v24 }
 0xc2d   :  { %v2414_v41 = vmul.f32 %v2752_v39, %v2407_v40 }
 0xc2f   :  { %v2421_v43 = vadd.f32 %v2753_v28, %v2414_v41 }
 0xc31   :  { %v2754_v44 = vmul.f32 -1.442695, %v2421_v43 }
 0xc33   :  { %3366 = vpow2.f32 %v2754_v44 }
 0xc3d   :  { %v3367_v45 = vpop.eup %3366 }
 0xc3e   :  { %v2425_v46 = vadd.f32 1.0, %v3367_v45 }
 0xc40   :  { %3368 = vrcp.f32 %v2425_v46 }
 0xc4a   :  { %v3369_v47 = vpop.eup %3368 }
 0xc4b   :  { %v2428_v48 = vmul.f32 %v3369_v47, %v2421_v43 }
 0xc4d   :  { %v2429_v0 = vadd.f32 %v2428_v48, %v4307_v20 }
 0xc4f   :  { %v2447_v49 = vpack.c.bf16 %v2429_v0, %v2429_v0 }
 0xc51   :  { %3139 = vmatmul.mubr.bf16.vlgmr.msra.gmra.mrb[24].mxu1 %v2447_v49 }
 0xd24   :  { %v2536_v51 = vpop.f32.mrb[24].mxu1 }
 0xd25   :  { %v2537_v52 = vadd.f32 %v2755_v50, %v2536_v51  ;;  %v3140_v53 = vpop.f32.mrb[25].mxu1 }
 0xd26   :  { %v2539_v54 = vpop.f32.mrb[26].mxu1 }
 0xd27   :  { %2542 = vst [vmem:[#allocation29] sm:$0xff] %v2537_v52  ;;  %v3141_v3 = vpop.f32.mrb[27].mxu1 }
 0xd28   :  { %3755 = shalt.err (!%p3752_p0)
}
 0xd29   :  { %s3756_s21 = scalar_lea.hbm %s4457_s18, 128 }
 0xd2a   :  { %p3757_p1 = scmp.ne.s32.totalorder %s4457_s18, %s3756_s21  ;;  %p3760_p2 = scmp.lt.u32.totalorder %s3756_s21, %s4457_s18 }
 0xd2c   :  { %p3762_p3 = pnand %p3760_p2, %p3757_p1 }
 0xd2e   :  { %3765 = shalt.err (!%p3762_p3)
}
 0xd2f   :  { %2552 = dma.vmem_to_hbm [thread:$0]  %s2550_s8, 128, %s4457_s18, [#allocation4]  }
 0xd30   :  { %3784 = dma.done.wait [#allocation4], 128  }
 0xd31   :  { %3785 = vsyncadd [#allocation4], 4294967168 }
 0xd32   :  { %2556 = vsyncpa [#allocation3], 1 }
 0xd33   :  { %2557 = vsyncpa [#allocation6], 1 }
 0xd34   :  { %2558 = vsyncpa [#allocation9], 1 }
 0xd35   :  { %2559 = vsyncpa [#allocation12], 1 }
 0xd36   :  { %2560 = vsyncpa [#allocation15], 1 }
 0xd37   :  { %2561 = vsyncpa [#allocation18], 1 }
 0xd38   :  { %2562 = vsyncpa [#allocation21], 1 }
 0xd39   :  { %2563 = vsyncpa [#allocation24], 1 }
 0xd3a   :  { %2564 = vsyncpa [#allocation27], 1 }
 0xd3b   :  { %2565 = vsyncpa [#allocation4], 1 }

// kernel: tpu_custom_call.1
= control target key start
LH: loop header
LB: loop body
LE: loop exit
PB: predicated region body
PF: predicated region fallthrough
CT: control target
= control target key end

     0   :  { %s4439_s0 = inlined_call_operand.hbm [shape: f32[8,128], index: 0, kind: input, shape index: {}]   ;;  %s4440_s1 = inlined_call_operand.hbm [shape: f32[8,128], index: 1, kind: input, shape index: {}]   ;;  %s4441_s2 = inlined_call_operand.hbm [shape: f32[8,128], index: 2, kind: input, shape index: {}]   ;;  %s4442_s3 = inlined_call_operand.hbm [shape: f32[1,3072], index: 3, kind: input, shape index: {}]   ;;  %s4443_s4 = inlined_call_operand.hbm [shape: bf16[128,128], index: 4, kind: input, shape index: {}]   ;;  %s4444_s5 = inlined_call_operand.hbm [shape: bf16[128,128], index: 5, kind: input, shape index: {}]   ;;  %s4445_s6 = inlined_call_operand.hbm [shape: bf16[256,128], index: 6, kind: input, shape index: {}]   ;;  %s4446_s7 = inlined_call_operand.hbm [shape: bf16[128,128], index: 7, kind: input, shape index: {}]   ;;  %s4447_s8 = inlined_call_operand.hbm [shape: bf16[128,128], index: 8, kind: input, shape index: {}]   ;;  %s4448_s9 = inlined_call_operand.hbm [shape: bf16[256,128], index: 9, kind: input, shape index: {}]   ;;  %s4449_s10 = inlined_call_operand.hbm [shape: bf16[128,128], index: 10, kind: input, shape index: {}]   ;;  %s4450_s11 = inlined_call_operand.hbm [shape: bf16[128,128], index: 11, kind: input, shape index: {}]   ;;  %s4451_s12 = inlined_call_operand.hbm [shape: bf16[256,128], index: 12, kind: input, shape index: {}]   ;;  %s4452_s13 = inlined_call_operand.hbm [shape: bf16[128,128], index: 13, kind: input, shape index: {}]   ;;  %s4453_s14 = inlined_call_operand.hbm [shape: bf16[128,128], index: 14, kind: input, shape index: {}]   ;;  %s4454_s15 = inlined_call_operand.hbm [shape: bf16[256,128], index: 15, kind: input, shape index: {}]   ;;  %s4455_s16 = inlined_call_operand.hbm [shape: bf16[128,128], index: 16, kind: input, shape index: {}]   ;;  %s4456_s17 = inlined_call_operand.vmem [shape: bf16[128,128], index: 17, kind: input, shape index: {}]   ;;  %s4457_s18 = inlined_call_operand.hbm [shape: f32[8,128], index: 18, kind: output, shape index: {}]  }
   0x1   :  { %4461 = sst [smem:[#allocation40_spill]] %s4439_s0 }
   0x2   :  { %4462 = sst [smem:[#allocation41_spill]] %s4440_s1 }
   0x3   :  { %4463 = sst [smem:[#allocation42_spill]] %s4441_s2 }
   0x4   :  { %23 = vsyncpa [#allocation3], 0 }
   0x5   :  { %24 = vsyncpa [#allocation6], 0 }
   0x6   :  { %25 = vsyncpa [#allocation9], 0 }
   0x7   :  { %26 = vsyncpa [#allocation12], 0 }
   0x8   :  { %27 = vsyncpa [#allocation15], 0 }
   0x9   :  { %28 = vsyncpa [#allocation18], 0 }
   0xa   :  { %29 = vsyncpa [#allocation21], 0 }
   0xb   :  { %30 = vsyncpa [#allocation24], 0 }
   0xc   :  { %31 = vsyncpa [#allocation27], 0 }
   0xd   :  { %32 = vsyncpa [#allocation4], 0  ;;  %s3786_s27 = smov [#allocation5]   ;;  %s3787_s29 = smov [#allocation8]  }
   0xe   :  { %s49_s28 = sshll.u32 %s3786_s27, 4  ;;  %s69_s30 = sshll.u32 %s3787_s29, 4  ;;  %s50_s28 = int_to_ptr.vmem [resolvable:$true] %s49_s28  ;;  %s70_s30 = int_to_ptr.vmem [resolvable:$true] %s69_s30 }
   0xf   :  { %s4464_s1 = sld [smem:[#allocation41_spill]] }
  0x15   :  { %s3370_s20 = scalar_lea.hbm %s4464_s1, 128 }
  0x16   :  { %p3371_p0 = scmp.ne.s32.totalorder %s4464_s1, %s3370_s20  ;;  %p3374_p1 = scmp.lt.u32.totalorder %s3370_s20, %s4464_s1 }
  0x18   :  { %p3376_p2 = pnand %p3374_p1, %p3371_p0 }
  0x1a   :  { %3379 = shalt.err (!%p3376_p2)
}
  0x1b   :  { %s3380_s24 = scalar_lea.vmem %s50_s28, 128  ;;  %p3385_p4 = scmp.lt.s32.totalorder %s50_s28, %s50_s28 }
  0x1c   :  { %p3381_p3 = scmp.ne.s32.totalorder %s50_s28, %s3380_s24  ;;  %p3386_p5 = scmp.lt.s32.totalorder %s3380_s24, %s3380_s24 }
  0x1e   :  { %p3387_p6 = por %p3386_p5, %p3385_p4 }
  0x20   :  { %p3388_p7 = pnand %p3387_p6, %p3381_p3 }
  0x22   :  { %3391 = shalt.err (!%p3388_p7)
}
  0x23   :  { %52 = dma.hbm_to_vmem [thread:$0]  %s4464_s1, 128, %s50_s28, [#allocation6]  }
  0x24   :  { %s3392_s0 = scalar_lea.hbm %s4442_s3, 384 }
  0x25   :  { %p3393_p8 = scmp.ne.s32.totalorder %s4442_s3, %s3392_s0  ;;  %p3396_p9 = scmp.lt.u32.totalorder %s3392_s0, %s4442_s3 }
  0x27   :  { %p3398_p10 = pnand %p3396_p9, %p3393_p8 }
  0x29   :  { %3401 = shalt.err (!%p3398_p10)
}
  0x2a   :  { %s3402_s2 = scalar_lea.vmem %s70_s30, 384  ;;  %p3407_p12 = scmp.lt.s32.totalorder %s70_s30, %s70_s30 }
  0x2b   :  { %p3403_p11 = scmp.ne.s32.totalorder %s70_s30, %s3402_s2  ;;  %p3408_p13 = scmp.lt.s32.totalorder %s3402_s2, %s3402_s2 }
  0x2d   :  { %p3409_p0 = por %p3408_p13, %p3407_p12 }
  0x2f   :  { %p3410_p1 = pnand %p3409_p0, %p3403_p11 }
  0x31   :  { %3413 = shalt.err (!%p3410_p1)
}
  0x32   :  { %72 = dma.hbm_to_vmem [thread:$0]  %s4442_s3, 384, %s70_s30, [#allocation9]  }
  0x33   :  { %s3788_s23 = smov [#allocation11]   ;;  %s3789_s25 = smov [#allocation14]  }
  0x34   :  { %s90_s24 = sshll.u32 %s3788_s23, 4  ;;  %s114_s26 = sshll.u32 %s3789_s25, 4  ;;  %s91_s24 = int_to_ptr.vmem [resolvable:$true] %s90_s24  ;;  %s3933_s26 = int_to_ptr.vmem [resolvable:$true] %s114_s26 }
  0x35   :  { %s3414_s0 = scalar_lea.hbm %s4444_s5, 1024 }
  0x36   :  { %p3415_p2 = scmp.ne.s32.totalorder %s4444_s5, %s3414_s0  ;;  %p3418_p3 = scmp.lt.u32.totalorder %s3414_s0, %s4444_s5 }
  0x38   :  { %p3420_p4 = pnand %p3418_p3, %p3415_p2 }
  0x3a   :  { %3423 = shalt.err (!%p3420_p4)
}
  0x3b   :  { %s3424_s3 = scalar_lea.vmem %s91_s24, 1024  ;;  %p3429_p6 = scmp.lt.s32.totalorder %s91_s24, %s91_s24 }
  0x3c   :  { %p3425_p5 = scmp.ne.s32.totalorder %s91_s24, %s3424_s3  ;;  %p3430_p7 = scmp.lt.s32.totalorder %s3424_s3, %s3424_s3 }
  0x3e   :  { %p3431_p8 = por %p3430_p7, %p3429_p6 }
  0x40   :  { %p3432_p9 = pnand %p3431_p8, %p3425_p5 }
  0x42   :  { %3435 = shalt.err (!%p3432_p9)
}
  0x43   :  { %s3790_s30 = smov 64   ;;  %s3791_s2 = smov 4  }
  0x44   :  { %96 = dma.hbm_to_vmem [thread:$0]  %s4444_s5, 1024, %s91_s24, [#allocation12], %s3790_s30, %s3790_s30, %s3791_s2  }
  0x45   :  { %s3436_s27 = scalar_lea.hbm %s4446_s7, 1024 }
  0x46   :  { %p3437_p10 = scmp.ne.s32.totalorder %s4446_s7, %s3436_s27  ;;  %p3440_p11 = scmp.lt.u32.totalorder %s3436_s27, %s4446_s7 }
  0x48   :  { %p3442_p12 = pnand %p3440_p11, %p3437_p10 }
  0x4a   :  { %3445 = shalt.err (!%p3442_p12)
}
  0x4b   :  { %s3446_s20 = scalar_lea.vmem %s3933_s26, 1024  ;;  %p3451_p0 = scmp.lt.s32.totalorder %s3933_s26, %s3933_s26 }
  0x4c   :  { %p3447_p13 = scmp.ne.s32.totalorder %s3933_s26, %s3446_s20  ;;  %p3452_p1 = scmp.lt.s32.totalorder %s3446_s20, %s3446_s20 }
  0x4e   :  { %p3453_p2 = por %p3452_p1, %p3451_p0 }
  0x50   :  { %p3454_p3 = pnand %p3453_p2, %p3447_p13 }
  0x52   :  { %3457 = shalt.err (!%p3454_p3)
}
  0x53   :  { %120 = dma.hbm_to_vmem [thread:$0]  %s4446_s7, 1024, %s3933_s26, [#allocation15], %s3790_s30, %s3790_s30, %s3791_s2  }
  0x54   :  { %s3792_s22 = smov [#allocation17]   ;;  %s3793_s28 = smov [#allocation20]  }
  0x55   :  { %s138_s3 = sshll.u32 %s3792_s22, 4  ;;  %s162_s1 = sshll.u32 %s3793_s28, 4  ;;  %s139_s3 = int_to_ptr.vmem [resolvable:$true] %s138_s3  ;;  %s3970_s1 = int_to_ptr.vmem [resolvable:$true] %s162_s1 }
  0x56   :  { %s3458_s27 = scalar_lea.hbm %s4448_s9, 2048 }
  0x57   :  { %p3459_p4 = scmp.ne.s32.totalorder %s4448_s9, %s3458_s27  ;;  %p3462_p5 = scmp.lt.u32.totalorder %s3458_s27, %s4448_s9 }
  0x59   :  { %p3464_p6 = pnand %p3462_p5, %p3459_p4 }
  0x5b   :  { %3467 = shalt.err (!%p3464_p6)
}
  0x5c   :  { %s3468_s7 = scalar_lea.vmem %s139_s3, 2048  ;;  %p3473_p8 = scmp.lt.s32.totalorder %s139_s3, %s139_s3 }
  0x5d   :  { %p3469_p7 = scmp.ne.s32.totalorder %s139_s3, %s3468_s7  ;;  %p3474_p9 = scmp.lt.s32.totalorder %s3468_s7, %s3468_s7 }
  0x5f   :  { %p3475_p10 = por %p3474_p9, %p3473_p8 }
  0x61   :  { %p3476_p11 = pnand %p3475_p10, %p3469_p7 }
  0x63   :  { %3479 = shalt.err (!%p3476_p11)
}
  0x64   :  { %144 = dma.hbm_to_vmem [thread:$0]  %s4448_s9, 2048, %s139_s3, [#allocation18], %s3790_s30, %s3790_s30, %s3791_s2  }
  0x65   :  { %s3480_s22 = scalar_lea.hbm %s4450_s11, 1024 }
  0x66   :  { %p3481_p12 = scmp.ne.s32.totalorder %s4450_s11, %s3480_s22  ;;  %p3484_p13 = scmp.lt.u32.totalorder %s3480_s22, %s4450_s11 }
  0x68   :  { %p3486_p0 = pnand %p3484_p13, %p3481_p12 }
  0x6a   :  { %3489 = shalt.err (!%p3486_p0)
}
  0x6b   :  { %s3490_s29 = scalar_lea.vmem %s3970_s1, 1024  ;;  %p3495_p2 = scmp.lt.s32.totalorder %s3970_s1, %s3970_s1 }
  0x6c   :  { %p3491_p1 = scmp.ne.s32.totalorder %s3970_s1, %s3490_s29  ;;  %p3496_p3 = scmp.lt.s32.totalorder %s3490_s29, %s3490_s29 }
  0x6e   :  { %p3497_p4 = por %p3496_p3, %p3495_p2 }
  0x70   :  { %p3498_p5 = pnand %p3497_p4, %p3491_p1 }
  0x72   :  { %3501 = shalt.err (!%p3498_p5)
}
  0x73   :  { %168 = dma.hbm_to_vmem [thread:$0]  %s4450_s11, 1024, %s3970_s1, [#allocation21], %s3790_s30, %s3790_s30, %s3791_s2  }
  0x74   :  { %s3794_s0 = smov [#allocation23]   ;;  %s3795_s21 = smov [#allocation26]  }
  0x75   :  { %s186_s19 = sshll.u32 %s3794_s0, 4  ;;  %s210_s7 = sshll.u32 %s3795_s21, 4  ;;  %s187_s19 = int_to_ptr.vmem [resolvable:$true] %s186_s19  ;;  %s4007_s7 = int_to_ptr.vmem [resolvable:$true] %s210_s7 }
  0x76   :  { %s3502_s5 = scalar_lea.hbm %s4452_s13, 1024 }
  0x77   :  { %p3503_p6 = scmp.ne.s32.totalorder %s4452_s13, %s3502_s5  ;;  %p3506_p7 = scmp.lt.u32.totalorder %s3502_s5, %s4452_s13 }
  0x79   :  { %p3508_p8 = pnand %p3506_p7, %p3503_p6 }
  0x7b   :  { %3511 = shalt.err (!%p3508_p8)
}
  0x7c   :  { %s3512_s11 = scalar_lea.vmem %s187_s19, 1024  ;;  %p3517_p10 = scmp.lt.s32.totalorder %s187_s19, %s187_s19 }
  0x7d   :  { %p3513_p9 = scmp.ne.s32.totalorder %s187_s19, %s3512_s11  ;;  %p3518_p11 = scmp.lt.s32.totalorder %s3512_s11, %s3512_s11 }
  0x7f   :  { %p3519_p12 = por %p3518_p11, %p3517_p10 }
  0x81   :  { %p3520_p13 = pnand %p3519_p12, %p3513_p9 }
  0x83   :  { %3523 = shalt.err (!%p3520_p13)
}
  0x84   :  { %192 = dma.hbm_to_vmem [thread:$0]  %s4452_s13, 1024, %s187_s19, [#allocation24], %s3790_s30, %s3790_s30, %s3791_s2  }
  0x85   :  { %s3524_s9 = scalar_lea.hbm %s4454_s15, 2048 }
  0x86   :  { %p3525_p0 = scmp.ne.s32.totalorder %s4454_s15, %s3524_s9  ;;  %p3528_p1 = scmp.lt.u32.totalorder %s3524_s9, %s4454_s15 }
  0x88   :  { %p3530_p2 = pnand %p3528_p1, %p3525_p0 }
  0x8a   :  { %3533 = shalt.err (!%p3530_p2)
}
  0x8b   :  { %s3534_s20 = scalar_lea.vmem %s4007_s7, 2048  ;;  %p3539_p4 = scmp.lt.s32.totalorder %s4007_s7, %s4007_s7 }
  0x8c   :  { %p3535_p3 = scmp.ne.s32.totalorder %s4007_s7, %s3534_s20  ;;  %p3540_p5 = scmp.lt.s32.totalorder %s3534_s20, %s3534_s20 }
  0x8e   :  { %p3541_p6 = por %p3540_p5, %p3539_p4 }
  0x90   :  { %p3542_p7 = pnand %p3541_p6, %p3535_p3 }
  0x92   :  { %3545 = shalt.err (!%p3542_p7)
}
  0x93   :  { %216 = dma.hbm_to_vmem [thread:$0]  %s4454_s15, 2048, %s4007_s7, [#allocation27], %s3790_s30, %s3790_s30, %s3791_s2  }
  0x94   :  { %s3796_s5 = smov [#allocation2]   ;;  %s3797_s22 = smov [#allocation7]  }
  0x95   :  { %s39_s24 = sshll.u32 %s3796_s5, 4  ;;  %s59_s28 = sshll.u32 %s3797_s22, 4  ;;  %s40_s24 = int_to_ptr.vmem [resolvable:$true] %s39_s24  ;;  %s60_s28 = int_to_ptr.vmem [resolvable:$true] %s59_s28 }
  0x96   :  { %s4465_s1 = sld [smem:[#allocation40_spill]] }
  0x9c   :  { %s3546_s25 = scalar_lea.hbm %s4465_s1, 128 }
  0x9d   :  { %p3547_p8 = scmp.ne.s32.totalorder %s4465_s1, %s3546_s25  ;;  %p3550_p9 = scmp.lt.u32.totalorder %s3546_s25, %s4465_s1 }
  0x9f   :  { %p3552_p10 = pnand %p3550_p9, %p3547_p8 }
  0xa1   :  { %3555 = shalt.err (!%p3552_p10)
}
  0xa2   :  { %s3556_s15 = scalar_lea.vmem %s40_s24, 128  ;;  %p3561_p12 = scmp.lt.s32.totalorder %s40_s24, %s40_s24 }
  0xa3   :  { %p3557_p11 = scmp.ne.s32.totalorder %s40_s24, %s3556_s15  ;;  %p3562_p13 = scmp.lt.s32.totalorder %s3556_s15, %s3556_s15 }
  0xa5   :  { %p3563_p0 = por %p3562_p13, %p3561_p12 }
  0xa7   :  { %p3564_p1 = pnand %p3563_p0, %p3557_p11 }
  0xa9   :  { %3567 = shalt.err (!%p3564_p1)
}
  0xaa   :  { %42 = dma.hbm_to_vmem [thread:$0]  %s4465_s1, 128, %s40_s24, [#allocation3]  }
  0xab   :  { %s4466_s20 = sld [smem:[#allocation42_spill]] }
  0xb1   :  { %s3568_s13 = scalar_lea.hbm %s4466_s20, 128 }
  0xb2   :  { %p3569_p2 = scmp.ne.s32.totalorder %s4466_s20, %s3568_s13  ;;  %p3572_p3 = scmp.lt.u32.totalorder %s3568_s13, %s4466_s20 }
  0xb4   :  { %p3574_p4 = pnand %p3572_p3, %p3569_p2 }
  0xb6   :  { %3577 = shalt.err (!%p3574_p4)
}
  0xb7   :  { %s3578_s11 = scalar_lea.vmem %s60_s28, 128  ;;  %p3583_p6 = scmp.lt.s32.totalorder %s60_s28, %s60_s28 }
  0xb8   :  { %p3579_p5 = scmp.ne.s32.totalorder %s60_s28, %s3578_s11  ;;  %p3584_p7 = scmp.lt.s32.totalorder %s3578_s11, %s3578_s11 }
  0xba   :  { %p3585_p8 = por %p3584_p7, %p3583_p6 }
  0xbc   :  { %p3586_p9 = pnand %p3585_p8, %p3579_p5 }
  0xbe   :  { %3589 = shalt.err (!%p3586_p9)
}
  0xbf   :  { %62 = dma.hbm_to_vmem [thread:$0]  %s4466_s20, 128, %s60_s28, [#allocation6]  }
  0xc0   :  { %s3798_s25 = smov [#allocation10]   ;;  %s3799_s29 = smov [#allocation13]  }
  0xc1   :  { %s78_s27 = sshll.u32 %s3798_s25, 4  ;;  %s102_s9 = sshll.u32 %s3799_s29, 4  ;;  %s79_s27 = int_to_ptr.vmem [resolvable:$true] %s78_s27  ;;  %s4068_s9 = int_to_ptr.vmem [resolvable:$true] %s102_s9 }
  0xc2   :  { %s3590_s7 = scalar_lea.hbm %s4443_s4, 1024 }
  0xc3   :  { %p3591_p10 = scmp.ne.s32.totalorder %s4443_s4, %s3590_s7  ;;  %p3594_p11 = scmp.lt.u32.totalorder %s3590_s7, %s4443_s4 }
  0xc5   :  { %p3596_p12 = pnand %p3594_p11, %p3591_p10 }
  0xc7   :  { %3599 = shalt.err (!%p3596_p12)
}
  0xc8   :  { %s3600_s28 = scalar_lea.vmem %s79_s27, 1024  ;;  %p3605_p0 = scmp.lt.s32.totalorder %s79_s27, %s79_s27 }
  0xc9   :  { %p3601_p13 = scmp.ne.s32.totalorder %s79_s27, %s3600_s28  ;;  %p3606_p1 = scmp.lt.s32.totalorder %s3600_s28, %s3600_s28 }
  0xcb   :  { %p3607_p2 = por %p3606_p1, %p3605_p0 }
  0xcd   :  { %p3608_p3 = pnand %p3607_p2, %p3601_p13 }
  0xcf   :  { %3611 = shalt.err (!%p3608_p3)
}
  0xd0   :  { %84 = dma.hbm_to_vmem [thread:$0]  %s4443_s4, 1024, %s79_s27, [#allocation9], %s3790_s30, %s3790_s30, %s3791_s2  }
  0xd1   :  { %s3612_s23 = scalar_lea.hbm %s4445_s6, 2048 }
  0xd2   :  { %p3613_p4 = scmp.ne.s32.totalorder %s4445_s6, %s3612_s23  ;;  %p3616_p5 = scmp.lt.u32.totalorder %s3612_s23, %s4445_s6 }
  0xd4   :  { %p3618_p6 = pnand %p3616_p5, %p3613_p4 }
  0xd6   :  { %3621 = shalt.err (!%p3618_p6)
}
  0xd7   :  { %s3622_s29 = scalar_lea.vmem %s4068_s9, 2048  ;;  %p3627_p8 = scmp.lt.s32.totalorder %s4068_s9, %s4068_s9 }
  0xd8   :  { %p3623_p7 = scmp.ne.s32.totalorder %s4068_s9, %s3622_s29  ;;  %p3628_p9 = scmp.lt.s32.totalorder %s3622_s29, %s3622_s29 }
  0xda   :  { %p3629_p10 = por %p3628_p9, %p3627_p8 }
  0xdc   :  { %p3630_p11 = pnand %p3629_p10, %p3623_p7 }
  0xde   :  { %3633 = shalt.err (!%p3630_p11)
}
  0xdf   :  { %108 = dma.hbm_to_vmem [thread:$0]  %s4445_s6, 2048, %s4068_s9, [#allocation12], %s3790_s30, %s3790_s30, %s3791_s2  }
  0xe0   :  { %s3800_s3 = smov [#allocation16]   ;;  %s3801_s7 = smov [#allocation19]  }
  0xe1   :  { %s126_s15 = sshll.u32 %s3800_s3, 4  ;;  %s150_s0 = sshll.u32 %s3801_s7, 4  ;;  %s127_s15 = int_to_ptr.vmem [resolvable:$true] %s126_s15  ;;  %s4105_s0 = int_to_ptr.vmem [resolvable:$true] %s150_s0 }
  0xe2   :  { %s3634_s13 = scalar_lea.hbm %s4447_s8, 1024 }
  0xe3   :  { %p3635_p12 = scmp.ne.s32.totalorder %s4447_s8, %s3634_s13  ;;  %p3638_p13 = scmp.lt.u32.totalorder %s3634_s13, %s4447_s8 }
  0xe5   :  { %p3640_p0 = pnand %p3638_p13, %p3635_p12 }
  0xe7   :  { %3643 = shalt.err (!%p3640_p0)
}
  0xe8   :  { %s3644_s6 = scalar_lea.vmem %s127_s15, 1024  ;;  %p3649_p2 = scmp.lt.s32.totalorder %s127_s15, %s127_s15 }
  0xe9   :  { %p3645_p1 = scmp.ne.s32.totalorder %s127_s15, %s3644_s6  ;;  %p3650_p3 = scmp.lt.s32.totalorder %s3644_s6, %s3644_s6 }
  0xeb   :  { %p3651_p4 = por %p3650_p3, %p3649_p2 }
  0xed   :  { %p3652_p5 = pnand %p3651_p4, %p3645_p1 }
  0xef   :  { %3655 = shalt.err (!%p3652_p5)
}
  0xf0   :  { %132 = dma.hbm_to_vmem [thread:$0]  %s4447_s8, 1024, %s127_s15, [#allocation15], %s3790_s30, %s3790_s30, %s3791_s2  }
  0xf1   :  { %s3656_s24 = scalar_lea.hbm %s4449_s10, 1024 }
  0xf2   :  { %p3657_p6 = scmp.ne.s32.totalorder %s4449_s10, %s3656_s24  ;;  %p3660_p7 = scmp.lt.u32.totalorder %s3656_s24, %s4449_s10 }
  0xf4   :  { %p3662_p8 = pnand %p3660_p7, %p3657_p6 }
  0xf6   :  { %3665 = shalt.err (!%p3662_p8)
}
  0xf7   :  { %s3666_s27 = scalar_lea.vmem %s4105_s0, 1024  ;;  %p3671_p10 = scmp.lt.s32.totalorder %s4105_s0, %s4105_s0 }
  0xf8   :  { %p3667_p9 = scmp.ne.s32.totalorder %s4105_s0, %s3666_s27  ;;  %p3672_p11 = scmp.lt.s32.totalorder %s3666_s27, %s3666_s27 }
  0xfa   :  { %p3673_p12 = por %p3672_p11, %p3671_p10 }
  0xfc   :  { %p3674_p13 = pnand %p3673_p12, %p3667_p9 }
  0xfe   :  { %3677 = shalt.err (!%p3674_p13)
}
  0xff   :  { %156 = dma.hbm_to_vmem [thread:$0]  %s4449_s10, 1024, %s4105_s0, [#allocation18], %s3790_s30, %s3790_s30, %s3791_s2  }
 0x100   :  { %s3802_s15 = smov [#allocation22]   ;;  %s3803_s21 = smov [#allocation25]  }
 0x101   :  { %s174_s7 = sshll.u32 %s3802_s15, 4  ;;  %s198_s26 = sshll.u32 %s3803_s21, 4  ;;  %s175_s7 = int_to_ptr.vmem [resolvable:$true] %s174_s7  ;;  %s4142_s26 = int_to_ptr.vmem [resolvable:$true] %s198_s26 }
 0x102   :  { %s3678_s20 = scalar_lea.hbm %s4451_s12, 2048 }
 0x103   :  { %p3679_p0 = scmp.ne.s32.totalorder %s4451_s12, %s3678_s20  ;;  %p3682_p1 = scmp.lt.u32.totalorder %s3678_s20, %s4451_s12 }
 0x105   :  { %p3684_p2 = pnand %p3682_p1, %p3679_p0 }
 0x107   :  { %3687 = shalt.err (!%p3684_p2)
}
 0x108   :  { %s3688_s10 = scalar_lea.vmem %s175_s7, 2048  ;;  %p3693_p4 = scmp.lt.s32.totalorder %s175_s7, %s175_s7 }
 0x109   :  { %p3689_p3 = scmp.ne.s32.totalorder %s175_s7, %s3688_s10  ;;  %p3694_p5 = scmp.lt.s32.totalorder %s3688_s10, %s3688_s10 }
 0x10b   :  { %p3695_p6 = por %p3694_p5, %p3693_p4 }
 0x10d   :  { %p3696_p7 = pnand %p3695_p6, %p3689_p3 }
 0x10f   :  { %3699 = shalt.err (!%p3696_p7)
}
 0x110   :  { %180 = dma.hbm_to_vmem [thread:$0]  %s4451_s12, 2048, %s175_s7, [#allocation21], %s3790_s30, %s3790_s30, %s3791_s2  }
 0x111   :  { %s3700_s24 = scalar_lea.hbm %s4453_s14, 1024 }
 0x112   :  { %p3701_p8 = scmp.ne.s32.totalorder %s4453_s14, %s3700_s24  ;;  %p3704_p9 = scmp.lt.u32.totalorder %s3700_s24, %s4453_s14 }
 0x114   :  { %p3706_p10 = pnand %p3704_p9, %p3701_p8 }
 0x116   :  { %3709 = shalt.err (!%p3706_p10)
}
 0x117   :  { %s3710_s27 = scalar_lea.vmem %s4142_s26, 1024  ;;  %p3715_p12 = scmp.lt.s32.totalorder %s4142_s26, %s4142_s26 }
 0x118   :  { %p3711_p11 = scmp.ne.s32.totalorder %s4142_s26, %s3710_s27  ;;  %p3716_p13 = scmp.lt.s32.totalorder %s3710_s27, %s3710_s27 }
 0x11a   :  { %p3717_p0 = por %p3716_p13, %p3715_p12 }
 0x11c   :  { %p3718_p1 = pnand %p3717_p0, %p3711_p11 }
 0x11e   :  { %3721 = shalt.err (!%p3718_p1)
}
 0x11f   :  { %204 = dma.hbm_to_vmem [thread:$0]  %s4453_s14, 1024, %s4142_s26, [#allocation24], %s3790_s30, %s3790_s30, %s3791_s2  }
 0x120   :  { %s3804_s3 = smov [#allocation28]   ;;  %s3722_s13 = scalar_lea.hbm %s4455_s16, 1024 }
 0x121   :  { %s222_s15 = sshll.u32 %s3804_s3, 4  ;;  %p3723_p2 = scmp.ne.s32.totalorder %s4455_s16, %s3722_s13  ;;  %s223_s15 = int_to_ptr.vmem [resolvable:$true] %s222_s15 }
 0x122   :  { %p3726_p3 = scmp.lt.u32.totalorder %s3722_s13, %s4455_s16 }
 0x124   :  { %p3728_p4 = pnand %p3726_p3, %p3723_p2 }
 0x126   :  { %3731 = shalt.err (!%p3728_p4)
}
 0x127   :  { %s3732_s6 = scalar_lea.vmem %s223_s15, 1024  ;;  %p3737_p6 = scmp.lt.s32.totalorder %s223_s15, %s223_s15 }
 0x128   :  { %p3733_p5 = scmp.ne.s32.totalorder %s223_s15, %s3732_s6  ;;  %p3738_p7 = scmp.lt.s32.totalorder %s3732_s6, %s3732_s6 }
 0x12a   :  { %p3739_p8 = por %p3738_p7, %p3737_p6 }
 0x12c   :  { %p3740_p9 = pnand %p3739_p8, %p3733_p5 }
 0x12e   :  { %3743 = shalt.err (!%p3740_p9)
}
 0x12f   :  { %228 = dma.hbm_to_vmem [thread:$0]  %s4455_s16, 1024, %s223_s15, [#allocation27], %s3790_s30, %s3790_s30, %s3791_s2  }
 0x130   :  { %3766 = dma.done.wait [#allocation3], 128  }
 0x131   :  { %3767 = vsyncadd [#allocation3], 4294967168 }
 0x132   :  { %3768 = dma.done.wait [#allocation6], 256  }
 0x133   :  { %3769 = vsyncadd [#allocation6], 4294967040 }
 0x134   :  { %3770 = dma.done.wait [#allocation9], 1408  }
 0x135   :  { %3771 = vsyncadd [#allocation9], 4294965888 }
 0x136   :  { %3772 = dma.done.wait [#allocation12], 3072  }
 0x137   :  { %3773 = vsyncadd [#allocation12], 4294964224 }
 0x138   :  { %3774 = dma.done.wait [#allocation15], 2048  }
 0x139   :  { %3775 = vsyncadd [#allocation15], 4294965248 }
 0x13a   :  { %3776 = dma.done.wait [#allocation18], 3072  }
 0x13b   :  { %3777 = vsyncadd [#allocation18], 4294964224 }
 0x13c   :  { %3778 = dma.done.wait [#allocation21], 3072  }
 0x13d   :  { %3779 = vsyncadd [#allocation21], 4294964224 }
 0x13e   :  { %3780 = dma.done.wait [#allocation24], 2048  }
 0x13f   :  { %3781 = vsyncadd [#allocation24], 4294965248 }
 0x140   :  { %3782 = dma.done.wait [#allocation27], 3072  }
 0x141   :  { %3783 = vsyncadd [#allocation27], 4294964224  ;;  %v3805_v0 = vmov 0.0   ;;  %vm3806_vm0 = vmmov 0   ;;  %v283_v1 = vlaneseq  ;;  %v3174_v2 = vld [vmem:[#allocation10] sm:$0xff]   ;;  %v3175_v4 = vld [vmem:[#allocation10 + $0x8] sm:$0xff]  }
 0x142   :  { %2942 = vmatprep.subr.bf16.mxu0 %v3805_v0  ;;  %2958 = vmatprep.mubr.msk.bf16.mxu0 %vm3806_vm0, %v3805_v0  ;;  %v3176_v6 = vld [vmem:[#allocation10 + $0x10] sm:$0xff]   ;;  %v3182_v7 = vld [vmem:[#allocation11] sm:$0xff]   ;;  %v3177_v9 = vld [vmem:[#allocation10 + $0x18] sm:$0xff]   ;;  %v3807_v41 = vmov 683565275  }
 0x143   :  { %2962 = vmatprep.subr.bf16.mxu1 %v3805_v0  ;;  %2978 = vmatprep.mubr.msk.bf16.mxu1 %vm3806_vm0, %v3805_v0  ;;  %v4200_v3 = vand.u32 127, %v283_v1  ;;  %v3183_v10 = vld [vmem:[#allocation11 + $0x8] sm:$0xff]   ;;  %v3178_v12 = vld [vmem:[#allocation10 + $0x20] sm:$0xff]   ;;  %v3184_v13 = vld [vmem:[#allocation11 + $0x10] sm:$0xff]   ;;  %v3808_v43 = vmov 2475754826  }
 0x144   :  { %2943 = vmatpush3.bf16.msra.mxu0 %v3174_v2  ;;  %2963 = vmatpush3.bf16.msra.mxu1 %v3182_v7  ;;  %v3179_v14 = vld [vmem:[#allocation10 + $0x28] sm:$0xff]   ;;  %v3185_v16 = vld [vmem:[#allocation11 + $0x18] sm:$0xff]   ;;  %v3180_v18 = vld [vmem:[#allocation10 + $0x30] sm:$0xff]   ;;  %v3809_v45 = vmov 2131351028  }
 0x145   :  { %2944 = vmatprep.subr.bf16.mxu0 %v3805_v0  ;;  %v4204_v5 = vcvt.s32.f32 %v4200_v3  ;;  %2964 = vmatprep.subr.bf16.mxu1 %v3805_v0  ;;  %v3186_v19 = vld [vmem:[#allocation11 + $0x20] sm:$0xff]   ;;  %v3181_v20 = vld [vmem:[#allocation10 + $0x38] sm:$0xff]   ;;  %v3187_v22 = vld [vmem:[#allocation11 + $0x28] sm:$0xff]   ;;  %v3810_v47 = vmov 2102212464  }
 0x146   :  { %v507_v21 = vld [vmem:[#allocation5] sm:$0xff]  ;;  %v292_v23 = vld [vmem:[#allocation2] sm:$0xff]  ;;  %v3811_v49 = vmov 920167782   ;;  %v3812_v56 = vmov 1326507024  }
 0x147   :  { %v2566_v8 = vadd.f32 -32.0, %v4204_v5  ;;  %vm286_vm1 = vcmp.lt.f32.partialorder %v4204_v5, 32.0  ;;  %v524_v24 = vpack.c.bf16 %v507_v21, %v507_v21  ;;  %v3188_v25 = vld [vmem:[#allocation11 + $0x30] sm:$0xff]   ;;  %v3189_v30 = vld [vmem:[#allocation11 + $0x38] sm:$0xff]   ;;  %vm502_vm15 = vcmp.lt.f32.partialorder %v4204_v5, 64.0 }
 0x148   :  { %2945 = vmatpush3.bf16.msra.mxu0 %v3175_v4  ;;  %2965 = vmatpush3.bf16.msra.mxu1 %v3183_v10 }
 0x149   :  { %2946 = vmatprep.subr.bf16.mxu0 %v3805_v0  ;;  %v288_v11 = vsel %vm286_vm1, %v4204_v5, %v2566_v8  ;;  %2966 = vmatprep.subr.bf16.mxu1 %v3805_v0  ;;  %v3195_v5 = vld [vmem:[#allocation13 + $0x10] sm:$0xff]  }
 0x14a   :  { %v289_v15 = vmul.f32 -0.28782314, %v288_v11 }
 0x14c   :  { %2947 = vmatpush3.bf16.msra.mxu0 %v3176_v6  ;;  %v290_v17 = vmul.f32 1.442695, %v289_v15  ;;  %2967 = vmatpush3.bf16.msra.mxu1 %v3184_v13 }
 0x14d   :  { %2948 = vmatprep.subr.bf16.mxu0 %v3805_v0  ;;  %2968 = vmatprep.subr.bf16.mxu1 %v3805_v0 }
 0x14e   :  { %3318 = vpow2.f32 %v290_v17 }
 0x150   :  { %2949 = vmatpush3.bf16.msra.mxu0 %v3177_v9  ;;  %2969 = vmatpush3.bf16.msra.mxu1 %v3185_v16 }
 0x151   :  { %2950 = vmatprep.subr.bf16.mxu0 %v3805_v0  ;;  %2970 = vmatprep.subr.bf16.mxu1 %v3805_v0 }
 0x154   :  { %2951 = vmatpush3.bf16.msra.mxu0 %v3178_v12  ;;  %2971 = vmatpush3.bf16.msra.mxu1 %v3186_v19 }
 0x155   :  { %2952 = vmatprep.subr.bf16.mxu0 %v3805_v0  ;;  %2972 = vmatprep.subr.bf16.mxu1 %v3805_v0 }
 0x158   :  { %2953 = vmatpush3.bf16.msra.mxu0 %v3179_v14  ;;  %v3319_v26 = vpop.eup %3318  ;;  %2973 = vmatpush3.bf16.msra.mxu1 %v3187_v22 }
 0x159   :  { %2954 = vmatprep.subr.bf16.mxu0 %v3805_v0  ;;  %v4222_v27 = vmul.f32 %v3319_v26, %v292_v23  ;;  %2974 = vmatprep.subr.bf16.mxu1 %v3805_v0 }
 0x15b   :  { %v294_v28 = vand.u32 2147483647, %v4222_v27  ;;  %v297_v29 = vand.u32 2139095040, %v4222_v27  ;;  %vm296_vm9 = vcmp.lt.s32.totalorder %v4222_v27, 0 }
 0x15c   :  { %2955 = vmatpush3.bf16.msra.mxu0 %v3180_v18  ;;  %2975 = vmatpush3.bf16.msra.mxu1 %v3188_v25 }
 0x15d   :  { %2956 = vmatprep.subr.bf16.mxu0 %v3805_v0  ;;  %v298_v31 = vshrl.u32 %v297_v29, 23  ;;  %v301_v32 = vand.u32 8388607, %v294_v28  ;;  %2976 = vmatprep.subr.bf16.mxu1 %v3805_v0  ;;  %vm4248_vm8 = vcmp.le.f32.partialorder %v294_v28, 0.7853982 }
 0x15f   :  { %v2567_v33 = vadd.s32 4294967169, %v298_v31  ;;  %v302_v34 = vor.u32 8388608, %v301_v32  ;;  %v2587_v32 = vld [vmem:[#allocation8 + $0x3] ss:$0 sm:$0xff] }
 0x160   :  { %2957 = vmatpush3.bf16.msra.mxu0 %v3181_v20  ;;  %2977 = vmatpush3.bf16.msra.mxu1 %v3189_v30 }
 0x161   :  { %v304_v35 = vadd.s32 1, %v2567_v33  ;;  %2982 = vmatprep.subr.bf16.mxu1 %v3805_v0  ;;  %v342_v37 = vshll.u32 %v302_v34, 8 }
 0x163   :  { %2959 = vmatmul.mubr.bf16.vlgmr.msra.gmra.mrb[0].mxu0 %v524_v24  ;;  %vm305_vm2 = vcmp.gt.s32.totalorder %v304_v35, 0 }
 0x164   :  { %v306_v36 = vsel %vm305_vm2, %v304_v35, 0 }
 0x165   :  { %v307_v38 = vshrl.u32 %v306_v36, 5  ;;  %v308_v39 = vand.u32 31, %v306_v36 }
 0x167   :  { %v309_v40 = vsub.s32 32, %v308_v39  ;;  %v311_v42 = vshll.u32 %v3807_v41, %v308_v39  ;;  %v314_v44 = vshll.u32 %v3808_v43, %v308_v39  ;;  %v317_v46 = vshll.u32 %v3809_v45, %v308_v39 }
 0x168   :  { %v320_v48 = vshll.u32 %v3810_v47, %v308_v39  ;;  %v323_v50 = vshll.u32 %v3811_v49, %v308_v39  ;;  %vm326_vm3 = vcmp.lt.s32.totalorder %v307_v38, 1  ;;  %vm327_vm4 = vcmp.lt.s32.totalorder %v307_v38, 2 }
 0x169   :  { %v310_v51 = vshrl.u32 %v3807_v41, %v309_v40  ;;  %v312_v52 = vshrl.u32 %v3808_v43, %v309_v40  ;;  %v315_v53 = vshrl.u32 %v3809_v45, %v309_v40  ;;  %v318_v54 = vshrl.u32 %v3810_v47, %v309_v40 }
 0x16a   :  { %v321_v55 = vshrl.u32 %v3811_v49, %v309_v40  ;;  %v324_v57 = vshrl.u32 %v3812_v56, %v309_v40  ;;  %vm328_vm5 = vcmp.lt.s32.totalorder %v307_v38, 3  ;;  %vm329_vm6 = vcmp.lt.s32.totalorder %v307_v38, 4 }
 0x16b   :  { %v313_v58 = vor.u32 %v312_v52, %v311_v42  ;;  %v316_v59 = vor.u32 %v315_v53, %v314_v44  ;;  %v319_v60 = vor.u32 %v318_v54, %v317_v46 }
 0x16c   :  { %v322_v61 = vor.u32 %v321_v55, %v320_v48  ;;  %v325_v62 = vor.u32 %v324_v57, %v323_v50 }
 0x16d   :  { %v330_v63 = vsel %vm326_vm3, %v310_v51, %v313_v58  ;;  %v331_v1 = vsel %vm329_vm6, %v319_v60, 2102212464  ;;  %v334_v2 = vsel %vm326_vm3, %v313_v58, %v316_v59  ;;  %v338_v4 = vsel %vm326_vm3, %v316_v59, %v319_v60 }
 0x16e   :  { %v332_v6 = vsel %vm328_vm5, %v316_v59, %v331_v1  ;;  %v335_v7 = vsel %vm329_vm6, %v322_v61, 920167782  ;;  %v339_v8 = vsel %vm329_vm6, %v325_v62, 1326507024  ;;  %vm1512_vm6 = vcmp.lt.s32.totalorder %v4200_v3, 32 }
 0x16f   :  { %v336_v9 = vsel %vm328_vm5, %v319_v60, %v335_v7  ;;  %v340_v10 = vsel %vm328_vm5, %v322_v61, %v339_v8  ;;  %v333_v11 = vsel %vm327_vm4, %v330_v63, %v332_v6  ;;  %vm4268_vm5 = vmpackc.low %vm502_vm15, %vm502_vm15  ;;  %v3191_v8 = vld [vmem:[#allocation13] sm:$0xff]  }
 0x170   :  { %v337_v12 = vsel %vm327_vm4, %v334_v2, %v336_v9  ;;  %v341_v13 = vsel %vm327_vm4, %v338_v4, %v340_v10  ;;  %v349_v18 = vmul.u32 %v342_v37, %v333_v11  ;;  %vm386_vm4 = vweird.f32 %v4222_v27  ;;  %v3192_v9 = vld [vmem:[#allocation13 + $0x48] sm:$0xff]   ;;  %v3194_v11 = vld [vmem:[#allocation13 + $0x50] sm:$0xff]  }
 0x171   :  { %v4237_v14 = vmul.u32.u64.low %v342_v37, %v341_v13  ;;  %v4238_v15 = vmul.u32.u64.high %v342_v37, %v341_v13, %v4237_v14  ;;  %v4240_v16 = vmul.u32.u64.low %v342_v37, %v337_v12  ;;  %v4241_v17 = vmul.u32.u64.high %v342_v37, %v337_v12, %v4240_v16  ;;  %v3193_v10 = vld [vmem:[#allocation13 + $0x8] sm:$0xff]   ;;  %v3196_v12 = vld [vmem:[#allocation13 + $0x58] sm:$0xff]  }
 0x172   :  { %v3197_v13 = vld [vmem:[#allocation13 + $0x18] sm:$0xff]   ;;  %v3198_v14 = vld [vmem:[#allocation13 + $0x60] sm:$0xff]  }
 0x173   :  { %vm351_vm7 = vc.u32 %v4238_v15, %v4240_v16  ;;  %v352_v19 = vadd.s32 1, %v4241_v17  ;;  %v350_v35 = vadd.s32 %v4240_v16, %v4238_v15  ;;  %v3199_v15 = vld [vmem:[#allocation13 + $0x20] sm:$0xff]   ;;  %v3200_v16 = vld [vmem:[#allocation13 + $0x68] sm:$0xff]  }
 0x175   :  { %v353_v20 = vsel %vm351_vm7, %v352_v19, %v4241_v17  ;;  %v3201_v17 = vld [vmem:[#allocation13 + $0x28] sm:$0xff]   ;;  %v3203_v19 = vld [vmem:[#allocation13 + $0x30] sm:$0xff]  }
 0x176   :  { %v354_v21 = vadd.s32 %v353_v20, %v349_v18  ;;  %v3202_v18 = vld [vmem:[#allocation13 + $0x70] sm:$0xff]   ;;  %v3204_v20 = vld [vmem:[#allocation13 + $0x78] sm:$0xff]  }
 0x178   :  { %v355_v22 = vadd.s32 536870912, %v354_v21 }
 0x17a   :  { %v356_v23 = vshrl.u32 %v355_v22, 30  ;;  %v652_v22 = vld [vmem:[#allocation7] sm:$0xff] }
 0x17c   :  { %v357_v24 = vshll.u32 %v356_v23, 30  ;;  %v380_v30 = vsub.s32 4, %v356_v23 }
 0x17e   :  { %v358_v25 = vsub.s32 %v354_v21, %v357_v24  ;;  %v381_v34 = vsel %vm296_vm9, %v380_v30, %v356_v23  ;;  %v3205_v21 = vld [vmem:[#allocation13 + $0x38] sm:$0xff]   ;;  %v4281_v23 = vpack.c.bf16 %v652_v22, %v652_v22  ;;  %v2575_v24 = vld [vmem:[#allocation8] ss:$0 sm:$0xff] }
 0x17f   :  { %v383_v37 = vsel %vm4248_vm8, 0, %v381_v34 }
 0x180   :  { %v360_v26 = vsub.s32 0, %v358_v25  ;;  %v387_v42 = vand.u32 3, %v383_v37  ;;  %v490_v45 = vadd.s32 3, %v383_v37  ;;  %938 = vmatprep.mubr.bf16.mxu0 %v4281_v23 }
 0x182   :  { %v2568_v29 = vmin.u32 %v360_v26, %v358_v25  ;;  %v491_v51 = vand.u32 3, %v490_v45  ;;  %vm392_vm11 = vcmp.eq.s32.totalorder %v387_v42, 2  ;;  %vm389_vm13 = vcmp.eq.s32.totalorder %v387_v42, 0 }
 0x183   :  { %vm388_vm14 = vcmp.lt.s32.totalorder %v387_v42, 2 }
 0x184   :  { %v362_v31 = vclz %v2568_v29  ;;  %vm496_vm12 = vcmp.eq.s32.totalorder %v491_v51, 2  ;;  %vm493_vm2 = vcmp.eq.s32.totalorder %v491_v51, 0  ;;  %vm492_vm3 = vcmp.lt.s32.totalorder %v491_v51, 2  ;;  %v3210_v51 = vld [vmem:[#allocation14 + $0x20] sm:$0xff]  }
 0x186   :  { %v2569_v33 = vadd.s32 4294967294, %v362_v31 }
 0x188   :  { %vm2570_vm10 = vcmp.lt.s32.totalorder %v2569_v33, 0 }
 0x189   :  { %v365_v36 = vsel %vm2570_vm10, 0, %v2569_v33 }
 0x18a   :  { %v366_v38 = vsub.s32 32, %v365_v36  ;;  %v367_v39 = vshll.u32 %v358_v25, %v365_v36  ;;  %v370_v40 = vsub.s32 4294967266, %v365_v36 }
 0x18c   :  { %v368_v28 = vshrl.u32 %v350_v35, %v366_v38  ;;  %v371_v41 = vadd.s32 127, %v370_v40 }
 0x18e   :  { %v369_v43 = vor.u32 %v368_v28, %v367_v39  ;;  %v372_v44 = vshll.u32 %v371_v41, 23 }
 0x190   :  { %v373_v46 = vor.u32 4788187, %v372_v44  ;;  %v376_v47 = vcvt.s32.f32 %v369_v43 }
 0x192   :  { %v374_v48 = vand.u32 2147483647, %v373_v46 }
 0x194   :  { %v377_v49 = vmul.f32 %v376_v47, %v374_v48  ;;  %v3206_v47 = vld [vmem:[#allocation14] sm:$0xff]   ;;  %v3207_v48 = vld [vmem:[#allocation14 + $0x8] sm:$0xff]  }
 0x196   :  { %v378_v50 = vxor.u32 2147483648, %v377_v49 }
 0x198   :  { %v379_v52 = vsel %vm296_vm9, %v378_v50, %v377_v49  ;;  %v3208_v49 = vld [vmem:[#allocation14 + $0x10] sm:$0xff]   ;;  %v3209_v50 = vld [vmem:[#allocation14 + $0x18] sm:$0xff]  }
 0x199   :  { %v382_v53 = vsel %vm4248_vm8, %v4222_v27, %v379_v52  ;;  %v3190_v27 = vld [vmem:[#allocation13 + $0x40] sm:$0xff]  }
 0x19a   :  { %3320 = vcosq.f32 %v382_v53  ;;  %2782 = vmatprep.subr.bf16.mxu0 %v3190_v27  ;;  %v3214_v52 = vld [vmem:[#allocation16] sm:$0xff]   ;;  %v2584_v27 = vld [vmem:[#allocation8 + $0x1] ss:$0 sm:$0xff] }
 0x19b   :  { %3322 = vsinq.f32 %v382_v53  ;;  %2783 = vmatpush3.bf16.msra.mxu0 %v3191_v8  ;;  %v3211_v53 = vld [vmem:[#allocation14 + $0x28] sm:$0xff]  }
 0x19c   :  { %2784 = vmatprep.subr.bf16.mxu0 %v3192_v9  ;;  %v2585_v9 = vld [vmem:[#allocation8 + $0x2] ss:$0 sm:$0xff] }
 0x19f   :  { %2785 = vmatpush3.bf16.msra.mxu0 %v3193_v10 }
 0x1a0   :  { %2786 = vmatprep.subr.bf16.mxu0 %v3194_v11 }
 0x1a3   :  { %2787 = vmatpush3.bf16.msra.mxu0 %v3195_v5 }
 0x1a4   :  { %v3321_v54 = vpop.eup %3320  ;;  %2788 = vmatprep.subr.bf16.mxu0 %v3196_v12 }
 0x1a5   :  { %v3323_v55 = vpop.eup %3322  ;;  %v393_v56 = vxor.u32 2147483648, %v3321_v54 }
 0x1a6   :  { %v390_v57 = vxor.u32 2147483648, %v3323_v55 }
 0x1a7   :  { %v394_v58 = vsel %vm392_vm11, %v393_v56, %v3323_v55  ;;  %v498_v59 = vsel %vm496_vm12, %v393_v56, %v3323_v55  ;;  %2789 = vmatpush3.bf16.msra.mxu0 %v3197_v13  ;;  %v3212_v55 = vld [vmem:[#allocation14 + $0x30] sm:$0xff]  }
 0x1a8   :  { %v391_v60 = vsel %vm389_vm13, %v3321_v54, %v390_v57  ;;  %v495_v61 = vsel %vm493_vm2, %v3321_v54, %v390_v57  ;;  %2790 = vmatprep.subr.bf16.mxu0 %v3198_v14  ;;  %v3215_v54 = vld [vmem:[#allocation16 + $0x8] sm:$0xff]   ;;  %v3216_v56 = vld [vmem:[#allocation16 + $0x10] sm:$0xff]   ;;  %v3213_v57 = vld [vmem:[#allocation14 + $0x38] sm:$0xff]  }
 0x1a9   :  { %v395_v62 = vsel %vm388_vm14, %v391_v60, %v394_v58  ;;  %v499_v63 = vsel %vm492_vm3, %v495_v61, %v498_v59  ;;  %v3217_v58 = vld [vmem:[#allocation16 + $0x18] sm:$0xff]   ;;  %v3218_v59 = vld [vmem:[#allocation16 + $0x20] sm:$0xff]   ;;  %v3219_v60 = vld [vmem:[#allocation16 + $0x28] sm:$0xff]  }
 0x1aa   :  { %v396_v1 = vsel %vm386_vm4, nan, %v395_v62  ;;  %v500_v2 = vsel %vm386_vm4, nan, %v499_v63  ;;  %v3220_v61 = vld [vmem:[#allocation16 + $0x30] sm:$0xff]   ;;  %v3221_v62 = vld [vmem:[#allocation16 + $0x38] sm:$0xff]  }
 0x1ab   :  { %v501_v6 = vsel %vm286_vm1, %v396_v1, %v500_v2  ;;  %2791 = vmatpush3.bf16.msra.mxu0 %v3199_v15  ;;  %vm1068_vm1 = vcmp.lt.s32.totalorder %v4200_v3, 64  ;;  %v3305_v3 = vld [vmem:[#allocation28 + $0x18] sm:$0xff]  }
 0x1ac   :  { %v4274_v7 = vpack.c.bf16 %v501_v6, %v501_v6  ;;  %2792 = vmatprep.subr.bf16.mxu0 %v3200_v16 }
 0x1ae   :  { %2979 = vmatmul.mubr.msk.bf16.vlgmr.msra.gmra.mrb[0].mxu1 %vm4268_vm5, %v4274_v7 }
 0x1af   :  { %2998 = vmatprep.mubr.msk.bf16.mxu1 %vm3806_vm0, %v3805_v0  ;;  %2793 = vmatpush3.bf16.msra.mxu0 %v3201_v17 }
 0x1b0   :  { %2794 = vmatprep.subr.bf16.mxu0 %v3202_v18  ;;  %2983 = vmatpush3.bf16.msra.mxu1 %v3206_v47 }
 0x1b1   :  { %2984 = vmatprep.subr.bf16.mxu1 %v3805_v0 }
 0x1b3   :  { %2795 = vmatpush3.bf16.msra.mxu0 %v3203_v19 }
 0x1b4   :  { %2796 = vmatprep.subr.bf16.mxu0 %v3204_v20  ;;  %2985 = vmatpush3.bf16.msra.mxu1 %v3207_v48 }
 0x1b5   :  { %2986 = vmatprep.subr.bf16.mxu1 %v3805_v0 }
 0x1b7   :  { %2797 = vmatpush3.bf16.msra.mxu0 %v3205_v21  ;;  %v2616_v21 = vld [vmem:[#allocation8 + $0x4] ss:$0 sm:$0xff] }
 0x1b8   :  { %3002 = vmatprep.subr.bf16.mxu0 %v3805_v0  ;;  %2987 = vmatpush3.bf16.msra.mxu1 %v3208_v49 }
 0x1b9   :  { %2988 = vmatprep.subr.bf16.mxu1 %v3805_v0 }
 0x1bc   :  { %2989 = vmatpush3.bf16.msra.mxu1 %v3209_v50 }
 0x1bd   :  { %2990 = vmatprep.subr.bf16.mxu1 %v3805_v0 }
 0x1c0   :  { %2991 = vmatpush3.bf16.msra.mxu1 %v3210_v51 }
 0x1c1   :  { %2992 = vmatprep.subr.bf16.mxu1 %v3805_v0 }
 0x1c4   :  { %2993 = vmatpush3.bf16.msra.mxu1 %v3211_v53 }
 0x1c5   :  { %2994 = vmatprep.subr.bf16.mxu1 %v3805_v0 }
 0x1c8   :  { %2995 = vmatpush3.bf16.msra.mxu1 %v3212_v55  ;;  %v2617_v55 = vld [vmem:[#allocation8 + $0x5] ss:$0 sm:$0xff] }
 0x1c9   :  { %2996 = vmatprep.subr.bf16.mxu1 %v3805_v0 }
 0x1cc   :  { %2997 = vmatpush3.bf16.msra.mxu1 %v3213_v57 }
 0x236   :  { %v613_v25 = vpop.f32.mrb[0].mxu0 }
 0x237   :  { %v614_v26 = vadd.f32 %v2575_v24, %v613_v25  ;;  %v2960_v29 = vpop.f32.mrb[1].mxu0 }
 0x238   :  { %v616_v30 = vpop.f32.mrb[2].mxu0  ;;  %v3223_v29 = vld [vmem:[#allocation17] sm:$0xff]  }
 0x239   :  { %v2961_v31 = vpop.f32.mrb[3].mxu0  ;;  %619 = vadd.xlane.f32.xlu0 %v614_v26  ;;  %v3224_v30 = vld [vmem:[#allocation17 + $0x48] sm:$0xff]  }
 0x23a   :  { %v3225_v31 = vld [vmem:[#allocation17 + $0x8] sm:$0xff]  }
 0x281   :  { %v763_v33 = vpop.f32.mrb[0].mxu1 }
 0x282   :  { %v764_v34 = vadd.f32 %v2587_v32, %v763_v33  ;;  %v2980_v35 = vpop.f32.mrb[1].mxu1  ;;  %v3226_v32 = vld [vmem:[#allocation17 + $0x50] sm:$0xff]  }
 0x283   :  { %v766_v36 = vpop.f32.mrb[2].mxu1  ;;  %v3227_v33 = vld [vmem:[#allocation17 + $0x10] sm:$0xff]   ;;  %v3229_v35 = vld [vmem:[#allocation17 + $0x18] sm:$0xff]  }
 0x284   :  { %v2599_v37 = vmul.f32 -1.442695, %v764_v34  ;;  %v2981_v38 = vpop.f32.mrb[3].mxu1  ;;  %v3230_v36 = vld [vmem:[#allocation17 + $0x60] sm:$0xff]  }
 0x285   :  { %v3232_v38 = vld [vmem:[#allocation17 + $0x68] sm:$0xff]  }
 0x286   :  { %3324 = vpow2.f32 %v2599_v37  ;;  %v3231_v37 = vld [vmem:[#allocation17 + $0x20] sm:$0xff]  }
 0x290   :  { %v3325_v39 = vpop.eup %3324 }
 0x291   :  { %v772_v40 = vadd.f32 1.0, %v3325_v39  ;;  %v3233_v39 = vld [vmem:[#allocation17 + $0x28] sm:$0xff]  }
 0x293   :  { %3326 = vrcp.f32 %v772_v40  ;;  %v3234_v40 = vld [vmem:[#allocation17 + $0x70] sm:$0xff]  }
 0x29d   :  { %v3327_v28 = vpop.eup %3326 }
 0x29e   :  { %v775_v41 = vmul.f32 %v3327_v28, %v764_v34  ;;  %v3228_v34 = vld [vmem:[#allocation17 + $0x58] sm:$0xff]   ;;  %v3235_v28 = vld [vmem:[#allocation17 + $0x30] sm:$0xff]  }
 0x2a0   :  { %v808_v42 = vpack.c.bf16 %v775_v41, %v775_v41  ;;  %v3236_v41 = vld [vmem:[#allocation17 + $0x78] sm:$0xff]  }
 0x2a2   :  { %939 = vmatmul.mubr.bf16.vlgmr.msra.gmra.mrb[4].mxu0 %v808_v42  ;;  %v3237_v42 = vld [vmem:[#allocation17 + $0x38] sm:$0xff]  }
 0x2a3   :  { %3018 = vmatprep.mubr.msk.bf16.mxu0 %vm3806_vm0, %v3805_v0  ;;  %3003 = vmatpush3.bf16.msra.mxu0 %v3214_v52 }
 0x2a4   :  { %3004 = vmatprep.subr.bf16.mxu0 %v3805_v0 }
 0x2a7   :  { %3005 = vmatpush3.bf16.msra.mxu0 %v3215_v54 }
 0x2a8   :  { %3006 = vmatprep.subr.bf16.mxu0 %v3805_v0 }
 0x2ab   :  { %3007 = vmatpush3.bf16.msra.mxu0 %v3216_v56 }
 0x2ac   :  { %3008 = vmatprep.subr.bf16.mxu0 %v3805_v0 }
 0x2af   :  { %3009 = vmatpush3.bf16.msra.mxu0 %v3217_v58 }
 0x2b0   :  { %3010 = vmatprep.subr.bf16.mxu0 %v3805_v0 }
 0x2b3   :  { %3011 = vmatpush3.bf16.msra.mxu0 %v3218_v59 }
 0x2b4   :  { %3012 = vmatprep.subr.bf16.mxu0 %v3805_v0 }
 0x2b7   :  { %3013 = vmatpush3.bf16.msra.mxu0 %v3219_v60 }
 0x2b8   :  { %3014 = vmatprep.subr.bf16.mxu0 %v3805_v0 }
 0x2bb   :  { %3015 = vmatpush3.bf16.msra.mxu0 %v3220_v61 }
 0x2bc   :  { %3016 = vmatprep.subr.bf16.mxu0 %v3805_v0 }
 0x2bf   :  { %3017 = vmatpush3.bf16.msra.mxu0 %v3221_v62 }
 0x2c0   :  { %3022 = vmatprep.subr.bf16.mxu0 %v3805_v0 }
 0x2c2   :  { %3019 = vmatmul.mubr.msk.bf16.vlgmr.msra.gmra.mrb[8].mxu0 %vm4268_vm5, %v4274_v7 }
 0x2c3   :  { %3038 = vmatprep.mubr.msk.bf16.mxu0 %vm3806_vm0, %v3805_v0 }
 0x2c6   :  { %v620_v43 = vpop.xlane.xlu0 %619 }
 0x2c7   :  { %v622_v44 = vmul.f32 0.0078125, %v620_v43  ;;  %v2629_v43 = vld [vmem:[#allocation8 + $0x8] ss:$0 sm:$0xff] }
 0x2c9   :  { %v623_v45 = vsub.f32 %v614_v26, %v622_v44  ;;  %v3222_v26 = vld [vmem:[#allocation17 + $0x40] sm:$0xff]  }
 0x2ca   :  { %2822 = vmatprep.subr.bf16.mxu1 %v3222_v26  ;;  %v3252_v26 = vld [vmem:[#allocation20 + $0x30] sm:$0xff]  }
 0x2cb   :  { %v624_v46 = vmul.f32 %v623_v45, %v623_v45 }
 0x2cd   :  { %625 = vadd.xlane.f32.xlu0 %v624_v46 }
 0x35a   :  { %v626_v63 = vpop.xlane.xlu0 %625 }
 0x35b   :  { %v627_v1 = vmul.f32 0.0078125, %v626_v63 }
 0x35d   :  { %v628_v2 = vadd.f32 1e-05, %v627_v1 }
 0x35f   :  { %3328 = vrsqrt.f32 %v628_v2 }
 0x369   :  { %v3329_v6 = vpop.eup %3328 }
 0x36a   :  { %v630_v8 = vmul.f32 %v3329_v6, %v623_v45 }
 0x36c   :  { %v637_v10 = vmul.f32 %v2584_v27, %v630_v8 }
 0x36e   :  { %v644_v11 = vadd.f32 %v2585_v9, %v637_v10 }
 0x370   :  { %v2586_v5 = vmul.f32 -1.442695, %v644_v11 }
 0x372   :  { %3330 = vpow2.f32 %v2586_v5  ;;  %v3239_v5 = vld [vmem:[#allocation19 + $0x8] sm:$0xff]  }
 0x375   :  { %v2798_v14 = vpop.f32.mrb[4].mxu0 }
 0x376   :  { %v2799_v15 = vpop.f32.mrb[5].mxu0 }
 0x377   :  { %v2800_v16 = vadd.f32 %v2799_v15, %v2798_v14  ;;  %v2801_v17 = vpop.f32.mrb[6].mxu0  ;;  %v3242_v14 = vld [vmem:[#allocation19 + $0x20] sm:$0xff]  }
 0x378   :  { %v2802_v18 = vpop.f32.mrb[7].mxu0  ;;  %v3246_v15 = vld [vmem:[#allocation20] sm:$0xff]   ;;  %v3247_v17 = vld [vmem:[#allocation20 + $0x8] sm:$0xff]  }
 0x379   :  { %v3244_v18 = vld [vmem:[#allocation19 + $0x30] sm:$0xff]  }
 0x37c   :  { %v3331_v12 = vpop.eup %3330 }
 0x37d   :  { %v648_v13 = vadd.f32 1.0, %v3331_v12  ;;  %v3240_v12 = vld [vmem:[#allocation19 + $0x10] sm:$0xff]  }
 0x37f   :  { %3332 = vrcp.f32 %v648_v13  ;;  %v3241_v13 = vld [vmem:[#allocation19 + $0x18] sm:$0xff]  }
 0x389   :  { %v3333_v19 = vpop.eup %3332 }
 0x38a   :  { %v4307_v20 = vmul.f32 %v3333_v19, %v644_v11  ;;  %v3238_v11 = vld [vmem:[#allocation19] sm:$0xff]   ;;  %v3248_v19 = vld [vmem:[#allocation20 + $0x10] sm:$0xff]  }
 0x38b   :  { %3023 = vmatpush3.bf16.msra.mxu0 %v3238_v11 }
 0x38c   :  { %v946_v22 = vadd.f32 %v2800_v16, %v4307_v20  ;;  %3024 = vmatprep.subr.bf16.mxu0 %v3805_v0  ;;  %v3243_v16 = vld [vmem:[#allocation19 + $0x28] sm:$0xff]  }
 0x38e   :  { %v953_v24 = vadd.f32 %v2616_v21, %v946_v22  ;;  %v3245_v21 = vld [vmem:[#allocation19 + $0x38] sm:$0xff]  }
 0x38f   :  { %3025 = vmatpush3.bf16.msra.mxu0 %v3239_v5  ;;  %v3249_v22 = vld [vmem:[#allocation20 + $0x18] sm:$0xff]  }
 0x390   :  { %v970_v25 = vpack.c.bf16 %v953_v24, %v953_v24  ;;  %3026 = vmatprep.subr.bf16.mxu0 %v3805_v0  ;;  %v3250_v24 = vld [vmem:[#allocation20 + $0x20] sm:$0xff]  }
 0x392   :  { %2999 = vmatmul.mubr.bf16.vlgmr.msra.gmra.mrb[4].mxu1 %v970_v25  ;;  %v3251_v25 = vld [vmem:[#allocation20 + $0x28] sm:$0xff]  }
 0x393   :  { %1382 = vmatprep.mubr.bf16.mxu1 %v4281_v23  ;;  %2823 = vmatpush3.bf16.msra.mxu1 %v3223_v29  ;;  %v3253_v29 = vld [vmem:[#allocation20 + $0x38] sm:$0xff]  }
 0x394   :  { %2824 = vmatprep.subr.bf16.mxu1 %v3224_v30  ;;  %3027 = vmatpush3.bf16.msra.mxu0 %v3240_v12 }
 0x395   :  { %v1208_v44 = vpop.f32.mrb[8].mxu0  ;;  %3028 = vmatprep.subr.bf16.mxu0 %v3805_v0 }
 0x396   :  { %v1209_v45 = vadd.f32 %v2629_v43, %v1208_v44  ;;  %v3020_v46 = vpop.f32.mrb[9].mxu0  ;;  %v2658_v43 = vld [vmem:[#allocation8 + $0x9] ss:$0 sm:$0xff] }
 0x397   :  { %2825 = vmatpush3.bf16.msra.mxu1 %v3225_v31  ;;  %v1211_v47 = vpop.f32.mrb[10].mxu0 }
 0x398   :  { %2826 = vmatprep.subr.bf16.mxu1 %v3226_v32  ;;  %v2641_v48 = vmul.f32 -1.442695, %v1209_v45  ;;  %v3021_v49 = vpop.f32.mrb[11].mxu0  ;;  %3029 = vmatpush3.bf16.msra.mxu0 %v3241_v13  ;;  %v3254_v47 = vld [vmem:[#allocation22 + $0x40] sm:$0xff]  }
 0x399   :  { %3030 = vmatprep.subr.bf16.mxu0 %v3805_v0  ;;  %v3256_v49 = vld [vmem:[#allocation22 + $0x48] sm:$0xff]  }
 0x39a   :  { %3334 = vpow2.f32 %v2641_v48  ;;  %v3255_v48 = vld [vmem:[#allocation22] sm:$0xff]  }
 0x39b   :  { %2827 = vmatpush3.bf16.msra.mxu1 %v3227_v33 }
 0x39c   :  { %2828 = vmatprep.subr.bf16.mxu1 %v3228_v34  ;;  %3031 = vmatpush3.bf16.msra.mxu0 %v3242_v14  ;;  %v2626_v34 = vld [vmem:[#allocation8 + $0x6] ss:$0 sm:$0xff]  ;;  %v2659_v14 = vld [vmem:[#allocation8 + $0xa] ss:$0 sm:$0xff] }
 0x39d   :  { %3032 = vmatprep.subr.bf16.mxu0 %v3805_v0 }
 0x39f   :  { %2829 = vmatpush3.bf16.msra.mxu1 %v3229_v35 }
 0x3a0   :  { %2830 = vmatprep.subr.bf16.mxu1 %v3230_v36  ;;  %3033 = vmatpush3.bf16.msra.mxu0 %v3243_v16  ;;  %v2627_v36 = vld [vmem:[#allocation8 + $0x7] ss:$0 sm:$0xff] }
 0x3a1   :  { %3034 = vmatprep.subr.bf16.mxu0 %v3805_v0 }
 0x3a3   :  { %2831 = vmatpush3.bf16.msra.mxu1 %v3231_v37 }
 0x3a4   :  { %2832 = vmatprep.subr.bf16.mxu1 %v3232_v38  ;;  %v3335_v50 = vpop.eup %3334  ;;  %3035 = vmatpush3.bf16.msra.mxu0 %v3244_v18 }
 0x3a5   :  { %v1217_v51 = vadd.f32 1.0, %v3335_v50  ;;  %3036 = vmatprep.subr.bf16.mxu0 %v3805_v0  ;;  %v3257_v50 = vld [vmem:[#allocation22 + $0x8] sm:$0xff]  }
 0x3a7   :  { %2833 = vmatpush3.bf16.msra.mxu1 %v3233_v39  ;;  %3336 = vrcp.f32 %v1217_v51  ;;  %v3258_v51 = vld [vmem:[#allocation22 + $0x50] sm:$0xff]  }
 0x3a8   :  { %2834 = vmatprep.subr.bf16.mxu1 %v3234_v40  ;;  %3037 = vmatpush3.bf16.msra.mxu0 %v3245_v21 }
 0x3a9   :  { %2862 = vmatprep.subr.bf16.mxu0 %v3254_v47  ;;  %v3283_v47 = vld [vmem:[#allocation25 + $0x28] sm:$0xff]  }
 0x3ab   :  { %2835 = vmatpush3.bf16.msra.mxu1 %v3235_v28 }
 0x3ac   :  { %2836 = vmatprep.subr.bf16.mxu1 %v3236_v41 }
 0x3af   :  { %2837 = vmatpush3.bf16.msra.mxu1 %v3237_v42 }
 0x3b0   :  { %3042 = vmatprep.subr.bf16.mxu1 %v3805_v0 }
 0x3b1   :  { %v3337_v52 = vpop.eup %3336 }
 0x3b2   :  { %v1220_v53 = vmul.f32 %v3337_v52, %v1209_v45  ;;  %v3259_v52 = vld [vmem:[#allocation22 + $0x10] sm:$0xff]  }
 0x3b4   :  { %v1253_v54 = vpack.c.bf16 %v1220_v53, %v1220_v53  ;;  %v3260_v53 = vld [vmem:[#allocation22 + $0x58] sm:$0xff]  }
 0x3b6   :  { %1383 = vmatmul.mubr.bf16.vlgmr.msra.gmra.mrb[8].mxu1 %v1253_v54  ;;  %v3261_v54 = vld [vmem:[#allocation22 + $0x18] sm:$0xff]  }
 0x3b7   :  { %3058 = vmatprep.mubr.msk.bf16.mxu1 %vm3806_vm0, %v3805_v0  ;;  %3043 = vmatpush3.bf16.msra.mxu1 %v3246_v15 }
 0x3b8   :  { %3044 = vmatprep.subr.bf16.mxu1 %v3805_v0 }
 0x3bb   :  { %3045 = vmatpush3.bf16.msra.mxu1 %v3247_v17 }
 0x3bc   :  { %3046 = vmatprep.subr.bf16.mxu1 %v3805_v0 }
 0x3bf   :  { %3047 = vmatpush3.bf16.msra.mxu1 %v3248_v19 }
 0x3c0   :  { %3048 = vmatprep.subr.bf16.mxu1 %v3805_v0 }
 0x3c3   :  { %3049 = vmatpush3.bf16.msra.mxu1 %v3249_v22 }
 0x3c4   :  { %3050 = vmatprep.subr.bf16.mxu1 %v3805_v0 }
 0x3c7   :  { %3051 = vmatpush3.bf16.msra.mxu1 %v3250_v24 }
 0x3c8   :  { %3052 = vmatprep.subr.bf16.mxu1 %v3805_v0 }
 0x3cb   :  { %3053 = vmatpush3.bf16.msra.mxu1 %v3251_v25 }
 0x3cc   :  { %3054 = vmatprep.subr.bf16.mxu1 %v3805_v0 }
 0x3cf   :  { %3055 = vmatpush3.bf16.msra.mxu1 %v3252_v26 }
 0x3d0   :  { %3056 = vmatprep.subr.bf16.mxu1 %v3805_v0 }
 0x3d3   :  { %3057 = vmatpush3.bf16.msra.mxu1 %v3253_v29 }
 0x3d4   :  { %3062 = vmatprep.subr.bf16.mxu1 %v3805_v0 }
 0x3d6   :  { %3059 = vmatmul.mubr.msk.bf16.vlgmr.msra.gmra.mrb[12].mxu1 %vm4268_vm5, %v4274_v7 }
 0x3d7   :  { %3078 = vmatprep.mubr.msk.bf16.mxu1 %vm3806_vm0, %v3805_v0 }
 0x465   :  { %v1059_v56 = vpop.f32.mrb[4].mxu1 }
 0x466   :  { %v1060_v57 = vadd.f32 %v2617_v55, %v1059_v56  ;;  %v3000_v58 = vpop.f32.mrb[5].mxu1  ;;  %v3262_v55 = vld [vmem:[#allocation22 + $0x60] sm:$0xff]  }
 0x467   :  { %v1062_v59 = vpop.f32.mrb[6].mxu1  ;;  %v3263_v56 = vld [vmem:[#allocation22 + $0x20] sm:$0xff]   ;;  %v3265_v58 = vld [vmem:[#allocation22 + $0x28] sm:$0xff]  }
 0x468   :  { %1065 = vadd.xlane.f32.xlu1 %v1060_v57  ;;  %v3001_v60 = vpop.f32.mrb[7].mxu1  ;;  %v3266_v59 = vld [vmem:[#allocation22 + $0x70] sm:$0xff]  }
 0x469   :  { %v3267_v60 = vld [vmem:[#allocation22 + $0x30] sm:$0xff]  }
 0x489   :  { %v2838_v6 = vpop.f32.mrb[8].mxu1 }
 0x48a   :  { %v2839_v27 = vpop.f32.mrb[9].mxu1 }
 0x48b   :  { %v2841_v8 = vpop.f32.mrb[10].mxu1  ;;  %v4321_v10 = vadd.f32 %v2839_v27, %v2838_v6 }
 0x48c   :  { %v2842_v9 = vpop.f32.mrb[11].mxu1 }
 0x4f5   :  { %v1066_v61 = vpop.xlane.xlu1 %1065 }
 0x4f6   :  { %v1067_v62 = vmul.f32 0.015625, %v1066_v61  ;;  %v3268_v61 = vld [vmem:[#allocation22 + $0x78] sm:$0xff]  }
 0x4f8   :  { %v1069_v63 = vsub.f32 %v1060_v57, %v1067_v62  ;;  %v3264_v57 = vld [vmem:[#allocation22 + $0x68] sm:$0xff]   ;;  %v3269_v62 = vld [vmem:[#allocation22 + $0x38] sm:$0xff]  }
 0x4fa   :  { %v4317_v1 = vsel %vm1068_vm1, %v1069_v63, 0.0  ;;  %v2671_v63 = vld [vmem:[#allocation8 + $0xd] ss:$0 sm:$0xff] }
 0x4fb   :  { %v1071_v2 = vmul.f32 %v4317_v1, %v4317_v1 }
 0x4fd   :  { %1072 = vadd.xlane.f32.xlu1 %v1071_v2 }
 0x58a   :  { %v1073_v30 = vpop.xlane.xlu1 %1072 }
 0x58b   :  { %v1074_v31 = vmul.f32 0.015625, %v1073_v30 }
 0x58d   :  { %v1075_v32 = vadd.f32 1e-05, %v1074_v31 }
 0x58f   :  { %3338 = vrsqrt.f32 %v1075_v32 }
 0x599   :  { %v3339_v33 = vpop.eup %3338 }
 0x59a   :  { %v1077_v35 = vmul.f32 %v3339_v33, %v4317_v1  ;;  %v1652_v1 = vpop.f32.mrb[12].mxu1 }
 0x59b   :  { %v1653_v2 = vadd.f32 %v2671_v63, %v1652_v1  ;;  %v3060_v6 = vpop.f32.mrb[13].mxu1 }
 0x59c   :  { %v1084_v37 = vmul.f32 %v2626_v34, %v1077_v35  ;;  %v1655_v27 = vpop.f32.mrb[14].mxu1  ;;  %v3270_v34 = vld [vmem:[#allocation23] sm:$0xff]   ;;  %v3271_v35 = vld [vmem:[#allocation23 + $0x8] sm:$0xff]  }
 0x59d   :  { %v2683_v8 = vmul.f32 -1.442695, %v1653_v2  ;;  %v3061_v9 = vpop.f32.mrb[15].mxu1  ;;  %3063 = vmatpush3.bf16.msra.mxu1 %v3270_v34  ;;  %v3286_v6 = vld [vmem:[#allocation26 + $0x40] sm:$0xff]  }
 0x59e   :  { %v1091_v38 = vadd.f32 %v2627_v36, %v1084_v37  ;;  %3064 = vmatprep.subr.bf16.mxu1 %v3805_v0  ;;  %v3272_v36 = vld [vmem:[#allocation23 + $0x10] sm:$0xff]   ;;  %v3273_v37 = vld [vmem:[#allocation23 + $0x18] sm:$0xff]   ;;  %v3287_v27 = vld [vmem:[#allocation26] sm:$0xff]  }
 0x59f   :  { %v3289_v9 = vld [vmem:[#allocation26 + $0x8] sm:$0xff]  }
 0x5a0   :  { %v2628_v39 = vmul.f32 -1.442695, %v1091_v38 }
 0x5a1   :  { %3065 = vmatpush3.bf16.msra.mxu1 %v3271_v35 }
 0x5a2   :  { %3340 = vpow2.f32 %v2628_v39  ;;  %3066 = vmatprep.subr.bf16.mxu1 %v3805_v0  ;;  %v3278_v39 = vld [vmem:[#allocation25] sm:$0xff]  }
 0x5a5   :  { %3067 = vmatpush3.bf16.msra.mxu1 %v3272_v36  ;;  %v2701_v36 = vld [vmem:[#allocation8 + $0xf] ss:$0 sm:$0xff] }
 0x5a6   :  { %3068 = vmatprep.subr.bf16.mxu1 %v3805_v0 }
 0x5a9   :  { %3069 = vmatpush3.bf16.msra.mxu1 %v3273_v37 }
 0x5aa   :  { %3070 = vmatprep.subr.bf16.mxu1 %v3805_v0 }
 0x5ac   :  { %v3341_v40 = vpop.eup %3340 }
 0x5ad   :  { %v1095_v28 = vadd.f32 1.0, %v3341_v40  ;;  %v3275_v40 = vld [vmem:[#allocation23 + $0x28] sm:$0xff]  }
 0x5af   :  { %3342 = vrcp.f32 %v1095_v28  ;;  %v3279_v28 = vld [vmem:[#allocation25 + $0x8] sm:$0xff]  }
 0x5b0   :  { %3344 = vpow2.f32 %v2683_v8  ;;  %v3288_v8 = vld [vmem:[#allocation26 + $0x48] sm:$0xff]  }
 0x5b9   :  { %v3343_v41 = vpop.eup %3342 }
 0x5ba   :  { %v4344_v42 = vmul.f32 %v3343_v41, %v1091_v38  ;;  %v3274_v38 = vld [vmem:[#allocation23 + $0x20] sm:$0xff]   ;;  %v3276_v41 = vld [vmem:[#allocation23 + $0x30] sm:$0xff]  }
 0x5bb   :  { %3071 = vmatpush3.bf16.msra.mxu1 %v3274_v38 }
 0x5bc   :  { %v1390_v44 = vadd.f32 %v4321_v10, %v4344_v42  ;;  %v3345_v10 = vpop.eup %3344  ;;  %3072 = vmatprep.subr.bf16.mxu1 %v3805_v0 }
 0x5bd   :  { %v1661_v11 = vadd.f32 1.0, %v3345_v10  ;;  %v3290_v10 = vld [vmem:[#allocation26 + $0x50] sm:$0xff]  }
 0x5be   :  { %v1397_v45 = vadd.f32 %v2658_v43, %v1390_v44  ;;  %v3280_v43 = vld [vmem:[#allocation25 + $0x10] sm:$0xff]   ;;  %v3277_v44 = vld [vmem:[#allocation23 + $0x38] sm:$0xff]  }
 0x5bf   :  { %3346 = vrcp.f32 %v1661_v11  ;;  %3073 = vmatpush3.bf16.msra.mxu1 %v3275_v40  ;;  %v3291_v11 = vld [vmem:[#allocation26 + $0x10] sm:$0xff]  }
 0x5c0   :  { %v1414_v46 = vpack.c.bf16 %v1397_v45, %v1397_v45  ;;  %3074 = vmatprep.subr.bf16.mxu1 %v3805_v0  ;;  %v3281_v45 = vld [vmem:[#allocation25 + $0x18] sm:$0xff]  }
 0x5c2   :  { %3039 = vmatmul.mubr.bf16.vlgmr.msra.gmra.mrb[12].mxu0 %v1414_v46  ;;  %v3282_v46 = vld [vmem:[#allocation25 + $0x20] sm:$0xff]  }
 0x5c3   :  { %1826 = vmatprep.mubr.bf16.mxu0 %v4281_v23  ;;  %2863 = vmatpush3.bf16.msra.mxu0 %v3255_v48  ;;  %v3284_v48 = vld [vmem:[#allocation25 + $0x30] sm:$0xff]  }
 0x5c4   :  { %2864 = vmatprep.subr.bf16.mxu0 %v3256_v49  ;;  %3075 = vmatpush3.bf16.msra.mxu1 %v3276_v41  ;;  %v3285_v49 = vld [vmem:[#allocation25 + $0x38] sm:$0xff]  }
 0x5c5   :  { %3076 = vmatprep.subr.bf16.mxu1 %v3805_v0 }
 0x5c7   :  { %2865 = vmatpush3.bf16.msra.mxu0 %v3257_v50 }
 0x5c8   :  { %2866 = vmatprep.subr.bf16.mxu0 %v3258_v51  ;;  %3077 = vmatpush3.bf16.msra.mxu1 %v3277_v44 }
 0x5c9   :  { %v3347_v5 = vpop.eup %3346  ;;  %2902 = vmatprep.subr.bf16.mxu1 %v3286_v6 }
 0x5ca   :  { %v1664_v12 = vmul.f32 %v3347_v5, %v1653_v2  ;;  %v3292_v5 = vld [vmem:[#allocation26 + $0x58] sm:$0xff]  }
 0x5cb   :  { %2867 = vmatpush3.bf16.msra.mxu0 %v3259_v52 }
 0x5cc   :  { %2868 = vmatprep.subr.bf16.mxu0 %v3260_v53  ;;  %v1697_v13 = vpack.c.bf16 %v1664_v12, %v1664_v12  ;;  %v3293_v12 = vld [vmem:[#allocation26 + $0x18] sm:$0xff]  }
 0x5cf   :  { %2869 = vmatpush3.bf16.msra.mxu0 %v3261_v54  ;;  %v2668_v54 = vld [vmem:[#allocation8 + $0xb] ss:$0 sm:$0xff] }
 0x5d0   :  { %2870 = vmatprep.subr.bf16.mxu0 %v3262_v55 }
 0x5d3   :  { %2871 = vmatpush3.bf16.msra.mxu0 %v3263_v56  ;;  %v2669_v56 = vld [vmem:[#allocation8 + $0xc] ss:$0 sm:$0xff] }
 0x5d4   :  { %2872 = vmatprep.subr.bf16.mxu0 %v3264_v57 }
 0x5d7   :  { %2873 = vmatpush3.bf16.msra.mxu0 %v3265_v58 }
 0x5d8   :  { %2874 = vmatprep.subr.bf16.mxu0 %v3266_v59 }
 0x5db   :  { %2875 = vmatpush3.bf16.msra.mxu0 %v3267_v60 }
 0x5dc   :  { %2876 = vmatprep.subr.bf16.mxu0 %v3268_v61 }
 0x5df   :  { %2877 = vmatpush3.bf16.msra.mxu0 %v3269_v62  ;;  %v2700_v62 = vld [vmem:[#allocation8 + $0xe] ss:$0 sm:$0xff] }
 0x5e0   :  { %3082 = vmatprep.subr.bf16.mxu0 %v3805_v0 }
 0x5e2   :  { %1827 = vmatmul.mubr.bf16.vlgmr.msra.gmra.mrb[16].mxu0 %v1697_v13  ;;  %v3294_v13 = vld [vmem:[#allocation26 + $0x60] sm:$0xff]  }
 0x5e3   :  { %3098 = vmatprep.mubr.msk.bf16.mxu0 %vm3806_vm0, %v3805_v0  ;;  %3083 = vmatpush3.bf16.msra.mxu0 %v3278_v39 }
 0x5e4   :  { %3084 = vmatprep.subr.bf16.mxu0 %v3805_v0 }
 0x5e7   :  { %3085 = vmatpush3.bf16.msra.mxu0 %v3279_v28 }
 0x5e8   :  { %3086 = vmatprep.subr.bf16.mxu0 %v3805_v0 }
 0x5eb   :  { %3087 = vmatpush3.bf16.msra.mxu0 %v3280_v43 }
 0x5ec   :  { %3088 = vmatprep.subr.bf16.mxu0 %v3805_v0 }
 0x5ef   :  { %3089 = vmatpush3.bf16.msra.mxu0 %v3281_v45 }
 0x5f0   :  { %3090 = vmatprep.subr.bf16.mxu0 %v3805_v0 }
 0x5f3   :  { %3091 = vmatpush3.bf16.msra.mxu0 %v3282_v46 }
 0x5f4   :  { %3092 = vmatprep.subr.bf16.mxu0 %v3805_v0 }
 0x5f7   :  { %3093 = vmatpush3.bf16.msra.mxu0 %v3283_v47 }
 0x5f8   :  { %3094 = vmatprep.subr.bf16.mxu0 %v3805_v0 }
 0x5fb   :  { %3095 = vmatpush3.bf16.msra.mxu0 %v3284_v48 }
 0x5fc   :  { %3096 = vmatprep.subr.bf16.mxu0 %v3805_v0 }
 0x5ff   :  { %3097 = vmatpush3.bf16.msra.mxu0 %v3285_v49 }
 0x600   :  { %3102 = vmatprep.subr.bf16.mxu0 %v3805_v0 }
 0x602   :  { %3099 = vmatmul.mubr.msk.bf16.vlgmr.msra.gmra.mrb[20].mxu0 %vm4268_vm5, %v4274_v7 }
 0x603   :  { %3118 = vmatprep.mubr.msk.bf16.mxu0 %vm3806_vm0, %v3805_v0 }
 0x695   :  { %v1503_v15 = vpop.f32.mrb[12].mxu0 }
 0x696   :  { %v1504_v16 = vadd.f32 %v2659_v14, %v1503_v15  ;;  %v3040_v17 = vpop.f32.mrb[13].mxu0  ;;  %v3295_v14 = vld [vmem:[#allocation26 + $0x20] sm:$0xff]   ;;  %v3297_v15 = vld [vmem:[#allocation26 + $0x28] sm:$0xff]  }
 0x697   :  { %v1506_v18 = vpop.f32.mrb[14].mxu0  ;;  %v3299_v17 = vld [vmem:[#allocation26 + $0x30] sm:$0xff]  }
 0x698   :  { %1509 = vadd.xlane.f32.xlu0 %v1504_v16  ;;  %v3041_v19 = vpop.f32.mrb[15].mxu0  ;;  %v3300_v18 = vld [vmem:[#allocation26 + $0x78] sm:$0xff]  }
 0x699   :  { %v3301_v19 = vld [vmem:[#allocation26 + $0x38] sm:$0xff]  }
 0x6b5   :  { %v2878_v29 = vpop.f32.mrb[16].mxu0 }
 0x6b6   :  { %v2879_v30 = vpop.f32.mrb[17].mxu0 }
 0x6b7   :  { %v2881_v31 = vpop.f32.mrb[18].mxu0  ;;  %v4357_v33 = vadd.f32 %v2879_v30, %v2878_v29 }
 0x6b8   :  { %v2882_v32 = vpop.f32.mrb[19].mxu0 }
 0x725   :  { %v1510_v21 = vpop.xlane.xlu0 %1509 }
 0x726   :  { %v1511_v22 = vmul.f32 0.03125, %v1510_v21  ;;  %v2713_v21 = vld [vmem:[#allocation8 + $0x12] ss:$0 sm:$0xff] }
 0x728   :  { %v1513_v24 = vsub.f32 %v1504_v16, %v1511_v22  ;;  %v3298_v16 = vld [vmem:[#allocation26 + $0x70] sm:$0xff]   ;;  %v2096_v22 = vpop.f32.mrb[20].mxu0 }
 0x72a   :  { %v4353_v25 = vsel %vm1512_vm6, %v1513_v24, 0.0  ;;  %v2097_v24 = vadd.f32 %v2713_v21, %v2096_v22 }
 0x72b   :  { %v1515_v26 = vmul.f32 %v4353_v25, %v4353_v25 }
 0x72c   :  { %v2725_v29 = vmul.f32 -1.442695, %v2097_v24 }
 0x72d   :  { %1516 = vadd.xlane.f32.xlu1 %v1515_v26 }
 0x7ba   :  { %v1517_v50 = vpop.xlane.xlu1 %1516 }
 0x7bb   :  { %v1518_v51 = vmul.f32 0.03125, %v1517_v50 }
 0x7bd   :  { %v1519_v52 = vadd.f32 1e-05, %v1518_v51 }
 0x7bf   :  { %3348 = vrsqrt.f32 %v1519_v52  ;;  %v3302_v52 = vld [vmem:[#allocation28] sm:$0xff]  }
 0x7c0   :  { %3103 = vmatpush3.bf16.msra.mxu0 %v3302_v52 }
 0x7c1   :  { %3104 = vmatprep.subr.bf16.mxu0 %v3805_v0 }
 0x7c9   :  { %v3349_v53 = vpop.eup %3348 }
 0x7ca   :  { %v1521_v55 = vmul.f32 %v3349_v53, %v4353_v25  ;;  %v3100_v25 = vpop.f32.mrb[21].mxu0  ;;  %v3303_v53 = vld [vmem:[#allocation28 + $0x8] sm:$0xff]  }
 0x7cb   :  { %v2099_v26 = vpop.f32.mrb[22].mxu0  ;;  %3105 = vmatpush3.bf16.msra.mxu0 %v3303_v53 }
 0x7cc   :  { %v1528_v57 = vmul.f32 %v2668_v54, %v1521_v55  ;;  %v3101_v30 = vpop.f32.mrb[23].mxu0  ;;  %3106 = vmatprep.subr.bf16.mxu0 %v3805_v0  ;;  %v3304_v54 = vld [vmem:[#allocation28 + $0x10] sm:$0xff]   ;;  %v3306_v55 = vld [vmem:[#allocation28 + $0x20] sm:$0xff]   ;;  %v3311_v26 = vld [vmem:[%s4456_s17 + $0x8] sm:$0xff]  }
 0x7cd   :  { %v3313_v30 = vld [vmem:[%s4456_s17 + $0x18] sm:$0xff]  }
 0x7ce   :  { %v1535_v58 = vadd.f32 %v2669_v56, %v1528_v57  ;;  %v3307_v56 = vld [vmem:[#allocation28 + $0x28] sm:$0xff]   ;;  %v3308_v57 = vld [vmem:[#allocation28 + $0x30] sm:$0xff]  }
 0x7cf   :  { %3107 = vmatpush3.bf16.msra.mxu0 %v3304_v54 }
 0x7d0   :  { %v2670_v59 = vmul.f32 -1.442695, %v1535_v58  ;;  %3108 = vmatprep.subr.bf16.mxu0 %v3805_v0 }
 0x7d2   :  { %3350 = vpow2.f32 %v2670_v59 }
 0x7d3   :  { %3109 = vmatpush3.bf16.msra.mxu0 %v3305_v3 }
 0x7d4   :  { %3110 = vmatprep.subr.bf16.mxu0 %v3805_v0 }
 0x7d7   :  { %3111 = vmatpush3.bf16.msra.mxu0 %v3306_v55 }
 0x7d8   :  { %3112 = vmatprep.subr.bf16.mxu0 %v3805_v0 }
 0x7db   :  { %3113 = vmatpush3.bf16.msra.mxu0 %v3307_v56 }
 0x7dc   :  { %v3351_v60 = vpop.eup %3350  ;;  %3114 = vmatprep.subr.bf16.mxu0 %v3805_v0 }
 0x7dd   :  { %v1539_v61 = vadd.f32 1.0, %v3351_v60 }
 0x7df   :  { %3352 = vrcp.f32 %v1539_v61  ;;  %3115 = vmatpush3.bf16.msra.mxu0 %v3308_v57 }
 0x7e0   :  { %3354 = vpow2.f32 %v2725_v29  ;;  %3116 = vmatprep.subr.bf16.mxu0 %v3805_v0  ;;  %v3312_v29 = vld [vmem:[%s4456_s17 + $0x10] sm:$0xff]  }
 0x7e9   :  { %v3353_v4 = vpop.eup %3352 }
 0x7ea   :  { %v1542_v7 = vmul.f32 %v3353_v4, %v1535_v58  ;;  %v3355_v31 = vpop.eup %3354  ;;  %v3309_v58 = vld [vmem:[#allocation28 + $0x38] sm:$0xff]  }
 0x7eb   :  { %v2105_v32 = vadd.f32 1.0, %v3355_v31  ;;  %3117 = vmatpush3.bf16.msra.mxu0 %v3309_v58  ;;  %v3314_v31 = vld [vmem:[%s4456_s17 + $0x20] sm:$0xff]  }
 0x7ec   :  { %v1834_v63 = vadd.f32 %v4357_v33, %v1542_v7  ;;  %v2710_v7 = vld [vmem:[#allocation8 + $0x10] ss:$0 sm:$0xff] }
 0x7ed   :  { %3356 = vrcp.f32 %v2105_v32  ;;  %v3315_v32 = vld [vmem:[%s4456_s17 + $0x28] sm:$0xff]  }
 0x7ee   :  { %v1841_v1 = vadd.f32 %v2700_v62, %v1834_v63  ;;  %v2711_v63 = vld [vmem:[#allocation8 + $0x11] ss:$0 sm:$0xff] }
 0x7f0   :  { %v1858_v2 = vpack.c.bf16 %v1841_v1, %v1841_v1 }
 0x7f2   :  { %3079 = vmatmul.mubr.bf16.vlgmr.msra.gmra.mrb[16].mxu1 %v1858_v2 }
 0x7f3   :  { %2270 = vmatprep.mubr.bf16.mxu1 %v4281_v23  ;;  %2903 = vmatpush3.bf16.msra.mxu1 %v3287_v27  ;;  %v3296_v23 = vld [vmem:[#allocation26 + $0x68] sm:$0xff]  }
 0x7f4   :  { %2904 = vmatprep.subr.bf16.mxu1 %v3288_v8 }
 0x7f7   :  { %2905 = vmatpush3.bf16.msra.mxu1 %v3289_v9  ;;  %v3357_v33 = vpop.eup %3356 }
 0x7f8   :  { %2906 = vmatprep.subr.bf16.mxu1 %v3290_v10  ;;  %v2108_v34 = vmul.f32 %v3357_v33, %v2097_v24  ;;  %v3316_v33 = vld [vmem:[%s4456_s17 + $0x30] sm:$0xff]  }
 0x7fa   :  { %v2141_v35 = vpack.c.bf16 %v2108_v34, %v2108_v34  ;;  %v3317_v34 = vld [vmem:[%s4456_s17 + $0x38] sm:$0xff]  }
 0x7fb   :  { %2907 = vmatpush3.bf16.msra.mxu1 %v3291_v11 }
 0x7fc   :  { %2908 = vmatprep.subr.bf16.mxu1 %v3292_v5  ;;  %v2742_v5 = vld [vmem:[#allocation8 + $0x13] ss:$0 sm:$0xff] }
 0x7ff   :  { %2909 = vmatpush3.bf16.msra.mxu1 %v3293_v12 }
 0x800   :  { %2910 = vmatprep.subr.bf16.mxu1 %v3294_v13 }
 0x803   :  { %2911 = vmatpush3.bf16.msra.mxu1 %v3295_v14 }
 0x804   :  { %2912 = vmatprep.subr.bf16.mxu1 %v3296_v23  ;;  %v2743_v23 = vld [vmem:[#allocation8 + $0x14] ss:$0 sm:$0xff] }
 0x807   :  { %2913 = vmatpush3.bf16.msra.mxu1 %v3297_v15 }
 0x808   :  { %2914 = vmatprep.subr.bf16.mxu1 %v3298_v16 }
 0x80b   :  { %2915 = vmatpush3.bf16.msra.mxu1 %v3299_v17 }
 0x80c   :  { %2916 = vmatprep.subr.bf16.mxu1 %v3300_v18 }
 0x80f   :  { %2917 = vmatpush3.bf16.msra.mxu1 %v3301_v19 }
 0x810   :  { %3122 = vmatprep.subr.bf16.mxu1 %v3805_v0 }
 0x812   :  { %2271 = vmatmul.mubr.bf16.vlgmr.msra.gmra.mrb[20].mxu1 %v2141_v35 }
 0x813   :  { %3138 = vmatprep.mubr.msk.bf16.mxu1 %vm3806_vm0, %v3805_v0 }
 0x8c5   :  { %v1947_v37 = vpop.f32.mrb[16].mxu1 }
 0x8c6   :  { %v1948_v38 = vadd.f32 %v2701_v36, %v1947_v37  ;;  %v3080_v39 = vpop.f32.mrb[17].mxu1 }
 0x8c7   :  { %v1950_v40 = vpop.f32.mrb[18].mxu1  ;;  %v2752_v39 = vld [vmem:[#allocation8 + $0x15] ss:$0 sm:$0xff] }
 0x8c8   :  { %1953 = vadd.xlane.f32.xlu0 %v1948_v38  ;;  %v3081_v28 = vpop.f32.mrb[19].mxu1 }
 0x8c9   :  { %v2753_v28 = vld [vmem:[#allocation8 + $0x16] ss:$0 sm:$0xff] }
 0x8e5   :  { %v2918_v47 = vpop.f32.mrb[20].mxu1 }
 0x8e6   :  { %v2919_v48 = vpop.f32.mrb[21].mxu1 }
 0x8e7   :  { %v2921_v49 = vpop.f32.mrb[22].mxu1  ;;  %v2920_v51 = vadd.f32 %v2919_v48, %v2918_v47 }
 0x8e8   :  { %v2922_v50 = vpop.f32.mrb[23].mxu1 }
 0x8e9   :  { %v2755_v50 = vld [vmem:[#allocation8 + $0x17] ss:$0 sm:$0xff] }
 0x955   :  { %v1954_v41 = vpop.xlane.xlu0 %1953 }
 0x956   :  { %v1955_v43 = vmul.f32 0.015625, %v1954_v41 }
 0x958   :  { %v1956_v44 = vsub.f32 %v1948_v38, %v1955_v43 }
 0x95a   :  { %v1957_v45 = vsel %vm1068_vm1, %v1956_v44, 0.0 }
 0x95b   :  { %v1958_v46 = vmul.f32 %v1957_v45, %v1957_v45 }
 0x95d   :  { %1959 = vadd.xlane.f32.xlu1 %v1958_v46 }
 0x9ea   :  { %v1960_v59 = vpop.xlane.xlu1 %1959 }
 0x9eb   :  { %v1961_v60 = vmul.f32 0.015625, %v1960_v59 }
 0x9ed   :  { %v1962_v61 = vadd.f32 1e-05, %v1961_v60 }
 0x9ef   :  { %3358 = vrsqrt.f32 %v1962_v61 }
 0x9f9   :  { %v3359_v4 = vpop.eup %3358 }
 0x9fa   :  { %v1964_v62 = vmul.f32 %v3359_v4, %v1957_v45 }
 0x9fc   :  { %v1971_v1 = vmul.f32 %v2710_v7, %v1964_v62 }
 0x9fe   :  { %v1978_v2 = vadd.f32 %v2711_v63, %v1971_v1 }
 0xa00   :  { %v2712_v6 = vmul.f32 -1.442695, %v1978_v2 }
 0xa02   :  { %3360 = vpow2.f32 %v2712_v6 }
 0xa0c   :  { %v3361_v27 = vpop.eup %3360 }
 0xa0d   :  { %v1982_v8 = vadd.f32 1.0, %v3361_v27 }
 0xa0f   :  { %3362 = vrcp.f32 %v1982_v8 }
 0xa19   :  { %v3363_v9 = vpop.eup %3362 }
 0xa1a   :  { %v1985_v10 = vmul.f32 %v3363_v9, %v1978_v2 }
 0xa1c   :  { %v1986_v11 = vadd.f32 %v1985_v10, %v4344_v42  ;;  %v3310_v42 = vld [vmem:[%s4456_s17] sm:$0xff]   ;;  %s3813_s17 = smov [#allocation29]  }
 0xa1d   :  { %3123 = vmatpush3.bf16.msra.mxu1 %v3310_v42  ;;  %s2549_s8 = sshll.u32 %s3813_s17, 4  ;;  %s2550_s8 = int_to_ptr.vmem [resolvable:$true] %s2549_s8 }
 0xa1e   :  { %v2278_v12 = vadd.f32 %v2920_v51, %v1986_v11  ;;  %3124 = vmatprep.subr.bf16.mxu1 %v3805_v0  ;;  %s3744_s3 = scalar_lea.vmem %s2550_s8, 128  ;;  %p3749_p11 = scmp.lt.s32.totalorder %s2550_s8, %s2550_s8 }
 0xa1f   :  { %p3745_p10 = scmp.ne.s32.totalorder %s2550_s8, %s3744_s3  ;;  %p3750_p12 = scmp.lt.s32.totalorder %s3744_s3, %s3744_s3 }
 0xa20   :  { %v2285_v13 = vadd.f32 %v2742_v5, %v2278_v12 }
 0xa21   :  { %3125 = vmatpush3.bf16.msra.mxu1 %v3311_v26  ;;  %p3751_p13 = por %p3750_p12, %p3749_p11 }
 0xa22   :  { %v2302_v14 = vpack.c.bf16 %v2285_v13, %v2285_v13  ;;  %3126 = vmatprep.subr.bf16.mxu1 %v3805_v0 }
 0xa23   :  { %p3752_p0 = pnand %p3751_p13, %p3745_p10 }
 0xa24   :  { %3119 = vmatmul.mubr.bf16.vlgmr.msra.gmra.mrb[24].mxu0 %v2302_v14 }
 0xa25   :  { %3127 = vmatpush3.bf16.msra.mxu1 %v3312_v29 }
 0xa26   :  { %3128 = vmatprep.subr.bf16.mxu1 %v3805_v0 }
 0xa29   :  { %3129 = vmatpush3.bf16.msra.mxu1 %v3313_v30 }
 0xa2a   :  { %3130 = vmatprep.subr.bf16.mxu1 %v3805_v0 }
 0xa2d   :  { %3131 = vmatpush3.bf16.msra.mxu1 %v3314_v31 }
 0xa2e   :  { %3132 = vmatprep.subr.bf16.mxu1 %v3805_v0 }
 0xa31   :  { %3133 = vmatpush3.bf16.msra.mxu1 %v3315_v32 }
 0xa32   :  { %3134 = vmatprep.subr.bf16.mxu1 %v3805_v0 }
 0xa35   :  { %3135 = vmatpush3.bf16.msra.mxu1 %v3316_v33 }
 0xa36   :  { %3136 = vmatprep.subr.bf16.mxu1 %v3805_v0 }
 0xa39   :  { %3137 = vmatpush3.bf16.msra.mxu1 %v3317_v34 }
 0xaf7   :  { %v2391_v15 = vpop.f32.mrb[24].mxu0 }
 0xaf8   :  { %v2392_v16 = vadd.f32 %v2743_v23, %v2391_v15  ;;  %v3120_v17 = vpop.f32.mrb[25].mxu0 }
 0xaf9   :  { %v2394_v18 = vpop.f32.mrb[26].mxu0 }
 0xafa   :  { %2397 = vadd.xlane.f32.xlu0 %v2392_v16  ;;  %v3121_v19 = vpop.f32.mrb[27].mxu0 }
 0xb87   :  { %v2398_v21 = vpop.xlane.xlu0 %2397 }
 0xb88   :  { %v2399_v22 = vmul.f32 0.0078125, %v2398_v21 }
 0xb8a   :  { %v2400_v24 = vsub.f32 %v2392_v16, %v2399_v22 }
 0xb8c   :  { %v2401_v25 = vmul.f32 %v2400_v24, %v2400_v24 }
 0xb8e   :  { %2402 = vadd.xlane.f32.xlu1 %v2401_v25 }
 0xc1b   :  { %v2403_v35 = vpop.xlane.xlu1 %2402 }
 0xc1c   :  { %v2404_v36 = vmul.f32 0.0078125, %v2403_v35 }
 0xc1e   :  { %v2405_v37 = vadd.f32 1e-05, %v2404_v36 }
 0xc20   :  { %3364 = vrsqrt.f32 %v2405_v37 }
 0xc2a   :  { %v3365_v38 = vpop.eup %3364 }
 0xc2b   :  { %v2407_v40 = vmul.f32 %v3365_v38, %v2400_v24 }
 0xc2d   :  { %v2414_v41 = vmul.f32 %v2752_v39, %v2407_v40 }
 0xc2f   :  { %v2421_v43 = vadd.f32 %v2753_v28, %v2414_v41 }
 0xc31   :  { %v2754_v44 = vmul.f32 -1.442695, %v2421_v43 }
 0xc33   :  { %3366 = vpow2.f32 %v2754_v44 }
 0xc3d   :  { %v3367_v45 = vpop.eup %3366 }
 0xc3e   :  { %v2425_v46 = vadd.f32 1.0, %v3367_v45 }
 0xc40   :  { %3368 = vrcp.f32 %v2425_v46 }
 0xc4a   :  { %v3369_v47 = vpop.eup %3368 }
 0xc4b   :  { %v2428_v48 = vmul.f32 %v3369_v47, %v2421_v43 }
 0xc4d   :  { %v2429_v0 = vadd.f32 %v2428_v48, %v4307_v20 }
 0xc4f   :  { %v2447_v49 = vpack.c.bf16 %v2429_v0, %v2429_v0 }
 0xc51   :  { %3139 = vmatmul.mubr.bf16.vlgmr.msra.gmra.mrb[24].mxu1 %v2447_v49 }
 0xd24   :  { %v2536_v51 = vpop.f32.mrb[24].mxu1 }
 0xd25   :  { %v2537_v52 = vadd.f32 %v2755_v50, %v2536_v51  ;;  %v3140_v53 = vpop.f32.mrb[25].mxu1 }
 0xd26   :  { %v2539_v54 = vpop.f32.mrb[26].mxu1 }
 0xd27   :  { %2542 = vst [vmem:[#allocation29] sm:$0xff] %v2537_v52  ;;  %v3141_v3 = vpop.f32.mrb[27].mxu1 }
 0xd28   :  { %3755 = shalt.err (!%p3752_p0)
}
 0xd29   :  { %s3756_s21 = scalar_lea.hbm %s4457_s18, 128 }
 0xd2a   :  { %p3757_p1 = scmp.ne.s32.totalorder %s4457_s18, %s3756_s21  ;;  %p3760_p2 = scmp.lt.u32.totalorder %s3756_s21, %s4457_s18 }
 0xd2c   :  { %p3762_p3 = pnand %p3760_p2, %p3757_p1 }
 0xd2e   :  { %3765 = shalt.err (!%p3762_p3)
}
 0xd2f   :  { %2552 = dma.vmem_to_hbm [thread:$0]  %s2550_s8, 128, %s4457_s18, [#allocation4]  }
 0xd30   :  { %3784 = dma.done.wait [#allocation4], 128  }
 0xd31   :  { %3785 = vsyncadd [#allocation4], 4294967168 }
 0xd32   :  { %2556 = vsyncpa [#allocation3], 1 }
 0xd33   :  { %2557 = vsyncpa [#allocation6], 1 }
 0xd34   :  { %2558 = vsyncpa [#allocation9], 1 }
 0xd35   :  { %2559 = vsyncpa [#allocation12], 1 }
 0xd36   :  { %2560 = vsyncpa [#allocation15], 1 }
 0xd37   :  { %2561 = vsyncpa [#allocation18], 1 }
 0xd38   :  { %2562 = vsyncpa [#allocation21], 1 }
 0xd39   :  { %2563 = vsyncpa [#allocation24], 1 }
 0xd3a   :  { %2564 = vsyncpa [#allocation27], 1 }
 0xd3b   :  { %2565 = vsyncpa [#allocation4], 1 }

</bundles_post_ra>
